<compile_context>
chip_gen: v7x
topology: tpu7x:2x2x1
jax: 0.10.0
libtpu: 0.0.40
codegen_flags: <defaults>
</compile_context>

<pallas_src>
import numpy as np

import jax
import jax.numpy as jnp
from jax import lax
from jax.experimental import pallas as pl
from jax.experimental.pallas import tpu as pltpu

NEG_SLOPE = 0.2
BN_EPS = 1e-5


# ------------------------------ fused kernel --------------------------------

def _lrelu(y):
    return jnp.where(y > 0, y, NEG_SLOPE * y)


def _bn_train(y, gamma, beta):
    """Training-mode BN over the row (N*H*W) axis: one-pass stats, folded affine."""
    inv_m = 1.0 / y.shape[0]
    mean = jnp.sum(y, axis=0, keepdims=True) * inv_m
    mean_sq = jnp.sum(y * y, axis=0, keepdims=True) * inv_m
    var = mean_sq - mean * mean
    scale = gamma * lax.rsqrt(var + BN_EPS)
    shift = beta - mean * scale
    return y * scale + shift


def _tap_conv(a_bf16, w_ref):
    """Sum over the 9 kernel taps.

    a_bf16 rows hold 9 stacked tap blocks (tap-major); w_ref is (9, Cin, Cout)
    bf16.  Each term is a bf16 MXU matmul with f32 accumulation; row slices
    are static and sublane-aligned (block sizes 128 / 32 / 8).
    """
    rows = a_bf16.shape[0] // 9
    acc = jnp.dot(a_bf16[0:rows], w_ref[0], preferred_element_type=jnp.float32)
    for k in range(1, 9):
        acc = acc + jnp.dot(a_bf16[k * rows:(k + 1) * rows], w_ref[k],
                            preferred_element_type=jnp.float32)
    return acc


def _fused_disc_kernel(p2_ref, w1_ref,
                       w2_ref, bn2g_ref, bn2b_ref,
                       sel3_ref, w3_ref, bn3g_ref, bn3b_ref,
                       sel4_ref, w4_ref, bn4g_ref, bn4b_ref,
                       fct_ref, esel_ref, fcb_ref,
                       out_ref):
    # conv1 evaluated directly at every conv2 tap position (gather hoisted to
    # trace time; selection commutes with LeakyReLU), then LeakyReLU.
    a1 = jnp.dot(p2_ref[...], w1_ref[...], preferred_element_type=jnp.float32)
    a1 = _lrelu(a1).astype(jnp.bfloat16)                       # (9*N*64, 16)
    # TODO(synk): Dropout2d after every conv is identity (see header).

    # conv2 -> LeakyReLU -> BatchNorm (training stats).
    y2 = _bn_train(_lrelu(_tap_conv(a1, w2_ref)),
                   bn2g_ref[...], bn2b_ref[...])               # (N*64, 32) f32
    y2 = y2.astype(jnp.bfloat16)

    # conv3: one batched 0/1 selection matmul gathers all 9 taps (exact in
    # bf16 / f32-accumulate), then per-tap weight matmuls.
    g3 = jnp.dot(sel3_ref[...], y2, preferred_element_type=jnp.float32)
    g3 = g3.astype(jnp.bfloat16)                               # (9*N*16, 32)
    y3 = _bn_train(_lrelu(_tap_conv(g3, w3_ref)),
                   bn3g_ref[...], bn3b_ref[...])               # (N*16, 64) f32
    y3 = y3.astype(jnp.bfloat16)

    # conv4.
    g4 = jnp.dot(sel4_ref[...], y3, preferred_element_type=jnp.float32)
    g4 = g4.astype(jnp.bfloat16)                               # (9*N*4, 64)
    y4 = _bn_train(_lrelu(_tap_conv(g4, w4_ref)),
                   bn4g_ref[...], bn4b_ref[...])               # (N*4, 128) f32

    # FC + sigmoid.  fc weights are pre-permuted to NHWC-flatten order and
    # tiled over the batch, so this is a VPU multiply plus reductions.
    z = y4 * fct_ref[...]                                      # (N*4, 128)
    per_sample = jnp.dot(esel_ref[...], z,
                         preferred_element_type=jnp.float32)   # (N, 128)
    logits = jnp.sum(per_sample, axis=1, keepdims=True) + fcb_ref[...]
    out_ref[...] = pl.reciprocal(1.0 + jnp.exp(-logits), approx=False)


# ------------------------------ trace-time prep ------------------------------

def _conv2_tap_patches(x_nhwc):
    """conv1 im2col patches gathered at every conv2 tap position.

    Returns (9 * N*8*8, 9): tap-major blocks, each in (b, oh2, ow2) row order.
    Out-of-bounds taps (conv2's zero padding) are all-zero patch rows, so
    lrelu(0 @ w1) = 0 reproduces the padded conv1 activation exactly.
    """
    n, h, w, c = x_nhwc.shape                       # 32, 32, c == 1
    ho, wo = h // 2, w // 2                         # conv1 output: 16x16
    xp = jnp.pad(x_nhwc, ((0, 0), (1, 1), (1, 1), (0, 0)))
    cols = [xp[:, i:i + 2 * ho:2, j:j + 2 * wo:2, :]
            for i in range(3) for j in range(3)]
    patches1 = jnp.concatenate(cols, axis=-1)       # (N, 16, 16, 9*c)

    pp = jnp.pad(patches1, ((0, 0), (1, 1), (1, 1), (0, 0)))
    h2, w2 = ho // 2, wo // 2                       # conv2 output: 8x8
    taps = [pp[:, di:di + 2 * h2:2, dj:dj + 2 * w2:2, :]
            .reshape(n * h2 * w2, 9 * c)
            for di in range(3) for dj in range(3)]
    return jnp.concatenate(taps, axis=0).astype(jnp.bfloat16)  # (9*N*64, 9)


def _conv1_weight(w):
    cout, cin, kh, kw = w.shape
    return (jnp.transpose(w, (2, 3, 1, 0))
            .reshape(kh * kw * cin, cout).astype(jnp.bfloat16))   # (9, 16)


def _tap_weights(w):
    """(Cout, Cin, 3, 3) -> (9, Cin, Cout), tap-major, bf16, UNPADDED."""
    cout, cin, kh, kw = w.shape
    return (jnp.transpose(w, (2, 3, 1, 0))
            .reshape(kh * kw, cin, cout).astype(jnp.bfloat16))


def _stacked_gather(n, hi, wi):
    """Stacked 0/1 selection matrix (9*N*Ho*Wo, N*Hi*Wi), 3x3/stride-2/pad-1.

    Each row picks at most one row of the (N*Hi*Wi, C) feature map (zero rows
    for padding taps), so bf16 storage and the gather matmul are exact.
    """
    ho, wo = hi // 2, wi // 2
    rows = n * ho * wo
    g = np.zeros((9 * rows, n * hi * wi), np.float32)
    for di in range(3):
        for dj in range(3):
            k = di * 3 + dj
            for b in range(n):
                for oh in range(ho):
                    h = 2 * oh + di - 1
                    if h < 0 or h >= hi:
                        continue
                    for ow in range(wo):
                        wc = 2 * ow + dj - 1
                        if wc < 0 or wc >= wi:
                            continue
                        g[k * rows + (b * ho + oh) * wo + ow,
                          (b * hi + h) * wi + wc] = 1.0
    return jnp.asarray(g, dtype=jnp.bfloat16)


def _bn_vec(v):
    return v.astype(jnp.float32).reshape(1, v.shape[0])


def _full_spec(shape):
    zeros = (0,) * len(shape)
    return pl.BlockSpec(shape, lambda i: zeros)


# ------------------------------- full forward --------------------------------

@jax.jit
def discriminator_forward(x_nchw, params):
    n = x_nchw.shape[0]
    x = jnp.transpose(x_nchw, (0, 2, 3, 1))                  # NCHW -> NHWC

    p2 = _conv2_tap_patches(x)                               # (9*N*64, 9) bf16
    w1m = _conv1_weight(params["conv1_w"])                   # (9, 16)  bf16
    w2k = _tap_weights(params["conv2_w"])                    # (9, 16, 32)
    w3k = _tap_weights(params["conv3_w"])                    # (9, 32, 64)
    w4k = _tap_weights(params["conv4_w"])                    # (9, 64, 128)

    sel3 = _stacked_gather(n, 8, 8)                          # (9*N*16, N*64)
    sel4 = _stacked_gather(n, 4, 4)                          # (9*N*4,  N*16)

    bn2g, bn2b = _bn_vec(params["bn2_g"]), _bn_vec(params["bn2_b"])
    bn3g, bn3b = _bn_vec(params["bn3_g"]), _bn_vec(params["bn3_b"])
    bn4g, bn4b = _bn_vec(params["bn4_g"]), _bn_vec(params["bn4_b"])

    # fc weights permuted (zero runtime cost) to NHWC-flatten order and tiled
    # over the batch; esel sums the 4 spatial rows belonging to each sample.
    cout4 = params["conv4_w"].shape[0]                       # 128
    sp4 = 4                                                  # 2*2
    fct = jnp.tile(jnp.transpose(params["fc_w"][:, 0].reshape(cout4, sp4)),
                   (n, 1)).astype(jnp.float32)               # (N*4, 128)
    esel = jnp.asarray(np.kron(np.eye(n), np.ones((1, sp4))), jnp.float32)
    fcb = params["fc_b"].reshape(1, 1).astype(jnp.float32)

    inputs = (p2, w1m,
              w2k, bn2g, bn2b,
              sel3, w3k, bn3g, bn3b,
              sel4, w4k, bn4g, bn4b,
              fct, esel, fcb)

    # Input DMA after the byte reductions is ~0.3 MiB; a pipelining grid would
    # cost more in per-step overhead than it hides, so grid=(1,) is intentional.
    return pl.pallas_call(
        _fused_disc_kernel,
        out_shape=jax.ShapeDtypeStruct((n, 1), jnp.float32),
        grid=(1,),
        in_specs=[_full_spec(a.shape) for a in inputs],
        out_specs=_full_spec((n, 1)),
        compiler_params=pltpu.CompilerParams(
            dimension_semantics=("arbitrary",)),
    )(*inputs)


# ----------------------------- pure-JAX reference ----------------------------

def _ref_forward(x_nchw, params):
    def conv(x, w):
        return lax.conv_general_dilated(
            x, w, window_strides=(2, 2), padding=[(1, 1), (1, 1)],
            dimension_numbers=("NCHW", "OIHW", "NCHW"))

    def lrelu(x):
        return jnp.where(x > 0, x, NEG_SLOPE * x)

    def bn(x, g, b):
        mean = jnp.mean(x, axis=(0, 2, 3), keepdims=True)
        var = jnp.mean((x - mean) ** 2, axis=(0, 2, 3), keepdims=True)
        xhat = (x - mean) / jnp.sqrt(var + BN_EPS)
        return xhat * g[None, :, None, None] + b[None, :, None, None]

    x = lrelu(conv(x_nchw, params["conv1_w"]))
    x = bn(lrelu(conv(x, params["conv2_w"])), params["bn2_g"], params["bn2_b"])
    x = bn(lrelu(conv(x, params["conv3_w"])), params["bn3_g"], params["bn3_b"])
    x = bn(lrelu(conv(x, params["conv4_w"])), params["bn4_g"], params["bn4_b"])
    x = x.reshape(x.shape[0], -1)
    y = x @ params["fc_w"] + params["fc_b"][None, :]
    return jax.nn.sigmoid(y)


# ----------------------------------- main ------------------------------------

def _init_params(key):
    ks = jax.random.split(key, 12)
    return {
        "conv1_w": 0.1 * jax.random.normal(ks[0], (16, 1, 3, 3), jnp.float32),
        "conv2_w": 0.1 * jax.random.normal(ks[1], (32, 16, 3, 3), jnp.float32),
        "conv3_w": 0.1 * jax.random.normal(ks[2], (64, 32, 3, 3), jnp.float32),
        "conv4_w": 0.1 * jax.random.normal(ks[3], (128, 64, 3, 3), jnp.float32),
        "bn2_g": 0.5 + jax.random.uniform(ks[4], (32,), jnp.float32),
        "bn2_b": 0.1 * jax.random.normal(ks[5], (32,), jnp.float32),
        "bn3_g": 0.5 + jax.random.uniform(ks[6], (64,), jnp.float32),
        "bn3_b": 0.1 * jax.random.normal(ks[7], (64,), jnp.float32),
        "bn4_g": 0.5 + jax.random.uniform(ks[8], (128,), jnp.float32),
        "bn4_b": 0.1 * jax.random.normal(ks[9], (128,), jnp.float32),
        "fc_w": 0.05 * jax.random.normal(ks[10], (128 * 2 * 2, 1), jnp.float32),
        "fc_b": 0.01 * jax.random.normal(ks[11], (1,), jnp.float32),
    }


if __name__ == "__main__":
    key = jax.random.PRNGKey(0)
    k_x, k_p = jax.random.split(key)
    # The module implies 32x32 single-channel inputs (downsampled_size = 32 // 2**4).
    x = jax.random.normal(k_x, (2, 1, 32, 32), jnp.float32)
    params = _init_params(k_p)

    out = jax.block_until_ready(discriminator_forward(x, params))
    ref = jax.block_until_ready(_ref_forward(x, params))

    assert out.shape == (2, 1), out.shape
    # Tolerance accounts for bf16 MXU operands (f32 accumulation) vs. the pure
    # f32 reference; typical observed error is well below this bound.
    assert jnp.allclose(out, ref, atol=2e-2, rtol=2e-2), (
        f"mismatch: max abs diff = {jnp.max(jnp.abs(out - ref))}")
    print("KERNEL_OK")
</pallas_src>

<mosaic_0001>
module attributes {stable_mosaic.version = 11 : i64} {
  func.func @_fused_disc_kernel(%arg0: i32, %arg1: memref<1152x9xbf16, #tpu.memory_space<vmem>>, %arg2: memref<9x16xbf16, #tpu.memory_space<vmem>>, %arg3: memref<9x16x32xbf16, #tpu.memory_space<vmem>>, %arg4: memref<1x32xf32, #tpu.memory_space<vmem>>, %arg5: memref<1x32xf32, #tpu.memory_space<vmem>>, %arg6: memref<288x128xbf16, #tpu.memory_space<vmem>>, %arg7: memref<9x32x64xbf16, #tpu.memory_space<vmem>>, %arg8: memref<1x64xf32, #tpu.memory_space<vmem>>, %arg9: memref<1x64xf32, #tpu.memory_space<vmem>>, %arg10: memref<72x32xbf16, #tpu.memory_space<vmem>>, %arg11: memref<9x64x128xbf16, #tpu.memory_space<vmem>>, %arg12: memref<1x128xf32, #tpu.memory_space<vmem>>, %arg13: memref<1x128xf32, #tpu.memory_space<vmem>>, %arg14: memref<8x128xf32, #tpu.memory_space<vmem>>, %arg15: memref<2x8xf32, #tpu.memory_space<vmem>>, %arg16: memref<1x1xf32, #tpu.memory_space<vmem>>, %arg17: memref<2x1xf32, #tpu.memory_space<vmem>>) attributes {dimension_semantics = [#tpu.dimension_semantics<arbitrary>], iteration_bounds = array<i64: 1>, scalar_prefetch = 0 : i64, scratch_operands = 0 : i64, tpu.core_type = #tpu.core_type<tc>, window_params = [{pipeline_mode = #tpu.pipeline_mode<synchronous>, transform_indices = @transform_0, window_bounds = array<i64: 1152, 9>}, {pipeline_mode = #tpu.pipeline_mode<synchronous>, transform_indices = @transform_1, window_bounds = array<i64: 9, 16>}, {pipeline_mode = #tpu.pipeline_mode<synchronous>, transform_indices = @transform_2, window_bounds = array<i64: 9, 16, 32>}, {pipeline_mode = #tpu.pipeline_mode<synchronous>, transform_indices = @transform_3, window_bounds = array<i64: 1, 32>}, {pipeline_mode = #tpu.pipeline_mode<synchronous>, transform_indices = @transform_4, window_bounds = array<i64: 1, 32>}, {pipeline_mode = #tpu.pipeline_mode<synchronous>, transform_indices = @transform_5, window_bounds = array<i64: 288, 128>}, {pipeline_mode = #tpu.pipeline_mode<synchronous>, transform_indices = @transform_6, window_bounds = array<i64: 9, 32, 64>}, {pipeline_mode = #tpu.pipeline_mode<synchronous>, transform_indices = @transform_7, window_bounds = array<i64: 1, 64>}, {pipeline_mode = #tpu.pipeline_mode<synchronous>, transform_indices = @transform_8, window_bounds = array<i64: 1, 64>}, {pipeline_mode = #tpu.pipeline_mode<synchronous>, transform_indices = @transform_9, window_bounds = array<i64: 72, 32>}, {pipeline_mode = #tpu.pipeline_mode<synchronous>, transform_indices = @transform_10, window_bounds = array<i64: 9, 64, 128>}, {pipeline_mode = #tpu.pipeline_mode<synchronous>, transform_indices = @transform_11, window_bounds = array<i64: 1, 128>}, {pipeline_mode = #tpu.pipeline_mode<synchronous>, transform_indices = @transform_12, window_bounds = array<i64: 1, 128>}, {pipeline_mode = #tpu.pipeline_mode<synchronous>, transform_indices = @transform_13, window_bounds = array<i64: 8, 128>}, {pipeline_mode = #tpu.pipeline_mode<synchronous>, transform_indices = @transform_14, window_bounds = array<i64: 2, 8>}, {pipeline_mode = #tpu.pipeline_mode<synchronous>, transform_indices = @transform_15, window_bounds = array<i64: 1, 1>}, {pipeline_mode = #tpu.pipeline_mode<synchronous>, transform_indices = @transform_16, window_bounds = array<i64: 2, 1>}]} {
    %c0 = arith.constant 0 : index
    %c0_0 = arith.constant 0 : index
    %0 = vector.load %arg1[%c0, %c0_0] : memref<1152x9xbf16, #tpu.memory_space<vmem>>, vector<1152x9xbf16>
    %c0_1 = arith.constant 0 : index
    %c0_2 = arith.constant 0 : index
    %1 = vector.load %arg2[%c0_1, %c0_2] : memref<9x16xbf16, #tpu.memory_space<vmem>>, vector<9x16xbf16>
    %cst = arith.constant dense<0.000000e+00> : vector<1152x16xf32>
    %2 = tpu.matmul %0, %1, %cst {dimension_numbers = #tpu.dot_dimension_numbers<[1], [0], [0], [1], [0, 0, 1, 1], [], []>} : vector<1152x9xbf16>, vector<9x16xbf16>, vector<1152x16xf32> -> vector<1152x16xf32>
    %cst_3 = arith.constant 0.000000e+00 : f32
    %3 = vector.broadcast %cst_3 : f32 to vector<1152x16xf32>
    %4 = arith.cmpf ogt, %2, %3 : vector<1152x16xf32>
    %cst_4 = arith.constant 2.000000e-01 : f32
    %5 = vector.broadcast %cst_4 : f32 to vector<1152x16xf32>
    %6 = arith.mulf %5, %2 : vector<1152x16xf32>
    %7 = arith.select %4, %2, %6 : vector<1152x16xi1>, vector<1152x16xf32>
    %8 = arith.truncf %7 : vector<1152x16xf32> to vector<1152x16xbf16>
    %9 = vector.extract_strided_slice %8 {offsets = [0, 0], sizes = [128, 16], strides = [1, 1]} : vector<1152x16xbf16> to vector<128x16xbf16>
    %c0_5 = arith.constant 0 : index
    %c0_6 = arith.constant 0 : index
    %c0_7 = arith.constant 0 : index
    %10 = vector.load %arg3[%c0_5, %c0_6, %c0_7] : memref<9x16x32xbf16, #tpu.memory_space<vmem>>, vector<1x16x32xbf16>
    %11 = vector.shape_cast %10 : vector<1x16x32xbf16> to vector<16x32xbf16>
    %cst_8 = arith.constant dense<0.000000e+00> : vector<128x32xf32>
    %12 = tpu.matmul %9, %11, %cst_8 {dimension_numbers = #tpu.dot_dimension_numbers<[1], [0], [0], [1], [0, 0, 1, 1], [], []>} : vector<128x16xbf16>, vector<16x32xbf16>, vector<128x32xf32> -> vector<128x32xf32>
    %13 = vector.extract_strided_slice %8 {offsets = [128, 0], sizes = [128, 16], strides = [1, 1]} : vector<1152x16xbf16> to vector<128x16xbf16>
    %c1 = arith.constant 1 : index
    %c0_9 = arith.constant 0 : index
    %c0_10 = arith.constant 0 : index
    %14 = vector.load %arg3[%c1, %c0_9, %c0_10] : memref<9x16x32xbf16, #tpu.memory_space<vmem>>, vector<1x16x32xbf16>
    %15 = vector.shape_cast %14 : vector<1x16x32xbf16> to vector<16x32xbf16>
    %cst_11 = arith.constant dense<0.000000e+00> : vector<128x32xf32>
    %16 = tpu.matmul %13, %15, %cst_11 {dimension_numbers = #tpu.dot_dimension_numbers<[1], [0], [0], [1], [0, 0, 1, 1], [], []>} : vector<128x16xbf16>, vector<16x32xbf16>, vector<128x32xf32> -> vector<128x32xf32>
    %17 = arith.addf %12, %16 : vector<128x32xf32>
    %18 = vector.extract_strided_slice %8 {offsets = [256, 0], sizes = [128, 16], strides = [1, 1]} : vector<1152x16xbf16> to vector<128x16xbf16>
    %c2 = arith.constant 2 : index
    %c0_12 = arith.constant 0 : index
    %c0_13 = arith.constant 0 : index
    %19 = vector.load %arg3[%c2, %c0_12, %c0_13] : memref<9x16x32xbf16, #tpu.memory_space<vmem>>, vector<1x16x32xbf16>
    %20 = vector.shape_cast %19 : vector<1x16x32xbf16> to vector<16x32xbf16>
    %cst_14 = arith.constant dense<0.000000e+00> : vector<128x32xf32>
    %21 = tpu.matmul %18, %20, %cst_14 {dimension_numbers = #tpu.dot_dimension_numbers<[1], [0], [0], [1], [0, 0, 1, 1], [], []>} : vector<128x16xbf16>, vector<16x32xbf16>, vector<128x32xf32> -> vector<128x32xf32>
    %22 = arith.addf %17, %21 : vector<128x32xf32>
    %23 = vector.extract_strided_slice %8 {offsets = [384, 0], sizes = [128, 16], strides = [1, 1]} : vector<1152x16xbf16> to vector<128x16xbf16>
    %c3 = arith.constant 3 : index
    %c0_15 = arith.constant 0 : index
    %c0_16 = arith.constant 0 : index
    %24 = vector.load %arg3[%c3, %c0_15, %c0_16] : memref<9x16x32xbf16, #tpu.memory_space<vmem>>, vector<1x16x32xbf16>
    %25 = vector.shape_cast %24 : vector<1x16x32xbf16> to vector<16x32xbf16>
    %cst_17 = arith.constant dense<0.000000e+00> : vector<128x32xf32>
    %26 = tpu.matmul %23, %25, %cst_17 {dimension_numbers = #tpu.dot_dimension_numbers<[1], [0], [0], [1], [0, 0, 1, 1], [], []>} : vector<128x16xbf16>, vector<16x32xbf16>, vector<128x32xf32> -> vector<128x32xf32>
    %27 = arith.addf %22, %26 : vector<128x32xf32>
    %28 = vector.extract_strided_slice %8 {offsets = [512, 0], sizes = [128, 16], strides = [1, 1]} : vector<1152x16xbf16> to vector<128x16xbf16>
    %c4 = arith.constant 4 : index
    %c0_18 = arith.constant 0 : index
    %c0_19 = arith.constant 0 : index
    %29 = vector.load %arg3[%c4, %c0_18, %c0_19] : memref<9x16x32xbf16, #tpu.memory_space<vmem>>, vector<1x16x32xbf16>
    %30 = vector.shape_cast %29 : vector<1x16x32xbf16> to vector<16x32xbf16>
    %cst_20 = arith.constant dense<0.000000e+00> : vector<128x32xf32>
    %31 = tpu.matmul %28, %30, %cst_20 {dimension_numbers = #tpu.dot_dimension_numbers<[1], [0], [0], [1], [0, 0, 1, 1], [], []>} : vector<128x16xbf16>, vector<16x32xbf16>, vector<128x32xf32> -> vector<128x32xf32>
    %32 = arith.addf %27, %31 : vector<128x32xf32>
    %33 = vector.extract_strided_slice %8 {offsets = [640, 0], sizes = [128, 16], strides = [1, 1]} : vector<1152x16xbf16> to vector<128x16xbf16>
    %c5 = arith.constant 5 : index
    %c0_21 = arith.constant 0 : index
    %c0_22 = arith.constant 0 : index
    %34 = vector.load %arg3[%c5, %c0_21, %c0_22] : memref<9x16x32xbf16, #tpu.memory_space<vmem>>, vector<1x16x32xbf16>
    %35 = vector.shape_cast %34 : vector<1x16x32xbf16> to vector<16x32xbf16>
    %cst_23 = arith.constant dense<0.000000e+00> : vector<128x32xf32>
    %36 = tpu.matmul %33, %35, %cst_23 {dimension_numbers = #tpu.dot_dimension_numbers<[1], [0], [0], [1], [0, 0, 1, 1], [], []>} : vector<128x16xbf16>, vector<16x32xbf16>, vector<128x32xf32> -> vector<128x32xf32>
    %37 = arith.addf %32, %36 : vector<128x32xf32>
    %38 = vector.extract_strided_slice %8 {offsets = [768, 0], sizes = [128, 16], strides = [1, 1]} : vector<1152x16xbf16> to vector<128x16xbf16>
    %c6 = arith.constant 6 : index
    %c0_24 = arith.constant 0 : index
    %c0_25 = arith.constant 0 : index
    %39 = vector.load %arg3[%c6, %c0_24, %c0_25] : memref<9x16x32xbf16, #tpu.memory_space<vmem>>, vector<1x16x32xbf16>
    %40 = vector.shape_cast %39 : vector<1x16x32xbf16> to vector<16x32xbf16>
    %cst_26 = arith.constant dense<0.000000e+00> : vector<128x32xf32>
    %41 = tpu.matmul %38, %40, %cst_26 {dimension_numbers = #tpu.dot_dimension_numbers<[1], [0], [0], [1], [0, 0, 1, 1], [], []>} : vector<128x16xbf16>, vector<16x32xbf16>, vector<128x32xf32> -> vector<128x32xf32>
    %42 = arith.addf %37, %41 : vector<128x32xf32>
    %43 = vector.extract_strided_slice %8 {offsets = [896, 0], sizes = [128, 16], strides = [1, 1]} : vector<1152x16xbf16> to vector<128x16xbf16>
    %c7 = arith.constant 7 : index
    %c0_27 = arith.constant 0 : index
    %c0_28 = arith.constant 0 : index
    %44 = vector.load %arg3[%c7, %c0_27, %c0_28] : memref<9x16x32xbf16, #tpu.memory_space<vmem>>, vector<1x16x32xbf16>
    %45 = vector.shape_cast %44 : vector<1x16x32xbf16> to vector<16x32xbf16>
    %cst_29 = arith.constant dense<0.000000e+00> : vector<128x32xf32>
    %46 = tpu.matmul %43, %45, %cst_29 {dimension_numbers = #tpu.dot_dimension_numbers<[1], [0], [0], [1], [0, 0, 1, 1], [], []>} : vector<128x16xbf16>, vector<16x32xbf16>, vector<128x32xf32> -> vector<128x32xf32>
    %47 = arith.addf %42, %46 : vector<128x32xf32>
    %48 = vector.extract_strided_slice %8 {offsets = [1024, 0], sizes = [128, 16], strides = [1, 1]} : vector<1152x16xbf16> to vector<128x16xbf16>
    %c8 = arith.constant 8 : index
    %c0_30 = arith.constant 0 : index
    %c0_31 = arith.constant 0 : index
    %49 = vector.load %arg3[%c8, %c0_30, %c0_31] : memref<9x16x32xbf16, #tpu.memory_space<vmem>>, vector<1x16x32xbf16>
    %50 = vector.shape_cast %49 : vector<1x16x32xbf16> to vector<16x32xbf16>
    %cst_32 = arith.constant dense<0.000000e+00> : vector<128x32xf32>
    %51 = tpu.matmul %48, %50, %cst_32 {dimension_numbers = #tpu.dot_dimension_numbers<[1], [0], [0], [1], [0, 0, 1, 1], [], []>} : vector<128x16xbf16>, vector<16x32xbf16>, vector<128x32xf32> -> vector<128x32xf32>
    %52 = arith.addf %47, %51 : vector<128x32xf32>
    %cst_33 = arith.constant 0.000000e+00 : f32
    %53 = vector.broadcast %cst_33 : f32 to vector<128x32xf32>
    %54 = arith.cmpf ogt, %52, %53 : vector<128x32xf32>
    %cst_34 = arith.constant 2.000000e-01 : f32
    %55 = vector.broadcast %cst_34 : f32 to vector<128x32xf32>
    %56 = arith.mulf %55, %52 : vector<128x32xf32>
    %57 = arith.select %54, %52, %56 : vector<128x32xi1>, vector<128x32xf32>
    %c0_35 = arith.constant 0 : index
    %c0_36 = arith.constant 0 : index
    %58 = vector.load %arg4[%c0_35, %c0_36] : memref<1x32xf32, #tpu.memory_space<vmem>>, vector<1x32xf32>
    %c0_37 = arith.constant 0 : index
    %c0_38 = arith.constant 0 : index
    %59 = vector.load %arg5[%c0_37, %c0_38] : memref<1x32xf32, #tpu.memory_space<vmem>>, vector<1x32xf32>
    %cst_39 = arith.constant dense<0.000000e+00> : vector<32xf32>
    %60 = vector.multi_reduction <add>, %57, %cst_39 [0] : vector<128x32xf32> to vector<32xf32>
    %61 = vector.shape_cast %60 : vector<32xf32> to vector<1x32xf32>
    %cst_40 = arith.constant 7.812500e-03 : f32
    %62 = vector.broadcast %cst_40 : f32 to vector<1x32xf32>
    %63 = arith.mulf %61, %62 : vector<1x32xf32>
    %64 = arith.mulf %57, %57 : vector<128x32xf32>
    %cst_41 = arith.constant dense<0.000000e+00> : vector<32xf32>
    %65 = vector.multi_reduction <add>, %64, %cst_41 [0] : vector<128x32xf32> to vector<32xf32>
    %66 = vector.shape_cast %65 : vector<32xf32> to vector<1x32xf32>
    %cst_42 = arith.constant 7.812500e-03 : f32
    %67 = vector.broadcast %cst_42 : f32 to vector<1x32xf32>
    %68 = arith.mulf %66, %67 : vector<1x32xf32>
    %69 = arith.mulf %63, %63 : vector<1x32xf32>
    %70 = arith.subf %68, %69 : vector<1x32xf32>
    %cst_43 = arith.constant 9.99999974E-6 : f32
    %71 = vector.broadcast %cst_43 : f32 to vector<1x32xf32>
    %72 = arith.addf %70, %71 : vector<1x32xf32>
    %73 = math.rsqrt %72 : vector<1x32xf32>
    %74 = arith.mulf %58, %73 : vector<1x32xf32>
    %75 = arith.mulf %63, %74 : vector<1x32xf32>
    %76 = arith.subf %59, %75 : vector<1x32xf32>
    %77 = vector.broadcast %74 : vector<1x32xf32> to vector<128x32xf32>
    %78 = arith.mulf %57, %77 : vector<128x32xf32>
    %79 = vector.broadcast %76 : vector<1x32xf32> to vector<128x32xf32>
    %80 = arith.addf %78, %79 : vector<128x32xf32>
    %81 = arith.truncf %80 : vector<128x32xf32> to vector<128x32xbf16>
    %c0_44 = arith.constant 0 : index
    %c0_45 = arith.constant 0 : index
    %82 = vector.load %arg6[%c0_44, %c0_45] : memref<288x128xbf16, #tpu.memory_space<vmem>>, vector<288x128xbf16>
    %cst_46 = arith.constant dense<0.000000e+00> : vector<288x32xf32>
    %83 = tpu.matmul %82, %81, %cst_46 {dimension_numbers = #tpu.dot_dimension_numbers<[1], [0], [0], [1], [0, 0, 1, 1], [], []>} : vector<288x128xbf16>, vector<128x32xbf16>, vector<288x32xf32> -> vector<288x32xf32>
    %84 = arith.truncf %83 : vector<288x32xf32> to vector<288x32xbf16>
    %85 = vector.extract_strided_slice %84 {offsets = [0, 0], sizes = [32, 32], strides = [1, 1]} : vector<288x32xbf16> to vector<32x32xbf16>
    %c0_47 = arith.constant 0 : index
    %c0_48 = arith.constant 0 : index
    %c0_49 = arith.constant 0 : index
    %86 = vector.load %arg7[%c0_47, %c0_48, %c0_49] : memref<9x32x64xbf16, #tpu.memory_space<vmem>>, vector<1x32x64xbf16>
    %87 = vector.shape_cast %86 : vector<1x32x64xbf16> to vector<32x64xbf16>
    %cst_50 = arith.constant dense<0.000000e+00> : vector<32x64xf32>
    %88 = tpu.matmul %85, %87, %cst_50 {dimension_numbers = #tpu.dot_dimension_numbers<[1], [0], [0], [1], [0, 0, 1, 1], [], []>} : vector<32x32xbf16>, vector<32x64xbf16>, vector<32x64xf32> -> vector<32x64xf32>
    %89 = vector.extract_strided_slice %84 {offsets = [32, 0], sizes = [32, 32], strides = [1, 1]} : vector<288x32xbf16> to vector<32x32xbf16>
    %c1_51 = arith.constant 1 : index
    %c0_52 = arith.constant 0 : index
    %c0_53 = arith.constant 0 : index
    %90 = vector.load %arg7[%c1_51, %c0_52, %c0_53] : memref<9x32x64xbf16, #tpu.memory_space<vmem>>, vector<1x32x64xbf16>
    %91 = vector.shape_cast %90 : vector<1x32x64xbf16> to vector<32x64xbf16>
    %cst_54 = arith.constant dense<0.000000e+00> : vector<32x64xf32>
    %92 = tpu.matmul %89, %91, %cst_54 {dimension_numbers = #tpu.dot_dimension_numbers<[1], [0], [0], [1], [0, 0, 1, 1], [], []>} : vector<32x32xbf16>, vector<32x64xbf16>, vector<32x64xf32> -> vector<32x64xf32>
    %93 = arith.addf %88, %92 : vector<32x64xf32>
    %94 = vector.extract_strided_slice %84 {offsets = [64, 0], sizes = [32, 32], strides = [1, 1]} : vector<288x32xbf16> to vector<32x32xbf16>
    %c2_55 = arith.constant 2 : index
    %c0_56 = arith.constant 0 : index
    %c0_57 = arith.constant 0 : index
    %95 = vector.load %arg7[%c2_55, %c0_56, %c0_57] : memref<9x32x64xbf16, #tpu.memory_space<vmem>>, vector<1x32x64xbf16>
    %96 = vector.shape_cast %95 : vector<1x32x64xbf16> to vector<32x64xbf16>
    %cst_58 = arith.constant dense<0.000000e+00> : vector<32x64xf32>
    %97 = tpu.matmul %94, %96, %cst_58 {dimension_numbers = #tpu.dot_dimension_numbers<[1], [0], [0], [1], [0, 0, 1, 1], [], []>} : vector<32x32xbf16>, vector<32x64xbf16>, vector<32x64xf32> -> vector<32x64xf32>
    %98 = arith.addf %93, %97 : vector<32x64xf32>
    %99 = vector.extract_strided_slice %84 {offsets = [96, 0], sizes = [32, 32], strides = [1, 1]} : vector<288x32xbf16> to vector<32x32xbf16>
    %c3_59 = arith.constant 3 : index
    %c0_60 = arith.constant 0 : index
    %c0_61 = arith.constant 0 : index
    %100 = vector.load %arg7[%c3_59, %c0_60, %c0_61] : memref<9x32x64xbf16, #tpu.memory_space<vmem>>, vector<1x32x64xbf16>
    %101 = vector.shape_cast %100 : vector<1x32x64xbf16> to vector<32x64xbf16>
    %cst_62 = arith.constant dense<0.000000e+00> : vector<32x64xf32>
    %102 = tpu.matmul %99, %101, %cst_62 {dimension_numbers = #tpu.dot_dimension_numbers<[1], [0], [0], [1], [0, 0, 1, 1], [], []>} : vector<32x32xbf16>, vector<32x64xbf16>, vector<32x64xf32> -> vector<32x64xf32>
    %103 = arith.addf %98, %102 : vector<32x64xf32>
    %104 = vector.extract_strided_slice %84 {offsets = [128, 0], sizes = [32, 32], strides = [1, 1]} : vector<288x32xbf16> to vector<32x32xbf16>
    %c4_63 = arith.constant 4 : index
    %c0_64 = arith.constant 0 : index
    %c0_65 = arith.constant 0 : index
    %105 = vector.load %arg7[%c4_63, %c0_64, %c0_65] : memref<9x32x64xbf16, #tpu.memory_space<vmem>>, vector<1x32x64xbf16>
    %106 = vector.shape_cast %105 : vector<1x32x64xbf16> to vector<32x64xbf16>
    %cst_66 = arith.constant dense<0.000000e+00> : vector<32x64xf32>
    %107 = tpu.matmul %104, %106, %cst_66 {dimension_numbers = #tpu.dot_dimension_numbers<[1], [0], [0], [1], [0, 0, 1, 1], [], []>} : vector<32x32xbf16>, vector<32x64xbf16>, vector<32x64xf32> -> vector<32x64xf32>
    %108 = arith.addf %103, %107 : vector<32x64xf32>
    %109 = vector.extract_strided_slice %84 {offsets = [160, 0], sizes = [32, 32], strides = [1, 1]} : vector<288x32xbf16> to vector<32x32xbf16>
    %c5_67 = arith.constant 5 : index
    %c0_68 = arith.constant 0 : index
    %c0_69 = arith.constant 0 : index
    %110 = vector.load %arg7[%c5_67, %c0_68, %c0_69] : memref<9x32x64xbf16, #tpu.memory_space<vmem>>, vector<1x32x64xbf16>
    %111 = vector.shape_cast %110 : vector<1x32x64xbf16> to vector<32x64xbf16>
    %cst_70 = arith.constant dense<0.000000e+00> : vector<32x64xf32>
    %112 = tpu.matmul %109, %111, %cst_70 {dimension_numbers = #tpu.dot_dimension_numbers<[1], [0], [0], [1], [0, 0, 1, 1], [], []>} : vector<32x32xbf16>, vector<32x64xbf16>, vector<32x64xf32> -> vector<32x64xf32>
    %113 = arith.addf %108, %112 : vector<32x64xf32>
    %114 = vector.extract_strided_slice %84 {offsets = [192, 0], sizes = [32, 32], strides = [1, 1]} : vector<288x32xbf16> to vector<32x32xbf16>
    %c6_71 = arith.constant 6 : index
    %c0_72 = arith.constant 0 : index
    %c0_73 = arith.constant 0 : index
    %115 = vector.load %arg7[%c6_71, %c0_72, %c0_73] : memref<9x32x64xbf16, #tpu.memory_space<vmem>>, vector<1x32x64xbf16>
    %116 = vector.shape_cast %115 : vector<1x32x64xbf16> to vector<32x64xbf16>
    %cst_74 = arith.constant dense<0.000000e+00> : vector<32x64xf32>
    %117 = tpu.matmul %114, %116, %cst_74 {dimension_numbers = #tpu.dot_dimension_numbers<[1], [0], [0], [1], [0, 0, 1, 1], [], []>} : vector<32x32xbf16>, vector<32x64xbf16>, vector<32x64xf32> -> vector<32x64xf32>
    %118 = arith.addf %113, %117 : vector<32x64xf32>
    %119 = vector.extract_strided_slice %84 {offsets = [224, 0], sizes = [32, 32], strides = [1, 1]} : vector<288x32xbf16> to vector<32x32xbf16>
    %c7_75 = arith.constant 7 : index
    %c0_76 = arith.constant 0 : index
    %c0_77 = arith.constant 0 : index
    %120 = vector.load %arg7[%c7_75, %c0_76, %c0_77] : memref<9x32x64xbf16, #tpu.memory_space<vmem>>, vector<1x32x64xbf16>
    %121 = vector.shape_cast %120 : vector<1x32x64xbf16> to vector<32x64xbf16>
    %cst_78 = arith.constant dense<0.000000e+00> : vector<32x64xf32>
    %122 = tpu.matmul %119, %121, %cst_78 {dimension_numbers = #tpu.dot_dimension_numbers<[1], [0], [0], [1], [0, 0, 1, 1], [], []>} : vector<32x32xbf16>, vector<32x64xbf16>, vector<32x64xf32> -> vector<32x64xf32>
    %123 = arith.addf %118, %122 : vector<32x64xf32>
    %124 = vector.extract_strided_slice %84 {offsets = [256, 0], sizes = [32, 32], strides = [1, 1]} : vector<288x32xbf16> to vector<32x32xbf16>
    %c8_79 = arith.constant 8 : index
    %c0_80 = arith.constant 0 : index
    %c0_81 = arith.constant 0 : index
    %125 = vector.load %arg7[%c8_79, %c0_80, %c0_81] : memref<9x32x64xbf16, #tpu.memory_space<vmem>>, vector<1x32x64xbf16>
    %126 = vector.shape_cast %125 : vector<1x32x64xbf16> to vector<32x64xbf16>
    %cst_82 = arith.constant dense<0.000000e+00> : vector<32x64xf32>
    %127 = tpu.matmul %124, %126, %cst_82 {dimension_numbers = #tpu.dot_dimension_numbers<[1], [0], [0], [1], [0, 0, 1, 1], [], []>} : vector<32x32xbf16>, vector<32x64xbf16>, vector<32x64xf32> -> vector<32x64xf32>
    %128 = arith.addf %123, %127 : vector<32x64xf32>
    %cst_83 = arith.constant 0.000000e+00 : f32
    %129 = vector.broadcast %cst_83 : f32 to vector<32x64xf32>
    %130 = arith.cmpf ogt, %128, %129 : vector<32x64xf32>
    %cst_84 = arith.constant 2.000000e-01 : f32
    %131 = vector.broadcast %cst_84 : f32 to vector<32x64xf32>
    %132 = arith.mulf %131, %128 : vector<32x64xf32>
    %133 = arith.select %130, %128, %132 : vector<32x64xi1>, vector<32x64xf32>
    %c0_85 = arith.constant 0 : index
    %c0_86 = arith.constant 0 : index
    %134 = vector.load %arg8[%c0_85, %c0_86] : memref<1x64xf32, #tpu.memory_space<vmem>>, vector<1x64xf32>
    %c0_87 = arith.constant 0 : index
    %c0_88 = arith.constant 0 : index
    %135 = vector.load %arg9[%c0_87, %c0_88] : memref<1x64xf32, #tpu.memory_space<vmem>>, vector<1x64xf32>
    %cst_89 = arith.constant dense<0.000000e+00> : vector<64xf32>
    %136 = vector.multi_reduction <add>, %133, %cst_89 [0] : vector<32x64xf32> to vector<64xf32>
    %137 = vector.shape_cast %136 : vector<64xf32> to vector<1x64xf32>
    %cst_90 = arith.constant 3.125000e-02 : f32
    %138 = vector.broadcast %cst_90 : f32 to vector<1x64xf32>
    %139 = arith.mulf %137, %138 : vector<1x64xf32>
    %140 = arith.mulf %133, %133 : vector<32x64xf32>
    %cst_91 = arith.constant dense<0.000000e+00> : vector<64xf32>
    %141 = vector.multi_reduction <add>, %140, %cst_91 [0] : vector<32x64xf32> to vector<64xf32>
    %142 = vector.shape_cast %141 : vector<64xf32> to vector<1x64xf32>
    %cst_92 = arith.constant 3.125000e-02 : f32
    %143 = vector.broadcast %cst_92 : f32 to vector<1x64xf32>
    %144 = arith.mulf %142, %143 : vector<1x64xf32>
    %145 = arith.mulf %139, %139 : vector<1x64xf32>
    %146 = arith.subf %144, %145 : vector<1x64xf32>
    %cst_93 = arith.constant 9.99999974E-6 : f32
    %147 = vector.broadcast %cst_93 : f32 to vector<1x64xf32>
    %148 = arith.addf %146, %147 : vector<1x64xf32>
    %149 = math.rsqrt %148 : vector<1x64xf32>
    %150 = arith.mulf %134, %149 : vector<1x64xf32>
    %151 = arith.mulf %139, %150 : vector<1x64xf32>
    %152 = arith.subf %135, %151 : vector<1x64xf32>
    %153 = vector.broadcast %150 : vector<1x64xf32> to vector<32x64xf32>
    %154 = arith.mulf %133, %153 : vector<32x64xf32>
    %155 = vector.broadcast %152 : vector<1x64xf32> to vector<32x64xf32>
    %156 = arith.addf %154, %155 : vector<32x64xf32>
    %157 = arith.truncf %156 : vector<32x64xf32> to vector<32x64xbf16>
    %c0_94 = arith.constant 0 : index
    %c0_95 = arith.constant 0 : index
    %158 = vector.load %arg10[%c0_94, %c0_95] : memref<72x32xbf16, #tpu.memory_space<vmem>>, vector<72x32xbf16>
    %cst_96 = arith.constant dense<0.000000e+00> : vector<72x64xf32>
    %159 = tpu.matmul %158, %157, %cst_96 {dimension_numbers = #tpu.dot_dimension_numbers<[1], [0], [0], [1], [0, 0, 1, 1], [], []>} : vector<72x32xbf16>, vector<32x64xbf16>, vector<72x64xf32> -> vector<72x64xf32>
    %160 = arith.truncf %159 : vector<72x64xf32> to vector<72x64xbf16>
    %161 = vector.extract_strided_slice %160 {offsets = [0, 0], sizes = [8, 64], strides = [1, 1]} : vector<72x64xbf16> to vector<8x64xbf16>
    %c0_97 = arith.constant 0 : index
    %c0_98 = arith.constant 0 : index
    %c0_99 = arith.constant 0 : index
    %162 = vector.load %arg11[%c0_97, %c0_98, %c0_99] : memref<9x64x128xbf16, #tpu.memory_space<vmem>>, vector<1x64x128xbf16>
    %163 = vector.shape_cast %162 : vector<1x64x128xbf16> to vector<64x128xbf16>
    %cst_100 = arith.constant dense<0.000000e+00> : vector<8x128xf32>
    %164 = tpu.matmul %161, %163, %cst_100 {dimension_numbers = #tpu.dot_dimension_numbers<[1], [0], [0], [1], [0, 0, 1, 1], [], []>} : vector<8x64xbf16>, vector<64x128xbf16>, vector<8x128xf32> -> vector<8x128xf32>
    %165 = vector.extract_strided_slice %160 {offsets = [8, 0], sizes = [8, 64], strides = [1, 1]} : vector<72x64xbf16> to vector<8x64xbf16>
    %c1_101 = arith.constant 1 : index
    %c0_102 = arith.constant 0 : index
    %c0_103 = arith.constant 0 : index
    %166 = vector.load %arg11[%c1_101, %c0_102, %c0_103] : memref<9x64x128xbf16, #tpu.memory_space<vmem>>, vector<1x64x128xbf16>
    %167 = vector.shape_cast %166 : vector<1x64x128xbf16> to vector<64x128xbf16>
    %cst_104 = arith.constant dense<0.000000e+00> : vector<8x128xf32>
    %168 = tpu.matmul %165, %167, %cst_104 {dimension_numbers = #tpu.dot_dimension_numbers<[1], [0], [0], [1], [0, 0, 1, 1], [], []>} : vector<8x64xbf16>, vector<64x128xbf16>, vector<8x128xf32> -> vector<8x128xf32>
    %169 = arith.addf %164, %168 : vector<8x128xf32>
    %170 = vector.extract_strided_slice %160 {offsets = [16, 0], sizes = [8, 64], strides = [1, 1]} : vector<72x64xbf16> to vector<8x64xbf16>
    %c2_105 = arith.constant 2 : index
    %c0_106 = arith.constant 0 : index
    %c0_107 = arith.constant 0 : index
    %171 = vector.load %arg11[%c2_105, %c0_106, %c0_107] : memref<9x64x128xbf16, #tpu.memory_space<vmem>>, vector<1x64x128xbf16>
    %172 = vector.shape_cast %171 : vector<1x64x128xbf16> to vector<64x128xbf16>
    %cst_108 = arith.constant dense<0.000000e+00> : vector<8x128xf32>
    %173 = tpu.matmul %170, %172, %cst_108 {dimension_numbers = #tpu.dot_dimension_numbers<[1], [0], [0], [1], [0, 0, 1, 1], [], []>} : vector<8x64xbf16>, vector<64x128xbf16>, vector<8x128xf32> -> vector<8x128xf32>
    %174 = arith.addf %169, %173 : vector<8x128xf32>
    %175 = vector.extract_strided_slice %160 {offsets = [24, 0], sizes = [8, 64], strides = [1, 1]} : vector<72x64xbf16> to vector<8x64xbf16>
    %c3_109 = arith.constant 3 : index
    %c0_110 = arith.constant 0 : index
    %c0_111 = arith.constant 0 : index
    %176 = vector.load %arg11[%c3_109, %c0_110, %c0_111] : memref<9x64x128xbf16, #tpu.memory_space<vmem>>, vector<1x64x128xbf16>
    %177 = vector.shape_cast %176 : vector<1x64x128xbf16> to vector<64x128xbf16>
    %cst_112 = arith.constant dense<0.000000e+00> : vector<8x128xf32>
    %178 = tpu.matmul %175, %177, %cst_112 {dimension_numbers = #tpu.dot_dimension_numbers<[1], [0], [0], [1], [0, 0, 1, 1], [], []>} : vector<8x64xbf16>, vector<64x128xbf16>, vector<8x128xf32> -> vector<8x128xf32>
    %179 = arith.addf %174, %178 : vector<8x128xf32>
    %180 = vector.extract_strided_slice %160 {offsets = [32, 0], sizes = [8, 64], strides = [1, 1]} : vector<72x64xbf16> to vector<8x64xbf16>
    %c4_113 = arith.constant 4 : index
    %c0_114 = arith.constant 0 : index
    %c0_115 = arith.constant 0 : index
    %181 = vector.load %arg11[%c4_113, %c0_114, %c0_115] : memref<9x64x128xbf16, #tpu.memory_space<vmem>>, vector<1x64x128xbf16>
    %182 = vector.shape_cast %181 : vector<1x64x128xbf16> to vector<64x128xbf16>
    %cst_116 = arith.constant dense<0.000000e+00> : vector<8x128xf32>
    %183 = tpu.matmul %180, %182, %cst_116 {dimension_numbers = #tpu.dot_dimension_numbers<[1], [0], [0], [1], [0, 0, 1, 1], [], []>} : vector<8x64xbf16>, vector<64x128xbf16>, vector<8x128xf32> -> vector<8x128xf32>
    %184 = arith.addf %179, %183 : vector<8x128xf32>
    %185 = vector.extract_strided_slice %160 {offsets = [40, 0], sizes = [8, 64], strides = [1, 1]} : vector<72x64xbf16> to vector<8x64xbf16>
    %c5_117 = arith.constant 5 : index
    %c0_118 = arith.constant 0 : index
    %c0_119 = arith.constant 0 : index
    %186 = vector.load %arg11[%c5_117, %c0_118, %c0_119] : memref<9x64x128xbf16, #tpu.memory_space<vmem>>, vector<1x64x128xbf16>
    %187 = vector.shape_cast %186 : vector<1x64x128xbf16> to vector<64x128xbf16>
    %cst_120 = arith.constant dense<0.000000e+00> : vector<8x128xf32>
    %188 = tpu.matmul %185, %187, %cst_120 {dimension_numbers = #tpu.dot_dimension_numbers<[1], [0], [0], [1], [0, 0, 1, 1], [], []>} : vector<8x64xbf16>, vector<64x128xbf16>, vector<8x128xf32> -> vector<8x128xf32>
    %189 = arith.addf %184, %188 : vector<8x128xf32>
    %190 = vector.extract_strided_slice %160 {offsets = [48, 0], sizes = [8, 64], strides = [1, 1]} : vector<72x64xbf16> to vector<8x64xbf16>
    %c6_121 = arith.constant 6 : index
    %c0_122 = arith.constant 0 : index
    %c0_123 = arith.constant 0 : index
    %191 = vector.load %arg11[%c6_121, %c0_122, %c0_123] : memref<9x64x128xbf16, #tpu.memory_space<vmem>>, vector<1x64x128xbf16>
    %192 = vector.shape_cast %191 : vector<1x64x128xbf16> to vector<64x128xbf16>
    %cst_124 = arith.constant dense<0.000000e+00> : vector<8x128xf32>
    %193 = tpu.matmul %190, %192, %cst_124 {dimension_numbers = #tpu.dot_dimension_numbers<[1], [0], [0], [1], [0, 0, 1, 1], [], []>} : vector<8x64xbf16>, vector<64x128xbf16>, vector<8x128xf32> -> vector<8x128xf32>
    %194 = arith.addf %189, %193 : vector<8x128xf32>
    %195 = vector.extract_strided_slice %160 {offsets = [56, 0], sizes = [8, 64], strides = [1, 1]} : vector<72x64xbf16> to vector<8x64xbf16>
    %c7_125 = arith.constant 7 : index
    %c0_126 = arith.constant 0 : index
    %c0_127 = arith.constant 0 : index
    %196 = vector.load %arg11[%c7_125, %c0_126, %c0_127] : memref<9x64x128xbf16, #tpu.memory_space<vmem>>, vector<1x64x128xbf16>
    %197 = vector.shape_cast %196 : vector<1x64x128xbf16> to vector<64x128xbf16>
    %cst_128 = arith.constant dense<0.000000e+00> : vector<8x128xf32>
    %198 = tpu.matmul %195, %197, %cst_128 {dimension_numbers = #tpu.dot_dimension_numbers<[1], [0], [0], [1], [0, 0, 1, 1], [], []>} : vector<8x64xbf16>, vector<64x128xbf16>, vector<8x128xf32> -> vector<8x128xf32>
    %199 = arith.addf %194, %198 : vector<8x128xf32>
    %200 = vector.extract_strided_slice %160 {offsets = [64, 0], sizes = [8, 64], strides = [1, 1]} : vector<72x64xbf16> to vector<8x64xbf16>
    %c8_129 = arith.constant 8 : index
    %c0_130 = arith.constant 0 : index
    %c0_131 = arith.constant 0 : index
    %201 = vector.load %arg11[%c8_129, %c0_130, %c0_131] : memref<9x64x128xbf16, #tpu.memory_space<vmem>>, vector<1x64x128xbf16>
    %202 = vector.shape_cast %201 : vector<1x64x128xbf16> to vector<64x128xbf16>
    %cst_132 = arith.constant dense<0.000000e+00> : vector<8x128xf32>
    %203 = tpu.matmul %200, %202, %cst_132 {dimension_numbers = #tpu.dot_dimension_numbers<[1], [0], [0], [1], [0, 0, 1, 1], [], []>} : vector<8x64xbf16>, vector<64x128xbf16>, vector<8x128xf32> -> vector<8x128xf32>
    %204 = arith.addf %199, %203 : vector<8x128xf32>
    %cst_133 = arith.constant 0.000000e+00 : f32
    %205 = vector.broadcast %cst_133 : f32 to vector<8x128xf32>
    %206 = arith.cmpf ogt, %204, %205 : vector<8x128xf32>
    %cst_134 = arith.constant 2.000000e-01 : f32
    %207 = vector.broadcast %cst_134 : f32 to vector<8x128xf32>
    %208 = arith.mulf %207, %204 : vector<8x128xf32>
    %209 = arith.select %206, %204, %208 : vector<8x128xi1>, vector<8x128xf32>
    %c0_135 = arith.constant 0 : index
    %c0_136 = arith.constant 0 : index
    %210 = vector.load %arg12[%c0_135, %c0_136] : memref<1x128xf32, #tpu.memory_space<vmem>>, vector<1x128xf32>
    %c0_137 = arith.constant 0 : index
    %c0_138 = arith.constant 0 : index
    %211 = vector.load %arg13[%c0_137, %c0_138] : memref<1x128xf32, #tpu.memory_space<vmem>>, vector<1x128xf32>
    %cst_139 = arith.constant dense<0.000000e+00> : vector<128xf32>
    %212 = vector.multi_reduction <add>, %209, %cst_139 [0] : vector<8x128xf32> to vector<128xf32>
    %213 = vector.shape_cast %212 : vector<128xf32> to vector<1x128xf32>
    %cst_140 = arith.constant 1.250000e-01 : f32
    %214 = vector.broadcast %cst_140 : f32 to vector<1x128xf32>
    %215 = arith.mulf %213, %214 : vector<1x128xf32>
    %216 = arith.mulf %209, %209 : vector<8x128xf32>
    %cst_141 = arith.constant dense<0.000000e+00> : vector<128xf32>
    %217 = vector.multi_reduction <add>, %216, %cst_141 [0] : vector<8x128xf32> to vector<128xf32>
    %218 = vector.shape_cast %217 : vector<128xf32> to vector<1x128xf32>
    %cst_142 = arith.constant 1.250000e-01 : f32
    %219 = vector.broadcast %cst_142 : f32 to vector<1x128xf32>
    %220 = arith.mulf %218, %219 : vector<1x128xf32>
    %221 = arith.mulf %215, %215 : vector<1x128xf32>
    %222 = arith.subf %220, %221 : vector<1x128xf32>
    %cst_143 = arith.constant 9.99999974E-6 : f32
    %223 = vector.broadcast %cst_143 : f32 to vector<1x128xf32>
    %224 = arith.addf %222, %223 : vector<1x128xf32>
    %225 = math.rsqrt %224 : vector<1x128xf32>
    %226 = arith.mulf %210, %225 : vector<1x128xf32>
    %227 = arith.mulf %215, %226 : vector<1x128xf32>
    %228 = arith.subf %211, %227 : vector<1x128xf32>
    %229 = vector.broadcast %226 : vector<1x128xf32> to vector<8x128xf32>
    %230 = arith.mulf %209, %229 : vector<8x128xf32>
    %231 = vector.broadcast %228 : vector<1x128xf32> to vector<8x128xf32>
    %232 = arith.addf %230, %231 : vector<8x128xf32>
    %c0_144 = arith.constant 0 : index
    %c0_145 = arith.constant 0 : index
    %233 = vector.load %arg14[%c0_144, %c0_145] : memref<8x128xf32, #tpu.memory_space<vmem>>, vector<8x128xf32>
    %234 = arith.mulf %232, %233 : vector<8x128xf32>
    %c0_146 = arith.constant 0 : index
    %c0_147 = arith.constant 0 : index
    %235 = vector.load %arg15[%c0_146, %c0_147] : memref<2x8xf32, #tpu.memory_space<vmem>>, vector<2x8xf32>
    %cst_148 = arith.constant dense<0.000000e+00> : vector<2x128xf32>
    %236 = tpu.matmul %235, %234, %cst_148 {dimension_numbers = #tpu.dot_dimension_numbers<[1], [0], [0], [1], [0, 0, 1, 1], [], []>} : vector<2x8xf32>, vector<8x128xf32>, vector<2x128xf32> -> vector<2x128xf32>
    %cst_149 = arith.constant dense<0.000000e+00> : vector<2xf32>
    %237 = vector.multi_reduction <add>, %236, %cst_149 [1] : vector<2x128xf32> to vector<2xf32>
    %238 = vector.shape_cast %237 : vector<2xf32> to vector<2x1xf32>
    %c0_150 = arith.constant 0 : index
    %c0_151 = arith.constant 0 : index
    %239 = vector.load %arg16[%c0_150, %c0_151] : memref<1x1xf32, #tpu.memory_space<vmem>>, vector<1x1xf32>
    %240 = vector.broadcast %239 : vector<1x1xf32> to vector<2x1xf32>
    %241 = arith.addf %238, %240 : vector<2x1xf32>
    %cst_152 = arith.constant 0.000000e+00 : f32
    %242 = vector.broadcast %cst_152 : f32 to vector<2x1xf32>
    %243 = arith.subf %242, %241 : vector<2x1xf32>
    %244 = math.exp %243 : vector<2x1xf32>
    %cst_153 = arith.constant 1.000000e+00 : f32
    %245 = vector.broadcast %cst_153 : f32 to vector<2x1xf32>
    %246 = arith.addf %245, %244 : vector<2x1xf32>
    %247 = tpu.reciprocal %246 : vector<2x1xf32> -> vector<2x1xf32>
    %c0_154 = arith.constant 0 : index
    %c0_155 = arith.constant 0 : index
    %248 = vector.load %arg17[%c0_154, %c0_155] : memref<2x1xf32, #tpu.memory_space<vmem>>, vector<2x1xf32>
    tpu.vector_store %arg17[%c0_154, %c0_155], %247 {strides = array<i32>} : memref<2x1xf32, #tpu.memory_space<vmem>>, vector<2x1xf32>,
    return
  }
  func.func @transform_0(%arg0: i32) -> (i32, i32) {
    %c0_i32 = arith.constant 0 : i32
    %c0_i32_0 = arith.constant 0 : i32
    %c0_i32_1 = arith.constant 0 : i32
    return %c0_i32, %c0_i32_0 : i32, i32
  }
  func.func @transform_1(%arg0: i32) -> (i32, i32) {
    %c0_i32 = arith.constant 0 : i32
    %c0_i32_0 = arith.constant 0 : i32
    %c0_i32_1 = arith.constant 0 : i32
    return %c0_i32, %c0_i32_0 : i32, i32
  }
  func.func @transform_2(%arg0: i32) -> (i32, i32, i32) {
    %c0_i32 = arith.constant 0 : i32
    %c0_i32_0 = arith.constant 0 : i32
    %c0_i32_1 = arith.constant 0 : i32
    %c0_i32_2 = arith.constant 0 : i32
    return %c0_i32, %c0_i32_0, %c0_i32_1 : i32, i32, i32
  }
  func.func @transform_3(%arg0: i32) -> (i32, i32) {
    %c0_i32 = arith.constant 0 : i32
    %c0_i32_0 = arith.constant 0 : i32
    %c0_i32_1 = arith.constant 0 : i32
    return %c0_i32, %c0_i32_0 : i32, i32
  }
  func.func @transform_4(%arg0: i32) -> (i32, i32) {
    %c0_i32 = arith.constant 0 : i32
    %c0_i32_0 = arith.constant 0 : i32
    %c0_i32_1 = arith.constant 0 : i32
    return %c0_i32, %c0_i32_0 : i32, i32
  }
  func.func @transform_5(%arg0: i32) -> (i32, i32) {
    %c0_i32 = arith.constant 0 : i32
    %c0_i32_0 = arith.constant 0 : i32
    %c0_i32_1 = arith.constant 0 : i32
    return %c0_i32, %c0_i32_0 : i32, i32
  }
  func.func @transform_6(%arg0: i32) -> (i32, i32, i32) {
    %c0_i32 = arith.constant 0 : i32
    %c0_i32_0 = arith.constant 0 : i32
    %c0_i32_1 = arith.constant 0 : i32
    %c0_i32_2 = arith.constant 0 : i32
    return %c0_i32, %c0_i32_0, %c0_i32_1 : i32, i32, i32
  }
  func.func @transform_7(%arg0: i32) -> (i32, i32) {
    %c0_i32 = arith.constant 0 : i32
    %c0_i32_0 = arith.constant 0 : i32
    %c0_i32_1 = arith.constant 0 : i32
    return %c0_i32, %c0_i32_0 : i32, i32
  }
  func.func @transform_8(%arg0: i32) -> (i32, i32) {
    %c0_i32 = arith.constant 0 : i32
    %c0_i32_0 = arith.constant 0 : i32
    %c0_i32_1 = arith.constant 0 : i32
    return %c0_i32, %c0_i32_0 : i32, i32
  }
  func.func @transform_9(%arg0: i32) -> (i32, i32) {
    %c0_i32 = arith.constant 0 : i32
    %c0_i32_0 = arith.constant 0 : i32
    %c0_i32_1 = arith.constant 0 : i32
    return %c0_i32, %c0_i32_0 : i32, i32
  }
  func.func @transform_10(%arg0: i32) -> (i32, i32, i32) {
    %c0_i32 = arith.constant 0 : i32
    %c0_i32_0 = arith.constant 0 : i32
    %c0_i32_1 = arith.constant 0 : i32
    %c0_i32_2 = arith.constant 0 : i32
    return %c0_i32, %c0_i32_0, %c0_i32_1 : i32, i32, i32
  }
  func.func @transform_11(%arg0: i32) -> (i32, i32) {
    %c0_i32 = arith.constant 0 : i32
    %c0_i32_0 = arith.constant 0 : i32
    %c0_i32_1 = arith.constant 0 : i32
    return %c0_i32, %c0_i32_0 : i32, i32
  }
  func.func @transform_12(%arg0: i32) -> (i32, i32) {
    %c0_i32 = arith.constant 0 : i32
    %c0_i32_0 = arith.constant 0 : i32
    %c0_i32_1 = arith.constant 0 : i32
    return %c0_i32, %c0_i32_0 : i32, i32
  }
  func.func @transform_13(%arg0: i32) -> (i32, i32) {
    %c0_i32 = arith.constant 0 : i32
    %c0_i32_0 = arith.constant 0 : i32
    %c0_i32_1 = arith.constant 0 : i32
    return %c0_i32, %c0_i32_0 : i32, i32
  }
  func.func @transform_14(%arg0: i32) -> (i32, i32) {
    %c0_i32 = arith.constant 0 : i32
    %c0_i32_0 = arith.constant 0 : i32
    %c0_i32_1 = arith.constant 0 : i32
    return %c0_i32, %c0_i32_0 : i32, i32
  }
  func.func @transform_15(%arg0: i32) -> (i32, i32) {
    %c0_i32 = arith.constant 0 : i32
    %c0_i32_0 = arith.constant 0 : i32
    %c0_i32_1 = arith.constant 0 : i32
    return %c0_i32, %c0_i32_0 : i32, i32
  }
  func.func @transform_16(%arg0: i32) -> (i32, i32) {
    %c0_i32 = arith.constant 0 : i32
    %c0_i32_0 = arith.constant 0 : i32
    %c0_i32_1 = arith.constant 0 : i32
    return %c0_i32, %c0_i32_0 : i32, i32
  }
}

</mosaic_0001>

<bundles_post_ra>
// kernel: squeeze.1
= control target key start
LH: loop header
LB: loop body
LE: loop exit
PB: predicated region body
PF: predicated region fallthrough
CT: control target
= control target key end

     0   :  { %s546_s8 = smov 116   ;;  %s547_s9 = smov 120   ;;  %vm7_vm0 = vcmask 31744   ;;  %s1101_s0 = inlined_call_operand.vmem [shape: f32[512], index: 0, kind: input, shape index: {}]   ;;  %s1102_s1 = inlined_call_operand.vmem [shape: f32[128,4], index: 1, kind: output, shape index: {}]  }
   0x1   :  { %v4_v0 = vld [vmem:[%s1101_s0] sm:$0xf]  ;;  %s545_s0 = smov 124   ;;  %s548_s10 = smov 112  }
   0x2   :  { %5 = vst [vmem:[#allocation0] sm:$0xf] %v4_v0  ;;  %s549_s11 = smov 108   ;;  %s550_s12 = smov 104  }
   0x3   :  { %s551_s13 = smov 100   ;;  %s552_s14 = smov 96  }
   0x4   :  { %s553_s15 = smov 92   ;;  %s554_s16 = smov 88  }
   0x5   :  { %s555_s17 = smov 84   ;;  %s556_s18 = smov 80  }
   0x6   :  { %s557_s19 = smov 76   ;;  %s558_s20 = smov 72  }
   0x7   :  { %s559_s21 = smov 68   ;;  %s560_s22 = smov 64  }
   0x8   :  { %s561_s23 = smov 60   ;;  %s562_s24 = smov 56  }
   0x9   :  { %v15_v1 = vld [vmem:[#allocation0] sm:$0xf]   ;;  %s563_s25 = smov 52   ;;  %s564_s26 = smov 48  }
   0xa   :  { %v39_v2 = vld [vmem:[#allocation0] sm:$0xf]   ;;  %16 = vrot.lane.b32.xlu0 %v15_v1, %s545_s0  ;;  %s565_s27 = smov 44   ;;  %s566_s28 = smov 40  }
   0xb   :  { %40 = vrot.lane.b32.xlu1 %v39_v2, %s546_s8  ;;  %v27_v3 = vld [vmem:[#allocation0] sm:$0xf]   ;;  %s567_s29 = smov 36   ;;  %s568_s30 = smov 32  }
   0xc   :  { %v51_v4 = vld [vmem:[#allocation0] sm:$0xf]  }
   0xd   :  { %v63_v5 = vld [vmem:[#allocation0] sm:$0xf]  }
   0xe   :  { %28 = vrot.lane.b32.xlu0 %v27_v3, %s547_s9  ;;  %v75_v6 = vld [vmem:[#allocation0] sm:$0xf]   ;;  %s569_s9 = smov 28  }
   0xf   :  { %52 = vrot.lane.b32.xlu1 %v51_v4, %s548_s10  ;;  %v87_v7 = vld [vmem:[#allocation0] sm:$0xf]   ;;  %s570_s10 = smov 24  }
  0x10   :  { %v99_v8 = vld [vmem:[#allocation0] sm:$0xf]  }
  0x11   :  { %v111_v9 = vld [vmem:[#allocation0] sm:$0xf]  }
  0x12   :  { %64 = vrot.lane.b32.xlu0 %v63_v5, %s549_s11  ;;  %v123_v10 = vld [vmem:[#allocation0] sm:$0xf]   ;;  %s571_s11 = smov 20  }
  0x13   :  { %76 = vrot.lane.b32.xlu1 %v75_v6, %s550_s12  ;;  %v135_v11 = vld [vmem:[#allocation0] sm:$0xf]   ;;  %s572_s12 = smov 16  }
  0x14   :  { %v147_v12 = vld [vmem:[#allocation0] sm:$0xf]  }
  0x15   :  { %v159_v13 = vld [vmem:[#allocation0] sm:$0xf]  }
  0x16   :  { %88 = vrot.lane.b32.xlu0 %v87_v7, %s551_s13  ;;  %v171_v14 = vld [vmem:[#allocation0] sm:$0xf]   ;;  %s573_s13 = smov 12  }
  0x17   :  { %100 = vrot.lane.b32.xlu1 %v99_v8, %s552_s14  ;;  %v183_v15 = vld [vmem:[#allocation0] sm:$0xf]   ;;  %s574_s14 = smov 8  }
  0x18   :  { %v195_v16 = vld [vmem:[#allocation0] sm:$0xf]  }
  0x19   :  { %v207_v17 = vld [vmem:[#allocation0] sm:$0xf]  }
  0x1a   :  { %112 = vrot.lane.b32.xlu0 %v111_v9, %s553_s15  ;;  %v219_v18 = vld [vmem:[#allocation0] sm:$0xf]   ;;  %s575_s15 = smov 4  }
  0x1b   :  { %124 = vrot.lane.b32.xlu1 %v123_v10, %s554_s16  ;;  %v231_v19 = vld [vmem:[#allocation0] sm:$0xf]  }
  0x1c   :  { %v243_v20 = vld [vmem:[#allocation0] sm:$0xf]  }
  0x1d   :  { %v255_v21 = vld [vmem:[#allocation0] sm:$0xf]  }
  0x1e   :  { %136 = vrot.lane.b32.xlu0 %v135_v11, %s555_s17  ;;  %v267_v22 = vld [vmem:[#allocation0] sm:$0xf]  }
  0x1f   :  { %148 = vrot.lane.b32.xlu1 %v147_v12, %s556_s18  ;;  %v279_v23 = vld [vmem:[#allocation0] sm:$0xf]  }
  0x20   :  { %v291_v24 = vld [vmem:[#allocation0] sm:$0xf]  }
  0x21   :  { %v303_v25 = vld [vmem:[#allocation0] sm:$0xf]  }
  0x22   :  { %160 = vrot.lane.b32.xlu0 %v159_v13, %s557_s19  ;;  %v315_v26 = vld [vmem:[#allocation0] sm:$0xf]  }
  0x23   :  { %172 = vrot.lane.b32.xlu1 %v171_v14, %s558_s20  ;;  %v6_v27 = vld [vmem:[#allocation0] sm:$0xf]  }
  0x24   :  { %8 = vst.msk [vmem:[%s1102_s1] sm:$0x1] %vm7_vm0, %v6_v27   ;;  %387 = vst.msk [vmem:[%s1102_s1 + $0x1f] sm:$0x2] %vm7_vm0, %v6_v27   ;;  %v327_v28 = vld [vmem:[#allocation0] sm:$0xf]  }
  0x25   :  { %388 = vst.msk [vmem:[%s1102_s1 + $0x3e] sm:$0x4] %vm7_vm0, %v6_v27   ;;  %389 = vst.msk [vmem:[%s1102_s1 + $0x5d] sm:$0x8] %vm7_vm0, %v6_v27   ;;  %v339_v29 = vld [vmem:[#allocation0] sm:$0xf]  }
  0x26   :  { %184 = vrot.lane.b32.xlu0 %v183_v15, %s559_s21  ;;  %v351_v30 = vld [vmem:[#allocation0] sm:$0xf]  }
  0x27   :  { %196 = vrot.lane.b32.xlu1 %v195_v16, %s560_s22  ;;  %v363_v31 = vld [vmem:[#allocation0] sm:$0xf]  }
  0x28   :  { %v375_v32 = vld [vmem:[#allocation0] sm:$0xf]  }
  0x2a   :  { %208 = vrot.lane.b32.xlu0 %v207_v17, %s561_s23 }
  0x2b   :  { %220 = vrot.lane.b32.xlu1 %v219_v18, %s562_s24 }
  0x2e   :  { %232 = vrot.lane.b32.xlu0 %v231_v19, %s563_s25 }
  0x2f   :  { %244 = vrot.lane.b32.xlu1 %v243_v20, %s564_s26 }
  0x32   :  { %256 = vrot.lane.b32.xlu0 %v255_v21, %s565_s27 }
  0x33   :  { %268 = vrot.lane.b32.xlu1 %v267_v22, %s566_s28 }
  0x36   :  { %280 = vrot.lane.b32.xlu0 %v279_v23, %s567_s29 }
  0x37   :  { %292 = vrot.lane.b32.xlu1 %v291_v24, %s568_s30 }
  0x3a   :  { %304 = vrot.lane.b32.xlu0 %v303_v25, %s569_s9 }
  0x3b   :  { %316 = vrot.lane.b32.xlu1 %v315_v26, %s570_s10 }
  0x3e   :  { %328 = vrot.lane.b32.xlu0 %v327_v28, %s571_s11 }
  0x3f   :  { %340 = vrot.lane.b32.xlu1 %v339_v29, %s572_s12 }
  0x42   :  { %352 = vrot.lane.b32.xlu0 %v351_v30, %s573_s13 }
  0x43   :  { %364 = vrot.lane.b32.xlu1 %v363_v31, %s574_s14 }
  0x46   :  { %376 = vrot.lane.b32.xlu0 %v375_v32, %s575_s15 }
  0x7c   :  { %v17_v33 = vpop.permute.xlu0 %16  }
  0x7d   :  { %v41_v34 = vpop.permute.xlu1 %40   ;;  %390 = vst.msk [vmem:[%s1102_s1 + $0x1] sm:$0x1] %vm7_vm0, %v17_v33   ;;  %391 = vst.msk [vmem:[%s1102_s1 + $0x20] sm:$0x2] %vm7_vm0, %v17_v33  }
  0x7e   :  { %392 = vst.msk [vmem:[%s1102_s1 + $0x3f] sm:$0x4] %vm7_vm0, %v17_v33   ;;  %393 = vst.msk [vmem:[%s1102_s1 + $0x5e] sm:$0x8] %vm7_vm0, %v17_v33  }
  0x7f   :  { %398 = vst.msk [vmem:[%s1102_s1 + $0x3] sm:$0x1] %vm7_vm0, %v41_v34   ;;  %399 = vst.msk [vmem:[%s1102_s1 + $0x22] sm:$0x2] %vm7_vm0, %v41_v34  }
  0x80   :  { %400 = vst.msk [vmem:[%s1102_s1 + $0x41] sm:$0x4] %vm7_vm0, %v41_v34   ;;  %401 = vst.msk [vmem:[%s1102_s1 + $0x60] sm:$0x8] %vm7_vm0, %v41_v34   ;;  %v29_v35 = vpop.permute.xlu0 %28  }
  0x81   :  { %v53_v36 = vpop.permute.xlu1 %52   ;;  %394 = vst.msk [vmem:[%s1102_s1 + $0x2] sm:$0x1] %vm7_vm0, %v29_v35   ;;  %395 = vst.msk [vmem:[%s1102_s1 + $0x21] sm:$0x2] %vm7_vm0, %v29_v35  }
  0x82   :  { %396 = vst.msk [vmem:[%s1102_s1 + $0x40] sm:$0x4] %vm7_vm0, %v29_v35   ;;  %397 = vst.msk [vmem:[%s1102_s1 + $0x5f] sm:$0x8] %vm7_vm0, %v29_v35  }
  0x83   :  { %402 = vst.msk [vmem:[%s1102_s1 + $0x4] sm:$0x1] %vm7_vm0, %v53_v36   ;;  %403 = vst.msk [vmem:[%s1102_s1 + $0x23] sm:$0x2] %vm7_vm0, %v53_v36  }
  0x84   :  { %404 = vst.msk [vmem:[%s1102_s1 + $0x42] sm:$0x4] %vm7_vm0, %v53_v36   ;;  %405 = vst.msk [vmem:[%s1102_s1 + $0x61] sm:$0x8] %vm7_vm0, %v53_v36   ;;  %v65_v37 = vpop.permute.xlu0 %64  }
  0x85   :  { %v77_v38 = vpop.permute.xlu1 %76   ;;  %406 = vst.msk [vmem:[%s1102_s1 + $0x5] sm:$0x1] %vm7_vm0, %v65_v37   ;;  %407 = vst.msk [vmem:[%s1102_s1 + $0x24] sm:$0x2] %vm7_vm0, %v65_v37  }
  0x86   :  { %408 = vst.msk [vmem:[%s1102_s1 + $0x43] sm:$0x4] %vm7_vm0, %v65_v37   ;;  %409 = vst.msk [vmem:[%s1102_s1 + $0x62] sm:$0x8] %vm7_vm0, %v65_v37  }
  0x87   :  { %410 = vst.msk [vmem:[%s1102_s1 + $0x6] sm:$0x1] %vm7_vm0, %v77_v38   ;;  %411 = vst.msk [vmem:[%s1102_s1 + $0x25] sm:$0x2] %vm7_vm0, %v77_v38  }
  0x88   :  { %412 = vst.msk [vmem:[%s1102_s1 + $0x44] sm:$0x4] %vm7_vm0, %v77_v38   ;;  %413 = vst.msk [vmem:[%s1102_s1 + $0x63] sm:$0x8] %vm7_vm0, %v77_v38   ;;  %v89_v39 = vpop.permute.xlu0 %88  }
  0x89   :  { %v101_v40 = vpop.permute.xlu1 %100   ;;  %414 = vst.msk [vmem:[%s1102_s1 + $0x7] sm:$0x1] %vm7_vm0, %v89_v39   ;;  %415 = vst.msk [vmem:[%s1102_s1 + $0x26] sm:$0x2] %vm7_vm0, %v89_v39  }
  0x8a   :  { %416 = vst.msk [vmem:[%s1102_s1 + $0x45] sm:$0x4] %vm7_vm0, %v89_v39   ;;  %417 = vst.msk [vmem:[%s1102_s1 + $0x64] sm:$0x8] %vm7_vm0, %v89_v39  }
  0x8b   :  { %418 = vst.msk [vmem:[%s1102_s1 + $0x8] sm:$0x1] %vm7_vm0, %v101_v40   ;;  %419 = vst.msk [vmem:[%s1102_s1 + $0x27] sm:$0x2] %vm7_vm0, %v101_v40  }
  0x8c   :  { %420 = vst.msk [vmem:[%s1102_s1 + $0x46] sm:$0x4] %vm7_vm0, %v101_v40   ;;  %421 = vst.msk [vmem:[%s1102_s1 + $0x65] sm:$0x8] %vm7_vm0, %v101_v40   ;;  %v113_v41 = vpop.permute.xlu0 %112  }
  0x8d   :  { %v125_v42 = vpop.permute.xlu1 %124   ;;  %422 = vst.msk [vmem:[%s1102_s1 + $0x9] sm:$0x1] %vm7_vm0, %v113_v41   ;;  %423 = vst.msk [vmem:[%s1102_s1 + $0x28] sm:$0x2] %vm7_vm0, %v113_v41  }
  0x8e   :  { %424 = vst.msk [vmem:[%s1102_s1 + $0x47] sm:$0x4] %vm7_vm0, %v113_v41   ;;  %425 = vst.msk [vmem:[%s1102_s1 + $0x66] sm:$0x8] %vm7_vm0, %v113_v41  }
  0x8f   :  { %426 = vst.msk [vmem:[%s1102_s1 + $0xa] sm:$0x1] %vm7_vm0, %v125_v42   ;;  %427 = vst.msk [vmem:[%s1102_s1 + $0x29] sm:$0x2] %vm7_vm0, %v125_v42  }
  0x90   :  { %428 = vst.msk [vmem:[%s1102_s1 + $0x48] sm:$0x4] %vm7_vm0, %v125_v42   ;;  %429 = vst.msk [vmem:[%s1102_s1 + $0x67] sm:$0x8] %vm7_vm0, %v125_v42   ;;  %v137_v43 = vpop.permute.xlu0 %136  }
  0x91   :  { %v149_v44 = vpop.permute.xlu1 %148   ;;  %430 = vst.msk [vmem:[%s1102_s1 + $0xb] sm:$0x1] %vm7_vm0, %v137_v43   ;;  %431 = vst.msk [vmem:[%s1102_s1 + $0x2a] sm:$0x2] %vm7_vm0, %v137_v43  }
  0x92   :  { %432 = vst.msk [vmem:[%s1102_s1 + $0x49] sm:$0x4] %vm7_vm0, %v137_v43   ;;  %433 = vst.msk [vmem:[%s1102_s1 + $0x68] sm:$0x8] %vm7_vm0, %v137_v43  }
  0x93   :  { %434 = vst.msk [vmem:[%s1102_s1 + $0xc] sm:$0x1] %vm7_vm0, %v149_v44   ;;  %435 = vst.msk [vmem:[%s1102_s1 + $0x2b] sm:$0x2] %vm7_vm0, %v149_v44  }
  0x94   :  { %436 = vst.msk [vmem:[%s1102_s1 + $0x4a] sm:$0x4] %vm7_vm0, %v149_v44   ;;  %437 = vst.msk [vmem:[%s1102_s1 + $0x69] sm:$0x8] %vm7_vm0, %v149_v44   ;;  %v161_v45 = vpop.permute.xlu0 %160  }
  0x95   :  { %v173_v46 = vpop.permute.xlu1 %172   ;;  %438 = vst.msk [vmem:[%s1102_s1 + $0xd] sm:$0x1] %vm7_vm0, %v161_v45   ;;  %439 = vst.msk [vmem:[%s1102_s1 + $0x2c] sm:$0x2] %vm7_vm0, %v161_v45  }
  0x96   :  { %440 = vst.msk [vmem:[%s1102_s1 + $0x4b] sm:$0x4] %vm7_vm0, %v161_v45   ;;  %441 = vst.msk [vmem:[%s1102_s1 + $0x6a] sm:$0x8] %vm7_vm0, %v161_v45  }
  0x97   :  { %442 = vst.msk [vmem:[%s1102_s1 + $0xe] sm:$0x1] %vm7_vm0, %v173_v46   ;;  %443 = vst.msk [vmem:[%s1102_s1 + $0x2d] sm:$0x2] %vm7_vm0, %v173_v46  }
  0x98   :  { %444 = vst.msk [vmem:[%s1102_s1 + $0x4c] sm:$0x4] %vm7_vm0, %v173_v46   ;;  %445 = vst.msk [vmem:[%s1102_s1 + $0x6b] sm:$0x8] %vm7_vm0, %v173_v46   ;;  %v185_v47 = vpop.permute.xlu0 %184  }
  0x99   :  { %v197_v48 = vpop.permute.xlu1 %196   ;;  %446 = vst.msk [vmem:[%s1102_s1 + $0xf] sm:$0x1] %vm7_vm0, %v185_v47   ;;  %447 = vst.msk [vmem:[%s1102_s1 + $0x2e] sm:$0x2] %vm7_vm0, %v185_v47  }
  0x9a   :  { %448 = vst.msk [vmem:[%s1102_s1 + $0x4d] sm:$0x4] %vm7_vm0, %v185_v47   ;;  %449 = vst.msk [vmem:[%s1102_s1 + $0x6c] sm:$0x8] %vm7_vm0, %v185_v47  }
  0x9b   :  { %450 = vst.msk [vmem:[%s1102_s1 + $0x10] sm:$0x1] %vm7_vm0, %v197_v48   ;;  %451 = vst.msk [vmem:[%s1102_s1 + $0x2f] sm:$0x2] %vm7_vm0, %v197_v48  }
  0x9c   :  { %452 = vst.msk [vmem:[%s1102_s1 + $0x4e] sm:$0x4] %vm7_vm0, %v197_v48   ;;  %453 = vst.msk [vmem:[%s1102_s1 + $0x6d] sm:$0x8] %vm7_vm0, %v197_v48   ;;  %v209_v49 = vpop.permute.xlu0 %208  }
  0x9d   :  { %v221_v50 = vpop.permute.xlu1 %220   ;;  %454 = vst.msk [vmem:[%s1102_s1 + $0x11] sm:$0x1] %vm7_vm0, %v209_v49   ;;  %455 = vst.msk [vmem:[%s1102_s1 + $0x30] sm:$0x2] %vm7_vm0, %v209_v49  }
  0x9e   :  { %456 = vst.msk [vmem:[%s1102_s1 + $0x4f] sm:$0x4] %vm7_vm0, %v209_v49   ;;  %457 = vst.msk [vmem:[%s1102_s1 + $0x6e] sm:$0x8] %vm7_vm0, %v209_v49  }
  0x9f   :  { %458 = vst.msk [vmem:[%s1102_s1 + $0x12] sm:$0x1] %vm7_vm0, %v221_v50   ;;  %459 = vst.msk [vmem:[%s1102_s1 + $0x31] sm:$0x2] %vm7_vm0, %v221_v50  }
  0xa0   :  { %460 = vst.msk [vmem:[%s1102_s1 + $0x50] sm:$0x4] %vm7_vm0, %v221_v50   ;;  %461 = vst.msk [vmem:[%s1102_s1 + $0x6f] sm:$0x8] %vm7_vm0, %v221_v50   ;;  %v233_v51 = vpop.permute.xlu0 %232  }
  0xa1   :  { %v245_v52 = vpop.permute.xlu1 %244   ;;  %462 = vst.msk [vmem:[%s1102_s1 + $0x13] sm:$0x1] %vm7_vm0, %v233_v51   ;;  %463 = vst.msk [vmem:[%s1102_s1 + $0x32] sm:$0x2] %vm7_vm0, %v233_v51  }
  0xa2   :  { %464 = vst.msk [vmem:[%s1102_s1 + $0x51] sm:$0x4] %vm7_vm0, %v233_v51   ;;  %465 = vst.msk [vmem:[%s1102_s1 + $0x70] sm:$0x8] %vm7_vm0, %v233_v51  }
  0xa3   :  { %466 = vst.msk [vmem:[%s1102_s1 + $0x14] sm:$0x1] %vm7_vm0, %v245_v52   ;;  %467 = vst.msk [vmem:[%s1102_s1 + $0x33] sm:$0x2] %vm7_vm0, %v245_v52  }
  0xa4   :  { %468 = vst.msk [vmem:[%s1102_s1 + $0x52] sm:$0x4] %vm7_vm0, %v245_v52   ;;  %469 = vst.msk [vmem:[%s1102_s1 + $0x71] sm:$0x8] %vm7_vm0, %v245_v52   ;;  %v257_v53 = vpop.permute.xlu0 %256  }
  0xa5   :  { %v269_v54 = vpop.permute.xlu1 %268   ;;  %470 = vst.msk [vmem:[%s1102_s1 + $0x15] sm:$0x1] %vm7_vm0, %v257_v53   ;;  %471 = vst.msk [vmem:[%s1102_s1 + $0x34] sm:$0x2] %vm7_vm0, %v257_v53  }
  0xa6   :  { %472 = vst.msk [vmem:[%s1102_s1 + $0x53] sm:$0x4] %vm7_vm0, %v257_v53   ;;  %473 = vst.msk [vmem:[%s1102_s1 + $0x72] sm:$0x8] %vm7_vm0, %v257_v53  }
  0xa7   :  { %474 = vst.msk [vmem:[%s1102_s1 + $0x16] sm:$0x1] %vm7_vm0, %v269_v54   ;;  %475 = vst.msk [vmem:[%s1102_s1 + $0x35] sm:$0x2] %vm7_vm0, %v269_v54  }
  0xa8   :  { %476 = vst.msk [vmem:[%s1102_s1 + $0x54] sm:$0x4] %vm7_vm0, %v269_v54   ;;  %477 = vst.msk [vmem:[%s1102_s1 + $0x73] sm:$0x8] %vm7_vm0, %v269_v54   ;;  %v281_v55 = vpop.permute.xlu0 %280  }
  0xa9   :  { %v293_v56 = vpop.permute.xlu1 %292   ;;  %478 = vst.msk [vmem:[%s1102_s1 + $0x17] sm:$0x1] %vm7_vm0, %v281_v55   ;;  %479 = vst.msk [vmem:[%s1102_s1 + $0x36] sm:$0x2] %vm7_vm0, %v281_v55  }
  0xaa   :  { %480 = vst.msk [vmem:[%s1102_s1 + $0x55] sm:$0x4] %vm7_vm0, %v281_v55   ;;  %481 = vst.msk [vmem:[%s1102_s1 + $0x74] sm:$0x8] %vm7_vm0, %v281_v55  }
  0xab   :  { %482 = vst.msk [vmem:[%s1102_s1 + $0x18] sm:$0x1] %vm7_vm0, %v293_v56   ;;  %483 = vst.msk [vmem:[%s1102_s1 + $0x37] sm:$0x2] %vm7_vm0, %v293_v56  }
  0xac   :  { %484 = vst.msk [vmem:[%s1102_s1 + $0x56] sm:$0x4] %vm7_vm0, %v293_v56   ;;  %485 = vst.msk [vmem:[%s1102_s1 + $0x75] sm:$0x8] %vm7_vm0, %v293_v56   ;;  %v305_v57 = vpop.permute.xlu0 %304  }
  0xad   :  { %v317_v58 = vpop.permute.xlu1 %316   ;;  %486 = vst.msk [vmem:[%s1102_s1 + $0x19] sm:$0x1] %vm7_vm0, %v305_v57   ;;  %487 = vst.msk [vmem:[%s1102_s1 + $0x38] sm:$0x2] %vm7_vm0, %v305_v57  }
  0xae   :  { %488 = vst.msk [vmem:[%s1102_s1 + $0x57] sm:$0x4] %vm7_vm0, %v305_v57   ;;  %489 = vst.msk [vmem:[%s1102_s1 + $0x76] sm:$0x8] %vm7_vm0, %v305_v57  }
  0xaf   :  { %490 = vst.msk [vmem:[%s1102_s1 + $0x1a] sm:$0x1] %vm7_vm0, %v317_v58   ;;  %491 = vst.msk [vmem:[%s1102_s1 + $0x39] sm:$0x2] %vm7_vm0, %v317_v58  }
  0xb0   :  { %492 = vst.msk [vmem:[%s1102_s1 + $0x58] sm:$0x4] %vm7_vm0, %v317_v58   ;;  %493 = vst.msk [vmem:[%s1102_s1 + $0x77] sm:$0x8] %vm7_vm0, %v317_v58   ;;  %v329_v59 = vpop.permute.xlu0 %328  }
  0xb1   :  { %v341_v60 = vpop.permute.xlu1 %340   ;;  %494 = vst.msk [vmem:[%s1102_s1 + $0x1b] sm:$0x1] %vm7_vm0, %v329_v59   ;;  %495 = vst.msk [vmem:[%s1102_s1 + $0x3a] sm:$0x2] %vm7_vm0, %v329_v59  }
  0xb2   :  { %496 = vst.msk [vmem:[%s1102_s1 + $0x59] sm:$0x4] %vm7_vm0, %v329_v59   ;;  %497 = vst.msk [vmem:[%s1102_s1 + $0x78] sm:$0x8] %vm7_vm0, %v329_v59  }
  0xb3   :  { %498 = vst.msk [vmem:[%s1102_s1 + $0x1c] sm:$0x1] %vm7_vm0, %v341_v60   ;;  %499 = vst.msk [vmem:[%s1102_s1 + $0x3b] sm:$0x2] %vm7_vm0, %v341_v60  }
  0xb4   :  { %500 = vst.msk [vmem:[%s1102_s1 + $0x5a] sm:$0x4] %vm7_vm0, %v341_v60   ;;  %501 = vst.msk [vmem:[%s1102_s1 + $0x79] sm:$0x8] %vm7_vm0, %v341_v60   ;;  %v353_v61 = vpop.permute.xlu0 %352  }
  0xb5   :  { %v365_v62 = vpop.permute.xlu1 %364   ;;  %502 = vst.msk [vmem:[%s1102_s1 + $0x1d] sm:$0x1] %vm7_vm0, %v353_v61   ;;  %503 = vst.msk [vmem:[%s1102_s1 + $0x3c] sm:$0x2] %vm7_vm0, %v353_v61  }
  0xb6   :  { %504 = vst.msk [vmem:[%s1102_s1 + $0x5b] sm:$0x4] %vm7_vm0, %v353_v61   ;;  %505 = vst.msk [vmem:[%s1102_s1 + $0x7a] sm:$0x8] %vm7_vm0, %v353_v61  }
  0xb7   :  { %506 = vst.msk [vmem:[%s1102_s1 + $0x1e] sm:$0x1] %vm7_vm0, %v365_v62   ;;  %507 = vst.msk [vmem:[%s1102_s1 + $0x3d] sm:$0x2] %vm7_vm0, %v365_v62  }
  0xb8   :  { %508 = vst.msk [vmem:[%s1102_s1 + $0x5c] sm:$0x4] %vm7_vm0, %v365_v62   ;;  %509 = vst.msk [vmem:[%s1102_s1 + $0x7b] sm:$0x8] %vm7_vm0, %v365_v62   ;;  %v377_v63 = vpop.permute.xlu0 %376  }
  0xb9   :  { %510 = vst.msk [vmem:[%s1102_s1 + $0x1f] sm:$0x1] %vm7_vm0, %v377_v63   ;;  %511 = vst.msk [vmem:[%s1102_s1 + $0x3e] sm:$0x2] %vm7_vm0, %v377_v63  }
  0xba   :  { %512 = vst.msk [vmem:[%s1102_s1 + $0x5d] sm:$0x4] %vm7_vm0, %v377_v63   ;;  %513 = vst.msk [vmem:[%s1102_s1 + $0x7c] sm:$0x8] %vm7_vm0, %v377_v63  }

// kernel: discriminator_forward.1
= control target key start
LH: loop header
LB: loop body
LE: loop exit
PB: predicated region body
PF: predicated region fallthrough
CT: control target
= control target key end

     0   :  { %vm784_vm0 = vcmask 1043456   ;;  %vm785_vm1 = vcmask 1044480   ;;  %vm567_vm2 = vcmask 72704   ;;  %v7090_v1 = vmov 65535   ;;  %s8201_s1 = inlined_call_operand.vmem [shape: bf16[9,16], index: 1, kind: input, shape index: {}]   ;;  %s8202_s0 = inlined_call_operand.vmem [shape: bf16[1152,9], index: 0, kind: input, shape index: {}]   ;;  %s8203_s2 = inlined_call_operand.vmem [shape: bf16[9,16,32], index: 2, kind: input, shape index: {}]   ;;  %s8204_s5 = inlined_call_operand.vmem [shape: bf16[288,128], index: 5, kind: input, shape index: {}]   ;;  %s8205_s6 = inlined_call_operand.vmem [shape: bf16[9,32,64], index: 6, kind: input, shape index: {}]   ;;  %s8206_s3 = inlined_call_operand.vmem [shape: f32[1,32], index: 3, kind: input, shape index: {}]   ;;  %s8207_s4 = inlined_call_operand.vmem [shape: f32[1,32], index: 4, kind: input, shape index: {}]   ;;  %s8208_s9 = inlined_call_operand.vmem [shape: bf16[72,32], index: 9, kind: input, shape index: {}]   ;;  %s8209_s10 = inlined_call_operand.vmem [shape: bf16[9,64,128], index: 10, kind: input, shape index: {}]   ;;  %s8210_s7 = inlined_call_operand.vmem [shape: f32[1,64], index: 7, kind: input, shape index: {}]   ;;  %s8211_s8 = inlined_call_operand.vmem [shape: f32[1,64], index: 8, kind: input, shape index: {}]   ;;  %s8212_s11 = inlined_call_operand.vmem [shape: f32[1,128], index: 11, kind: input, shape index: {}]   ;;  %s8213_s12 = inlined_call_operand.vmem [shape: f32[1,128], index: 12, kind: input, shape index: {}]   ;;  %s8214_s13 = inlined_call_operand.vmem [shape: f32[8,128], index: 13, kind: input, shape index: {}]   ;;  %s8215_s14 = inlined_call_operand.vmem [shape: f32[2,8], index: 14, kind: input, shape index: {}]   ;;  %s8216_s15 = inlined_call_operand.<no memory space> [shape: f32[1,1], index: 15, kind: input, shape index: {}]   ;;  %s8217_s16 = inlined_call_operand.vmem [shape: f32[2,1], index: 16, kind: output, shape index: {}]  }
   0x1   :  { %8218 = sst [smem:[#allocation3_spill]] %s8201_s1  ;;  %v786_v2 = vsel %vm784_vm0, 4294967295, %v7090_v1  ;;  %v6922_v3 = vld [vmem:[%s8202_s0] sm:$0xff]   ;;  %v6923_v6 = vld [vmem:[%s8202_s0 + $0x8] sm:$0xff]   ;;  %v6924_v7 = vld [vmem:[%s8202_s0 + $0x10] sm:$0xff]   ;;  %vm1915_vm7 = vcmask 130048  }
   0x2   :  { %s8219_s23 = sld [smem:[#allocation3_spill]]  ;;  %v787_v4 = vsel %vm785_vm1, %v786_v2, 0  ;;  %6162 = vmatprep.mubr.msk.bf16.mxu0 %vm567_vm2, %v6922_v3  ;;  %v6925_v8 = vld [vmem:[%s8202_s0 + $0x18] sm:$0xff]   ;;  %v6926_v9 = vld [vmem:[%s8202_s0 + $0x20] sm:$0xff]   ;;  %v6927_v10 = vld [vmem:[%s8202_s0 + $0x28] sm:$0xff]  }
   0x3   :  { %v6928_v11 = vld [vmem:[%s8202_s0 + $0x30] sm:$0xff]   ;;  %v6929_v12 = vld [vmem:[%s8202_s0 + $0x38] sm:$0xff]   ;;  %v6930_v13 = vld [vmem:[%s8202_s0 + $0x40] sm:$0xff]  }
   0x4   :  { %v6931_v14 = vld [vmem:[%s8202_s0 + $0x48] sm:$0xff]   ;;  %v6932_v15 = vld [vmem:[%s8202_s0 + $0x50] sm:$0xff]   ;;  %v6933_v16 = vld [vmem:[%s8202_s0 + $0x58] sm:$0xff]  }
   0x5   :  { %v6934_v17 = vld [vmem:[%s8202_s0 + $0x60] sm:$0xff]   ;;  %v6935_v18 = vld [vmem:[%s8202_s0 + $0x68] sm:$0xff]   ;;  %v6936_v19 = vld [vmem:[%s8202_s0 + $0x70] sm:$0xff]  }
   0x6   :  { %v6937_v20 = vld [vmem:[%s8202_s0 + $0x78] sm:$0xff]   ;;  %v6938_v21 = vld [vmem:[%s8202_s0 + $0x80] sm:$0xff]   ;;  %v6939_v22 = vld [vmem:[%s8202_s0 + $0x88] sm:$0xff]  }
   0x7   :  { %v6940_v23 = vld [vmem:[%s8202_s0 + $0x90] sm:$0xff]   ;;  %v6972_v24 = vld [vmem:[%s8203_s2 + $0x8] sm:$0xff]   ;;  %v6941_v25 = vld [vmem:[%s8202_s0 + $0x98] sm:$0xff]  }
   0x8   :  { %v6921_v0 = vld [vmem:[%s8219_s23] sm:$0x1f]   ;;  %v6943_v27 = vld [vmem:[%s8202_s0 + $0xa8] sm:$0xff]   ;;  %v6944_v28 = vld [vmem:[%s8202_s0 + $0xb0] sm:$0xff]  }
   0x9   :  { %v789_v5 = vand.u32 %v6921_v0, %v787_v4  ;;  %v6942_v26 = vld [vmem:[%s8202_s0 + $0xa0] sm:$0xff]   ;;  %v6945_v29 = vld [vmem:[%s8202_s0 + $0xb8] sm:$0xff]   ;;  %v6947_v32 = vld [vmem:[%s8202_s0 + $0xc8] sm:$0xff]  }
   0xa   :  { %v6946_v30 = vld [vmem:[%s8202_s0 + $0xc0] sm:$0xff]   ;;  %v6948_v33 = vld [vmem:[%s8202_s0 + $0xd0] sm:$0xff]   ;;  %v6949_v34 = vld [vmem:[%s8202_s0 + $0xd8] sm:$0xff]  }
   0xb   :  { %6160 = vmatprep.subr.bf16.mxu0 %v789_v5  ;;  %v6979_v31 = vld [vmem:[%s8203_s2] sm:$0xff]   ;;  %v6951_v36 = vld [vmem:[%s8202_s0 + $0xe8] sm:$0xff]   ;;  %v6952_v37 = vld [vmem:[%s8202_s0 + $0xf0] sm:$0xff]  }
   0xc   :  { %6161 = vmatpush3.bf16.msra.mxu0 %v789_v5  ;;  %6324 = vmatprep.subr.bf16.mxu1 %v6979_v31  ;;  %v6950_v35 = vld [vmem:[%s8202_s0 + $0xe0] sm:$0xff]   ;;  %v6953_v38 = vld [vmem:[%s8202_s0 + $0xf8] sm:$0xff]   ;;  %v6955_v40 = vld [vmem:[%s8202_s0 + $0x108] sm:$0xff]  }
   0xd   :  { %6306 = vmatprep.subr.bf16.mxu0 %v6972_v24  ;;  %6325 = vmatpush3.bf16.msra.mxu1 %v6979_v31  ;;  %v6954_v39 = vld [vmem:[%s8202_s0 + $0x100] sm:$0xff]   ;;  %v6956_v41 = vld [vmem:[%s8202_s0 + $0x110] sm:$0xff]   ;;  %v6957_v42 = vld [vmem:[%s8202_s0 + $0x118] sm:$0xff]  }
   0xe   :  { %v6958_v43 = vld [vmem:[%s8202_s0 + $0x120] sm:$0xff]   ;;  %v7336_v44 = vld [vmem:[%s8203_s2 + $0x10] sm:$0xff]   ;;  %v6959_v45 = vld [vmem:[%s8202_s0 + $0x128] sm:$0xff]  }
   0xf   :  { %6163 = vmatmul.mubr.msk.bf16.vlgmr.msra.gmra.mrb[0].mxu0 %vm567_vm2, %v6923_v6  ;;  %6342 = vmatprep.subr.bf16.mxu1 %v7336_v44  ;;  %v6960_v46 = vld [vmem:[%s8202_s0 + $0x130] sm:$0xff]   ;;  %v6961_v47 = vld [vmem:[%s8202_s0 + $0x138] sm:$0xff]   ;;  %v6962_v48 = vld [vmem:[%s8202_s0 + $0x140] sm:$0xff]  }
  0x10   :  { %6166 = vmatprep.mubr.msk.bf16.mxu0 %vm567_vm2, %v6924_v7  ;;  %6307 = vmatpush3.bf16.msra.mxu0 %v6972_v24  ;;  %v6963_v49 = vld [vmem:[%s8202_s0 + $0x148] sm:$0xff]   ;;  %v6964_v50 = vld [vmem:[%s8202_s0 + $0x150] sm:$0xff]   ;;  %v6965_v51 = vld [vmem:[%s8202_s0 + $0x158] sm:$0xff]  }
  0x11   :  { %v6966_v52 = vld [vmem:[%s8202_s0 + $0x160] sm:$0xff]   ;;  %v6967_v53 = vld [vmem:[%s8202_s0 + $0x168] sm:$0xff]   ;;  %v6968_v54 = vld [vmem:[%s8202_s0 + $0x170] sm:$0xff]  }
  0x12   :  { %v6969_v55 = vld [vmem:[%s8202_s0 + $0x178] sm:$0xff]   ;;  %v6970_v56 = vld [vmem:[%s8202_s0 + $0x180] sm:$0xff]   ;;  %v6971_v57 = vld [vmem:[%s8202_s0 + $0x188] sm:$0xff]  }
  0x13   :  { %v6973_v58 = vld [vmem:[%s8202_s0 + $0x190] sm:$0xff]   ;;  %v6974_v59 = vld [vmem:[%s8202_s0 + $0x198] sm:$0xff]   ;;  %v6975_v60 = vld [vmem:[%s8202_s0 + $0x1a0] sm:$0xff]  }
  0x14   :  { %v6976_v61 = vld [vmem:[%s8202_s0 + $0x1a8] sm:$0xff]   ;;  %v6977_v62 = vld [vmem:[%s8202_s0 + $0x1b0] sm:$0xff]   ;;  %v6978_v2 = vld [vmem:[%s8202_s0 + $0x1b8] sm:$0xff]  }
  0x15   :  { %v6980_v5 = vld [vmem:[%s8202_s0 + $0x1c0] sm:$0xff]  }
  0x17   :  { %6167 = vmatmul.mubr.msk.bf16.gmra.mrb[4].mxu0 %vm567_vm2, %v6925_v8 }
  0x18   :  { %6170 = vmatprep.mubr.msk.bf16.mxu0 %vm567_vm2, %v6926_v9 }
  0x1f   :  { %6171 = vmatmul.mubr.msk.bf16.gmra.mrb[8].mxu0 %vm567_vm2, %v6927_v10 }
  0x20   :  { %6174 = vmatprep.mubr.msk.bf16.mxu0 %vm567_vm2, %v6928_v11 }
  0x27   :  { %6175 = vmatmul.mubr.msk.bf16.gmra.mrb[12].mxu0 %vm567_vm2, %v6929_v12 }
  0x28   :  { %6178 = vmatprep.mubr.msk.bf16.mxu0 %vm567_vm2, %v6930_v13 }
  0x2f   :  { %6179 = vmatmul.mubr.msk.bf16.gmra.mrb[16].mxu0 %vm567_vm2, %v6931_v14 }
  0x30   :  { %6182 = vmatprep.mubr.msk.bf16.mxu0 %vm567_vm2, %v6932_v15 }
  0x37   :  { %6183 = vmatmul.mubr.msk.bf16.gmra.mrb[20].mxu0 %vm567_vm2, %v6933_v16  ;;  %v7424_v16 = vld [vmem:[%s8203_s2 + $0x18] sm:$0xff]  }
  0x38   :  { %6186 = vmatprep.mubr.msk.bf16.mxu0 %vm567_vm2, %v6934_v17 }
  0x3f   :  { %6187 = vmatmul.mubr.msk.bf16.gmra.mrb[24].mxu0 %vm567_vm2, %v6935_v18 }
  0x40   :  { %6190 = vmatprep.mubr.msk.bf16.mxu0 %vm567_vm2, %v6936_v19  ;;  %v6981_v19 = vld [vmem:[%s8202_s0 + $0x1c8] sm:$0xff]  }
  0x47   :  { %6191 = vmatmul.mubr.msk.bf16.gmra.mrb[28].mxu0 %vm567_vm2, %v6937_v20 }
  0x48   :  { %6194 = vmatprep.mubr.msk.bf16.mxu0 %vm567_vm2, %v6938_v21 }
  0x4f   :  { %6195 = vmatmul.mubr.msk.bf16.gmra.mrb[32].mxu0 %vm567_vm2, %v6939_v22  ;;  %v6982_v22 = vld [vmem:[%s8202_s0 + $0x1d0] sm:$0xff]  }
  0x50   :  { %6198 = vmatprep.mubr.msk.bf16.mxu0 %vm567_vm2, %v6940_v23 }
  0x57   :  { %6199 = vmatmul.mubr.msk.bf16.gmra.mrb[36].mxu0 %vm567_vm2, %v6941_v25 }
  0x58   :  { %6202 = vmatprep.mubr.msk.bf16.mxu0 %vm567_vm2, %v6942_v26 }
  0x5f   :  { %6203 = vmatmul.mubr.msk.bf16.gmra.mrb[40].mxu0 %vm567_vm2, %v6943_v27 }
  0x60   :  { %6206 = vmatprep.mubr.msk.bf16.mxu0 %vm567_vm2, %v6944_v28 }
  0x67   :  { %6207 = vmatmul.mubr.msk.bf16.gmra.mrb[44].mxu0 %vm567_vm2, %v6945_v29 }
  0x68   :  { %6210 = vmatprep.mubr.msk.bf16.mxu0 %vm567_vm2, %v6946_v30 }
  0x6f   :  { %6211 = vmatmul.mubr.msk.bf16.gmra.mrb[48].mxu0 %vm567_vm2, %v6947_v32 }
  0x70   :  { %6214 = vmatprep.mubr.msk.bf16.mxu0 %vm567_vm2, %v6948_v33 }
  0x77   :  { %6215 = vmatmul.mubr.msk.bf16.gmra.mrb[52].mxu0 %vm567_vm2, %v6949_v34 }
  0x78   :  { %6218 = vmatprep.mubr.msk.bf16.mxu0 %vm567_vm2, %v6950_v35  ;;  %v6983_v35 = vld [vmem:[%s8202_s0 + $0x1d8] sm:$0xff]  }
  0x7f   :  { %6219 = vmatmul.mubr.msk.bf16.gmra.mrb[56].mxu0 %vm567_vm2, %v6951_v36 }
  0x80   :  { %6222 = vmatprep.mubr.msk.bf16.mxu0 %vm567_vm2, %v6952_v37 }
  0x87   :  { %6223 = vmatmul.mubr.msk.bf16.gmra.mrb[60].mxu0 %vm567_vm2, %v6953_v38  ;;  %v6984_v38 = vld [vmem:[%s8202_s0 + $0x1e0] sm:$0xff]  }
  0x88   :  { %6226 = vmatprep.mubr.msk.bf16.mxu0 %vm567_vm2, %v6954_v39 }
  0x8f   :  { %6227 = vmatmul.mubr.msk.bf16.gmra.mrb[64].mxu0 %vm567_vm2, %v6955_v40 }
  0x90   :  { %6230 = vmatprep.mubr.msk.bf16.mxu0 %vm567_vm2, %v6956_v41 }
  0x97   :  { %6231 = vmatmul.mubr.msk.bf16.gmra.mrb[68].mxu0 %vm567_vm2, %v6957_v42 }
  0x98   :  { %6234 = vmatprep.mubr.msk.bf16.mxu0 %vm567_vm2, %v6958_v43 }
  0x9f   :  { %6235 = vmatmul.mubr.msk.bf16.gmra.mrb[72].mxu0 %vm567_vm2, %v6959_v45 }
  0xa0   :  { %6238 = vmatprep.mubr.msk.bf16.mxu0 %vm567_vm2, %v6960_v46 }
  0xa7   :  { %6239 = vmatmul.mubr.msk.bf16.gmra.mrb[76].mxu0 %vm567_vm2, %v6961_v47 }
  0xa8   :  { %6242 = vmatprep.mubr.msk.bf16.mxu0 %vm567_vm2, %v6962_v48 }
  0xaf   :  { %6243 = vmatmul.mubr.msk.bf16.gmra.mrb[80].mxu0 %vm567_vm2, %v6963_v49 }
  0xb0   :  { %6246 = vmatprep.mubr.msk.bf16.mxu0 %vm567_vm2, %v6964_v50 }
  0xb7   :  { %6247 = vmatmul.mubr.msk.bf16.gmra.mrb[84].mxu0 %vm567_vm2, %v6965_v51  ;;  %v6985_v51 = vld [vmem:[%s8202_s0 + $0x1e8] sm:$0xff]  }
  0xb8   :  { %6250 = vmatprep.mubr.msk.bf16.mxu0 %vm567_vm2, %v6966_v52 }
  0xbf   :  { %6251 = vmatmul.mubr.msk.bf16.gmra.mrb[88].mxu0 %vm567_vm2, %v6967_v53 }
  0xc0   :  { %6254 = vmatprep.mubr.msk.bf16.mxu0 %vm567_vm2, %v6968_v54  ;;  %v6986_v54 = vld [vmem:[%s8202_s0 + $0x1f0] sm:$0xff]  }
  0xc7   :  { %6255 = vmatmul.mubr.msk.bf16.gmra.mrb[92].mxu0 %vm567_vm2, %v6969_v55 }
  0xc8   :  { %6258 = vmatprep.mubr.msk.bf16.mxu0 %vm567_vm2, %v6970_v56 }
  0xcf   :  { %6259 = vmatmul.mubr.msk.bf16.gmra.mrb[96].mxu0 %vm567_vm2, %v6971_v57 }
  0xd0   :  { %6262 = vmatprep.mubr.msk.bf16.mxu0 %vm567_vm2, %v6973_v58 }
  0xd7   :  { %6263 = vmatmul.mubr.msk.bf16.gmra.mrb[100].mxu0 %vm567_vm2, %v6974_v59 }
  0xd8   :  { %6266 = vmatprep.mubr.msk.bf16.mxu0 %vm567_vm2, %v6975_v60 }
  0xdf   :  { %6267 = vmatmul.mubr.msk.bf16.gmra.mrb[104].mxu0 %vm567_vm2, %v6976_v61 }
  0xe0   :  { %6270 = vmatprep.mubr.msk.bf16.mxu0 %vm567_vm2, %v6977_v62 }
  0xe2   :  { %v6164_v63 = vpop.f32.mrb[0].mxu0 }
  0xe3   :  { %v1546_v0 = vmul.f32 0.2, %v6164_v63  ;;  %v825_v1 = vpop.f32.mrb[1].mxu0  ;;  %vm1402_vm3 = vcmp.gt.f32.partialorder %v6164_v63, 0.0 }
  0xe4   :  { %v1544_v3 = vmul.f32 0.2, %v825_v1  ;;  %v6165_v4 = vpop.f32.mrb[2].mxu0  ;;  %vm1400_vm4 = vcmp.gt.f32.partialorder %v825_v1, 0.0 }
  0xe5   :  { %vm1403_vm5 = vcmp.gt.f32.partialorder %v6165_v4, 0.0  ;;  %v1547_v6 = vmul.f32 0.2, %v6165_v4  ;;  %v828_v7 = vpop.f32.mrb[3].mxu0  ;;  %v1690_v9 = vsel %vm1402_vm3, %v6164_v63, %v1546_v0 }
  0xe6   :  { %vm1401_vm6 = vcmp.gt.f32.partialorder %v828_v7, 0.0  ;;  %v1545_v8 = vmul.f32 0.2, %v828_v7  ;;  %v1688_v12 = vsel %vm1400_vm4, %v825_v1, %v1544_v3  ;;  %v6987_v3 = vld [vmem:[%s8202_s0 + $0x1f8] sm:$0xff]  }
  0xe7   :  { %v1691_v10 = vsel %vm1403_vm5, %v6165_v4, %v1547_v6  ;;  %6271 = vmatmul.mubr.msk.bf16.gmra.mrb[108].mxu0 %vm567_vm2, %v6978_v2  ;;  %v6988_v6 = vld [vmem:[%s8202_s0 + $0x200] sm:$0xff]  }
  0xe8   :  { %v1833_v11 = vpack.c.bf16 %v1691_v10, %v1690_v9  ;;  %v1689_v13 = vsel %vm1401_vm6, %v828_v7, %v1545_v8  ;;  %6274 = vmatprep.mubr.msk.bf16.mxu0 %vm567_vm2, %v6980_v5 }
  0xe9   :  { %v1832_v14 = vpack.c.bf16 %v1689_v13, %v1688_v12 }
  0xea   :  { %v6168_v15 = vpop.f32.mrb[4].mxu0 }
  0xeb   :  { %v1550_v17 = vmul.f32 0.2, %v6168_v15  ;;  %v841_v18 = vpop.f32.mrb[5].mxu0  ;;  %6326 = vmatprep.mubr.msk.bf16.mxu1 %vm1915_vm7, %v1832_v14  ;;  %vm1406_vm8 = vcmp.gt.f32.partialorder %v6168_v15, 0.0 }
  0xec   :  { %v1548_v20 = vmul.f32 0.2, %v841_v18  ;;  %v6169_v21 = vpop.f32.mrb[6].mxu0  ;;  %6327 = vmatmul.mubr.msk.bf16.vlgmr.msra.gmra.mrb[0].mxu1 %vm1915_vm7, %v1833_v11  ;;  %vm1404_vm9 = vcmp.gt.f32.partialorder %v841_v18, 0.0 }
  0xed   :  { %vm1407_vm10 = vcmp.gt.f32.partialorder %v6169_v21, 0.0  ;;  %v1551_v23 = vmul.f32 0.2, %v6169_v21  ;;  %v844_v24 = vpop.f32.mrb[7].mxu0  ;;  %6343 = vmatpush3.bf16.msra.mxu1 %v7336_v44  ;;  %v1694_v26 = vsel %vm1406_vm8, %v6168_v15, %v1550_v17 }
  0xee   :  { %vm1405_vm11 = vcmp.gt.f32.partialorder %v844_v24, 0.0  ;;  %v1549_v25 = vmul.f32 0.2, %v844_v24  ;;  %6360 = vmatprep.subr.bf16.mxu1 %v7424_v16  ;;  %v1692_v28 = vsel %vm1404_vm9, %v841_v18, %v1548_v20  ;;  %v6989_v20 = vld [vmem:[%s8202_s0 + $0x208] sm:$0xff]  }
  0xef   :  { %v1695_v27 = vsel %vm1407_vm10, %v6169_v21, %v1551_v23  ;;  %6275 = vmatmul.mubr.msk.bf16.gmra.mrb[112].mxu0 %vm567_vm2, %v6981_v19  ;;  %v6991_v23 = vld [vmem:[%s8202_s0 + $0x210] sm:$0xff]  }
  0xf0   :  { %v1835_v29 = vpack.c.bf16 %v1695_v27, %v1694_v26  ;;  %v1693_v30 = vsel %vm1405_vm11, %v844_v24, %v1549_v25  ;;  %6278 = vmatprep.mubr.msk.bf16.mxu0 %vm567_vm2, %v6982_v22 }
  0xf1   :  { %v1834_v31 = vpack.c.bf16 %v1693_v30, %v1692_v28 }
  0xf2   :  { %v6172_v32 = vpop.f32.mrb[8].mxu0 }
  0xf3   :  { %v1554_v33 = vmul.f32 0.2, %v6172_v32  ;;  %v857_v34 = vpop.f32.mrb[9].mxu0  ;;  %6330 = vmatprep.mubr.msk.bf16.mxu1 %vm1915_vm7, %v1834_v31  ;;  %vm1410_vm12 = vcmp.gt.f32.partialorder %v6172_v32, 0.0 }
  0xf4   :  { %v1552_v36 = vmul.f32 0.2, %v857_v34  ;;  %v6173_v37 = vpop.f32.mrb[10].mxu0  ;;  %6331 = vmatmul.mubr.msk.bf16.gmra.mrb[4].mxu1 %vm1915_vm7, %v1835_v29  ;;  %vm1408_vm13 = vcmp.gt.f32.partialorder %v857_v34, 0.0 }
  0xf5   :  { %vm1411_vm14 = vcmp.gt.f32.partialorder %v6173_v37, 0.0  ;;  %v1555_v39 = vmul.f32 0.2, %v6173_v37  ;;  %v860_v40 = vpop.f32.mrb[11].mxu0  ;;  %v1698_v42 = vsel %vm1410_vm12, %v6172_v32, %v1554_v33 }
  0xf6   :  { %vm1409_vm15 = vcmp.gt.f32.partialorder %v860_v40, 0.0  ;;  %v1553_v41 = vmul.f32 0.2, %v860_v40  ;;  %v1696_v44 = vsel %vm1408_vm13, %v857_v34, %v1552_v36  ;;  %v6992_v36 = vld [vmem:[%s8202_s0 + $0x218] sm:$0xff]  }
  0xf7   :  { %v1699_v43 = vsel %vm1411_vm14, %v6173_v37, %v1555_v39  ;;  %6279 = vmatmul.mubr.msk.bf16.gmra.mrb[116].mxu0 %vm567_vm2, %v6983_v35  ;;  %v6993_v39 = vld [vmem:[%s8202_s0 + $0x220] sm:$0xff]  }
  0xf8   :  { %v1837_v45 = vpack.c.bf16 %v1699_v43, %v1698_v42  ;;  %v1697_v46 = vsel %vm1409_vm15, %v860_v40, %v1553_v41  ;;  %6282 = vmatprep.mubr.msk.bf16.mxu0 %vm567_vm2, %v6984_v38 }
  0xf9   :  { %v1836_v47 = vpack.c.bf16 %v1697_v46, %v1696_v44 }
  0xfa   :  { %v6176_v48 = vpop.f32.mrb[12].mxu0 }
  0xfb   :  { %v1558_v49 = vmul.f32 0.2, %v6176_v48  ;;  %v873_v50 = vpop.f32.mrb[13].mxu0  ;;  %6334 = vmatprep.mubr.msk.bf16.mxu1 %vm1915_vm7, %v1836_v47  ;;  %vm1414_vm0 = vcmp.gt.f32.partialorder %v6176_v48, 0.0 }
  0xfc   :  { %v1556_v52 = vmul.f32 0.2, %v873_v50  ;;  %v6177_v53 = vpop.f32.mrb[14].mxu0  ;;  %6335 = vmatmul.mubr.msk.bf16.gmra.mrb[8].mxu1 %vm1915_vm7, %v1837_v45  ;;  %vm1412_vm1 = vcmp.gt.f32.partialorder %v873_v50, 0.0 }
  0xfd   :  { %vm1415_vm3 = vcmp.gt.f32.partialorder %v6177_v53, 0.0  ;;  %v1559_v55 = vmul.f32 0.2, %v6177_v53  ;;  %v876_v56 = vpop.f32.mrb[15].mxu0  ;;  %v1702_v58 = vsel %vm1414_vm0, %v6176_v48, %v1558_v49 }
  0xfe   :  { %vm1413_vm4 = vcmp.gt.f32.partialorder %v876_v56, 0.0  ;;  %v1557_v57 = vmul.f32 0.2, %v876_v56  ;;  %v1700_v60 = vsel %vm1412_vm1, %v873_v50, %v1556_v52  ;;  %v6994_v52 = vld [vmem:[%s8202_s0 + $0x228] sm:$0xff]  }
  0xff   :  { %v1703_v59 = vsel %vm1415_vm3, %v6177_v53, %v1559_v55  ;;  %6283 = vmatmul.mubr.msk.bf16.gmra.mrb[120].mxu0 %vm567_vm2, %v6985_v51  ;;  %v6995_v55 = vld [vmem:[%s8202_s0 + $0x230] sm:$0xff]  }
 0x100   :  { %v1839_v61 = vpack.c.bf16 %v1703_v59, %v1702_v58  ;;  %v1701_v62 = vsel %vm1413_vm4, %v876_v56, %v1557_v57  ;;  %6286 = vmatprep.mubr.msk.bf16.mxu0 %vm567_vm2, %v6986_v54 }
 0x101   :  { %v1838_v63 = vpack.c.bf16 %v1701_v62, %v1700_v60 }
 0x102   :  { %v6180_v0 = vpop.f32.mrb[16].mxu0 }
 0x103   :  { %v1562_v1 = vmul.f32 0.2, %v6180_v0  ;;  %v889_v2 = vpop.f32.mrb[17].mxu0  ;;  %6338 = vmatprep.mubr.msk.bf16.mxu1 %vm1915_vm7, %v1838_v63  ;;  %vm1418_vm5 = vcmp.gt.f32.partialorder %v6180_v0, 0.0 }
 0x104   :  { %v1560_v4 = vmul.f32 0.2, %v889_v2  ;;  %v6181_v5 = vpop.f32.mrb[18].mxu0  ;;  %6339 = vmatmul.mubr.msk.bf16.gmra.mrb[12].mxu1 %vm1915_vm7, %v1839_v61  ;;  %vm1416_vm6 = vcmp.gt.f32.partialorder %v889_v2, 0.0 }
 0x105   :  { %vm1419_vm8 = vcmp.gt.f32.partialorder %v6181_v5, 0.0  ;;  %v1563_v7 = vmul.f32 0.2, %v6181_v5  ;;  %v892_v8 = vpop.f32.mrb[19].mxu0  ;;  %v7466_v10 = vsel %vm1418_vm5, %v6180_v0, %v1562_v1 }
 0x106   :  { %vm1417_vm9 = vcmp.gt.f32.partialorder %v892_v8, 0.0  ;;  %v1561_v9 = vmul.f32 0.2, %v892_v8  ;;  %v7471_v12 = vsel %vm1416_vm6, %v889_v2, %v1560_v4  ;;  %v6996_v4 = vld [vmem:[%s8202_s0 + $0x238] sm:$0xff]  }
 0x107   :  { %v7468_v11 = vsel %vm1419_vm8, %v6181_v5, %v1563_v7  ;;  %6287 = vmatmul.mubr.msk.bf16.gmra.mrb[124].mxu0 %vm567_vm2, %v6987_v3 }
 0x108   :  { %v1841_v13 = vpack.c.bf16 %v7468_v11, %v7466_v10  ;;  %v7475_v14 = vsel %vm1417_vm9, %v892_v8, %v1561_v9  ;;  %6290 = vmatprep.mubr.msk.bf16.mxu0 %vm567_vm2, %v6988_v6 }
 0x109   :  { %v1840_v15 = vpack.c.bf16 %v7475_v14, %v7471_v12 }
 0x10a   :  { %v6184_v17 = vpop.f32.mrb[20].mxu0 }
 0x10b   :  { %v1566_v18 = vmul.f32 0.2, %v6184_v17  ;;  %v905_v19 = vpop.f32.mrb[21].mxu0  ;;  %vm1422_vm10 = vcmp.gt.f32.partialorder %v6184_v17, 0.0 }
 0x10c   :  { %v1564_v21 = vmul.f32 0.2, %v905_v19  ;;  %v6185_v22 = vpop.f32.mrb[22].mxu0  ;;  %vm1420_vm11 = vcmp.gt.f32.partialorder %v905_v19, 0.0 }
 0x10d   :  { %vm1423_vm12 = vcmp.gt.f32.partialorder %v6185_v22, 0.0  ;;  %v1567_v24 = vmul.f32 0.2, %v6185_v22  ;;  %v908_v25 = vpop.f32.mrb[23].mxu0  ;;  %v7486_v27 = vsel %vm1422_vm10, %v6184_v17, %v1566_v18 }
 0x10e   :  { %vm1421_vm13 = vcmp.gt.f32.partialorder %v908_v25, 0.0  ;;  %v1565_v26 = vmul.f32 0.2, %v908_v25  ;;  %v7491_v29 = vsel %vm1420_vm11, %v905_v19, %v1564_v21 }
 0x10f   :  { %v7488_v28 = vsel %vm1423_vm12, %v6185_v22, %v1567_v24  ;;  %6291 = vmatmul.mubr.msk.bf16.gmra.mrb[128].mxu0 %vm567_vm2, %v6989_v20  ;;  %v7551_v24 = vld [vmem:[%s8203_s2 + $0x20] sm:$0xff]  }
 0x110   :  { %v1843_v30 = vpack.c.bf16 %v7488_v28, %v7486_v27  ;;  %v7495_v31 = vsel %vm1421_vm13, %v908_v25, %v1565_v26  ;;  %6294 = vmatprep.mubr.msk.bf16.mxu0 %vm567_vm2, %v6991_v23 }
 0x111   :  { %v1842_v32 = vpack.c.bf16 %v7495_v31, %v7491_v29 }
 0x112   :  { %v6188_v33 = vpop.f32.mrb[24].mxu0 }
 0x113   :  { %v1570_v34 = vmul.f32 0.2, %v6188_v33  ;;  %v921_v35 = vpop.f32.mrb[25].mxu0  ;;  %vm1426_vm14 = vcmp.gt.f32.partialorder %v6188_v33, 0.0 }
 0x114   :  { %v1568_v37 = vmul.f32 0.2, %v921_v35  ;;  %v6189_v38 = vpop.f32.mrb[26].mxu0  ;;  %vm1424_vm15 = vcmp.gt.f32.partialorder %v921_v35, 0.0 }
 0x115   :  { %vm1427_vm0 = vcmp.gt.f32.partialorder %v6189_v38, 0.0  ;;  %v1571_v40 = vmul.f32 0.2, %v6189_v38  ;;  %v924_v41 = vpop.f32.mrb[27].mxu0  ;;  %v7506_v43 = vsel %vm1426_vm14, %v6188_v33, %v1570_v34 }
 0x116   :  { %vm1425_vm1 = vcmp.gt.f32.partialorder %v924_v41, 0.0  ;;  %v1569_v42 = vmul.f32 0.2, %v924_v41  ;;  %v7511_v45 = vsel %vm1424_vm15, %v921_v35, %v1568_v37 }
 0x117   :  { %v7508_v44 = vsel %vm1427_vm0, %v6189_v38, %v1571_v40  ;;  %6295 = vmatmul.mubr.msk.bf16.gmra.mrb[132].mxu0 %vm567_vm2, %v6992_v36 }
 0x118   :  { %v1845_v46 = vpack.c.bf16 %v7508_v44, %v7506_v43  ;;  %v7515_v47 = vsel %vm1425_vm1, %v924_v41, %v1569_v42  ;;  %6298 = vmatprep.mubr.msk.bf16.mxu0 %vm567_vm2, %v6993_v39 }
 0x119   :  { %v1844_v48 = vpack.c.bf16 %v7515_v47, %v7511_v45 }
 0x11a   :  { %v6192_v49 = vpop.f32.mrb[28].mxu0 }
 0x11b   :  { %v1574_v50 = vmul.f32 0.2, %v6192_v49  ;;  %v937_v51 = vpop.f32.mrb[29].mxu0  ;;  %vm1430_vm3 = vcmp.gt.f32.partialorder %v6192_v49, 0.0 }
 0x11c   :  { %v1572_v53 = vmul.f32 0.2, %v937_v51  ;;  %v6193_v54 = vpop.f32.mrb[30].mxu0  ;;  %vm1428_vm4 = vcmp.gt.f32.partialorder %v937_v51, 0.0 }
 0x11d   :  { %vm1431_vm5 = vcmp.gt.f32.partialorder %v6193_v54, 0.0  ;;  %v1575_v56 = vmul.f32 0.2, %v6193_v54  ;;  %v940_v57 = vpop.f32.mrb[31].mxu0  ;;  %v7526_v59 = vsel %vm1430_vm3, %v6192_v49, %v1574_v50 }
 0x11e   :  { %vm1429_vm6 = vcmp.gt.f32.partialorder %v940_v57, 0.0  ;;  %v1573_v58 = vmul.f32 0.2, %v940_v57  ;;  %v7531_v61 = vsel %vm1428_vm4, %v937_v51, %v1572_v53 }
 0x11f   :  { %v7528_v60 = vsel %vm1431_vm5, %v6193_v54, %v1575_v56  ;;  %6299 = vmatmul.mubr.msk.bf16.gmra.mrb[136].mxu0 %vm567_vm2, %v6994_v52 }
 0x120   :  { %v1847_v62 = vpack.c.bf16 %v7528_v60, %v7526_v59  ;;  %v7535_v63 = vsel %vm1429_vm6, %v940_v57, %v1573_v58  ;;  %6302 = vmatprep.mubr.msk.bf16.mxu0 %vm567_vm2, %v6995_v55 }
 0x121   :  { %v1846_v0 = vpack.c.bf16 %v7535_v63, %v7531_v61 }
 0x122   :  { %v6196_v1 = vpop.f32.mrb[32].mxu0 }
 0x123   :  { %v1578_v2 = vmul.f32 0.2, %v6196_v1  ;;  %v953_v3 = vpop.f32.mrb[33].mxu0  ;;  %vm1434_vm8 = vcmp.gt.f32.partialorder %v6196_v1, 0.0 }
 0x124   :  { %v1576_v5 = vmul.f32 0.2, %v953_v3  ;;  %v6197_v6 = vpop.f32.mrb[34].mxu0  ;;  %vm1432_vm9 = vcmp.gt.f32.partialorder %v953_v3, 0.0 }
 0x125   :  { %vm1435_vm10 = vcmp.gt.f32.partialorder %v6197_v6, 0.0  ;;  %v1579_v7 = vmul.f32 0.2, %v6197_v6  ;;  %v956_v8 = vpop.f32.mrb[35].mxu0  ;;  %v1722_v17 = vsel %vm1434_vm8, %v6196_v1, %v1578_v2 }
 0x126   :  { %vm1433_vm11 = vcmp.gt.f32.partialorder %v956_v8, 0.0  ;;  %v1577_v9 = vmul.f32 0.2, %v956_v8  ;;  %v1720_v19 = vsel %vm1432_vm9, %v953_v3, %v1576_v5 }
 0x127   :  { %v1723_v18 = vsel %vm1435_vm10, %v6197_v6, %v1579_v7  ;;  %6303 = vmatmul.mubr.msk.bf16.gmra.mrb[140].mxu0 %vm567_vm2, %v6996_v4 }
 0x128   :  { %v1849_v20 = vpack.c.bf16 %v1723_v18, %v1722_v17  ;;  %v1721_v21 = vsel %vm1433_vm11, %v956_v8, %v1577_v9  ;;  %6308 = vmatprep.mubr.msk.bf16.mxu0 %vm1915_vm7, %v1840_v15 }
 0x129   :  { %v1848_v22 = vpack.c.bf16 %v1721_v21, %v1720_v19 }
 0x12a   :  { %v6200_v23 = vpop.f32.mrb[36].mxu0 }
 0x12b   :  { %v1582_v25 = vmul.f32 0.2, %v6200_v23  ;;  %v969_v26 = vpop.f32.mrb[37].mxu0  ;;  %6344 = vmatprep.mubr.msk.bf16.mxu1 %vm1915_vm7, %v1848_v22  ;;  %vm1438_vm2 = vcmp.gt.f32.partialorder %v6200_v23, 0.0 }
 0x12c   :  { %v1580_v33 = vmul.f32 0.2, %v969_v26  ;;  %v6201_v34 = vpop.f32.mrb[38].mxu0  ;;  %6345 = vmatmul.mubr.msk.bf16.vlgmr.msra.gmra.mrb[0].mxu1 %vm1915_vm7, %v1849_v20  ;;  %vm1436_vm12 = vcmp.gt.f32.partialorder %v969_v26, 0.0  ;;  %v7594_v20 = vld [vmem:[%s8203_s2 + $0x28] sm:$0xff]  }
 0x12d   :  { %vm1439_vm13 = vcmp.gt.f32.partialorder %v6201_v34, 0.0  ;;  %v1583_v12 = vmul.f32 0.2, %v6201_v34  ;;  %v972_v14 = vpop.f32.mrb[39].mxu0  ;;  %6361 = vmatpush3.bf16.msra.mxu1 %v7424_v16  ;;  %v1726_v35 = vsel %vm1438_vm2, %v6200_v23, %v1582_v25 }
 0x12e   :  { %vm1437_vm14 = vcmp.gt.f32.partialorder %v972_v14, 0.0  ;;  %v1581_v15 = vmul.f32 0.2, %v972_v14  ;;  %6378 = vmatprep.subr.bf16.mxu1 %v7551_v24  ;;  %v1724_v37 = vsel %vm1436_vm12, %v969_v26, %v1580_v33 }
 0x12f   :  { %v1727_v36 = vsel %vm1439_vm13, %v6201_v34, %v1583_v12  ;;  %6309 = vmatmul.mubr.msk.bf16.vlgmr.msra.gmra.mrb[144].mxu0 %vm1915_vm7, %v1841_v13 }
 0x130   :  { %v1851_v38 = vpack.c.bf16 %v1727_v36, %v1726_v35  ;;  %v1725_v39 = vsel %vm1437_vm14, %v972_v14, %v1581_v15  ;;  %6312 = vmatprep.mubr.msk.bf16.mxu0 %vm1915_vm7, %v1842_v32 }
 0x131   :  { %v1850_v16 = vpack.c.bf16 %v1725_v39, %v1724_v37 }
 0x132   :  { %v6204_v40 = vpop.f32.mrb[40].mxu0 }
 0x133   :  { %v1586_v41 = vmul.f32 0.2, %v6204_v40  ;;  %v985_v42 = vpop.f32.mrb[41].mxu0  ;;  %6348 = vmatprep.mubr.msk.bf16.mxu1 %vm1915_vm7, %v1850_v16  ;;  %vm1442_vm15 = vcmp.gt.f32.partialorder %v6204_v40, 0.0 }
 0x134   :  { %v1584_v49 = vmul.f32 0.2, %v985_v42  ;;  %v6205_v50 = vpop.f32.mrb[42].mxu0  ;;  %6349 = vmatmul.mubr.msk.bf16.gmra.mrb[4].mxu1 %vm1915_vm7, %v1851_v38  ;;  %vm1440_vm0 = vcmp.gt.f32.partialorder %v985_v42, 0.0 }
 0x135   :  { %vm1443_vm1 = vcmp.gt.f32.partialorder %v6205_v50, 0.0  ;;  %v1587_v10 = vmul.f32 0.2, %v6205_v50  ;;  %v988_v11 = vpop.f32.mrb[43].mxu0  ;;  %v1730_v29 = vsel %vm1442_vm15, %v6204_v40, %v1586_v41 }
 0x136   :  { %vm1441_vm3 = vcmp.gt.f32.partialorder %v988_v11, 0.0  ;;  %v1585_v13 = vmul.f32 0.2, %v988_v11  ;;  %v1728_v32 = vsel %vm1440_vm0, %v985_v42, %v1584_v49 }
 0x137   :  { %v1731_v31 = vsel %vm1443_vm1, %v6205_v50, %v1587_v10  ;;  %6313 = vmatmul.mubr.msk.bf16.gmra.mrb[148].mxu0 %vm1915_vm7, %v1843_v30 }
 0x138   :  { %v1853_v51 = vpack.c.bf16 %v1731_v31, %v1730_v29  ;;  %v1729_v52 = vsel %vm1441_vm3, %v988_v11, %v1585_v13  ;;  %6316 = vmatprep.mubr.msk.bf16.mxu0 %vm1915_vm7, %v1844_v48 }
 0x139   :  { %v1852_v53 = vpack.c.bf16 %v1729_v52, %v1728_v32 }
 0x13a   :  { %v6208_v54 = vpop.f32.mrb[44].mxu0 }
 0x13b   :  { %v1590_v55 = vmul.f32 0.2, %v6208_v54  ;;  %v1001_v56 = vpop.f32.mrb[45].mxu0  ;;  %6352 = vmatprep.mubr.msk.bf16.mxu1 %vm1915_vm7, %v1852_v53  ;;  %vm1446_vm4 = vcmp.gt.f32.partialorder %v6208_v54, 0.0 }
 0x13c   :  { %v1588_v57 = vmul.f32 0.2, %v1001_v56  ;;  %v6209_v58 = vpop.f32.mrb[46].mxu0  ;;  %6353 = vmatmul.mubr.msk.bf16.gmra.mrb[8].mxu1 %vm1915_vm7, %v1853_v51  ;;  %vm1444_vm5 = vcmp.gt.f32.partialorder %v1001_v56, 0.0 }
 0x13d   :  { %vm1447_vm6 = vcmp.gt.f32.partialorder %v6209_v58, 0.0  ;;  %v1591_v27 = vmul.f32 0.2, %v6209_v58  ;;  %v1004_v28 = vpop.f32.mrb[47].mxu0  ;;  %v1734_v45 = vsel %vm1446_vm4, %v6208_v54, %v1590_v55 }
 0x13e   :  { %vm1445_vm8 = vcmp.gt.f32.partialorder %v1004_v28, 0.0  ;;  %v1589_v30 = vmul.f32 0.2, %v1004_v28  ;;  %v1732_v48 = vsel %vm1444_vm5, %v1001_v56, %v1588_v57 }
 0x13f   :  { %v1735_v47 = vsel %vm1447_vm6, %v6209_v58, %v1591_v27  ;;  %6317 = vmatmul.mubr.msk.bf16.gmra.mrb[152].mxu0 %vm1915_vm7, %v1845_v46 }
 0x140   :  { %v1855_v1 = vpack.c.bf16 %v1735_v47, %v1734_v45  ;;  %v1733_v2 = vsel %vm1445_vm8, %v1004_v28, %v1589_v30  ;;  %6320 = vmatprep.mubr.msk.bf16.mxu0 %vm1915_vm7, %v1846_v0 }
 0x141   :  { %v1854_v3 = vpack.c.bf16 %v1733_v2, %v1732_v48 }
 0x142   :  { %v6212_v4 = vpop.f32.mrb[48].mxu0 }
 0x143   :  { %v1594_v5 = vmul.f32 0.2, %v6212_v4  ;;  %v1017_v6 = vpop.f32.mrb[49].mxu0  ;;  %6356 = vmatprep.mubr.msk.bf16.mxu1 %vm1915_vm7, %v1854_v3  ;;  %vm1450_vm9 = vcmp.gt.f32.partialorder %v6212_v4, 0.0 }
 0x144   :  { %v1592_v7 = vmul.f32 0.2, %v1017_v6  ;;  %v6213_v8 = vpop.f32.mrb[50].mxu0  ;;  %6357 = vmatmul.mubr.msk.bf16.gmra.mrb[12].mxu1 %vm1915_vm7, %v1855_v1  ;;  %vm1448_vm10 = vcmp.gt.f32.partialorder %v1017_v6, 0.0 }
 0x145   :  { %vm1451_vm11 = vcmp.gt.f32.partialorder %v6213_v8, 0.0  ;;  %v1595_v43 = vmul.f32 0.2, %v6213_v8  ;;  %v1020_v44 = vpop.f32.mrb[51].mxu0  ;;  %v1738_v61 = vsel %vm1450_vm9, %v6212_v4, %v1594_v5 }
 0x146   :  { %vm1449_vm2 = vcmp.gt.f32.partialorder %v1020_v44, 0.0  ;;  %v1593_v46 = vmul.f32 0.2, %v1020_v44  ;;  %v1736_v0 = vsel %vm1448_vm10, %v1017_v6, %v1592_v7 }
 0x147   :  { %v1739_v63 = vsel %vm1451_vm11, %v6213_v8, %v1595_v43  ;;  %6321 = vmatmul.mubr.msk.bf16.gmra.mrb[156].mxu0 %vm1915_vm7, %v1847_v62 }
 0x148   :  { %v1857_v9 = vpack.c.bf16 %v1739_v63, %v1738_v61  ;;  %v1737_v17 = vsel %vm1449_vm2, %v1020_v44, %v1593_v46  ;;  %v7609_v61 = vld [vmem:[%s8203_s2 + $0x30] sm:$0xff]  }
 0x149   :  { %v1856_v18 = vpack.c.bf16 %v1737_v17, %v1736_v0 }
 0x14a   :  { %v6216_v19 = vpop.f32.mrb[52].mxu0 }
 0x14b   :  { %v1598_v21 = vmul.f32 0.2, %v6216_v19  ;;  %v1033_v22 = vpop.f32.mrb[53].mxu0  ;;  %6362 = vmatprep.mubr.msk.bf16.mxu1 %vm1915_vm7, %v1856_v18  ;;  %vm1454_vm12 = vcmp.gt.f32.partialorder %v6216_v19, 0.0 }
 0x14c   :  { %v1596_v23 = vmul.f32 0.2, %v1033_v22  ;;  %v6217_v25 = vpop.f32.mrb[54].mxu0  ;;  %6363 = vmatmul.mubr.msk.bf16.vlgmr.msra.gmra.mrb[0].mxu1 %vm1915_vm7, %v1857_v9  ;;  %vm1452_vm13 = vcmp.gt.f32.partialorder %v1033_v22, 0.0 }
 0x14d   :  { %vm1455_vm14 = vcmp.gt.f32.partialorder %v6217_v25, 0.0  ;;  %v1599_v59 = vmul.f32 0.2, %v6217_v25  ;;  %v1036_v60 = vpop.f32.mrb[55].mxu0  ;;  %6379 = vmatpush3.bf16.msra.mxu1 %v7551_v24  ;;  %v1742_v26 = vsel %vm1454_vm12, %v6216_v19, %v1598_v21 }
 0x14e   :  { %vm1453_vm15 = vcmp.gt.f32.partialorder %v1036_v60, 0.0  ;;  %v1597_v62 = vmul.f32 0.2, %v1036_v60  ;;  %6396 = vmatprep.subr.bf16.mxu1 %v7594_v20  ;;  %v1740_v34 = vsel %vm1452_vm13, %v1033_v22, %v1596_v23 }
 0x14f   :  { %v1743_v33 = vsel %vm1455_vm14, %v6217_v25, %v1599_v59 }
 0x150   :  { %v1859_v12 = vpack.c.bf16 %v1743_v33, %v1742_v26  ;;  %v1741_v14 = vsel %vm1453_vm15, %v1036_v60, %v1597_v62 }
 0x151   :  { %v1858_v15 = vpack.c.bf16 %v1741_v14, %v1740_v34 }
 0x152   :  { %v6220_v35 = vpop.f32.mrb[56].mxu0 }
 0x153   :  { %v1602_v36 = vmul.f32 0.2, %v6220_v35  ;;  %v1049_v37 = vpop.f32.mrb[57].mxu0  ;;  %6366 = vmatprep.mubr.msk.bf16.mxu1 %vm1915_vm7, %v1858_v15  ;;  %vm1458_vm0 = vcmp.gt.f32.partialorder %v6220_v35, 0.0 }
 0x154   :  { %v1600_v38 = vmul.f32 0.2, %v1049_v37  ;;  %v6221_v39 = vpop.f32.mrb[58].mxu0  ;;  %6367 = vmatmul.mubr.msk.bf16.gmra.mrb[4].mxu1 %vm1915_vm7, %v1859_v12  ;;  %vm1456_vm1 = vcmp.gt.f32.partialorder %v1049_v37, 0.0 }
 0x155   :  { %vm1459_vm3 = vcmp.gt.f32.partialorder %v6221_v39, 0.0  ;;  %v1603_v24 = vmul.f32 0.2, %v6221_v39  ;;  %v1052_v16 = vpop.f32.mrb[59].mxu0  ;;  %v1746_v41 = vsel %vm1458_vm0, %v6220_v35, %v1602_v36 }
 0x156   :  { %vm1457_vm4 = vcmp.gt.f32.partialorder %v1052_v16, 0.0  ;;  %v1601_v40 = vmul.f32 0.2, %v1052_v16  ;;  %v1744_v49 = vsel %vm1456_vm1, %v1049_v37, %v1600_v38 }
 0x157   :  { %v1747_v42 = vsel %vm1459_vm3, %v6221_v39, %v1603_v24 }
 0x158   :  { %v1861_v50 = vpack.c.bf16 %v1747_v42, %v1746_v41  ;;  %v1745_v10 = vsel %vm1457_vm4, %v1052_v16, %v1601_v40 }
 0x159   :  { %v1860_v11 = vpack.c.bf16 %v1745_v10, %v1744_v49 }
 0x15a   :  { %v6224_v13 = vpop.f32.mrb[60].mxu0 }
 0x15b   :  { %v1606_v29 = vmul.f32 0.2, %v6224_v13  ;;  %v1065_v31 = vpop.f32.mrb[61].mxu0  ;;  %6370 = vmatprep.mubr.msk.bf16.mxu1 %vm1915_vm7, %v1860_v11  ;;  %vm1462_vm5 = vcmp.gt.f32.partialorder %v6224_v13, 0.0 }
 0x15c   :  { %v1604_v32 = vmul.f32 0.2, %v1065_v31  ;;  %v6225_v51 = vpop.f32.mrb[62].mxu0  ;;  %6371 = vmatmul.mubr.msk.bf16.gmra.mrb[8].mxu1 %vm1915_vm7, %v1861_v50  ;;  %vm1460_vm6 = vcmp.gt.f32.partialorder %v1065_v31, 0.0 }
 0x15d   :  { %vm1463_vm8 = vcmp.gt.f32.partialorder %v6225_v51, 0.0  ;;  %v1607_v52 = vmul.f32 0.2, %v6225_v51  ;;  %v1068_v53 = vpop.f32.mrb[63].mxu0  ;;  %v1750_v55 = vsel %vm1462_vm5, %v6224_v13, %v1606_v29 }
 0x15e   :  { %vm1461_vm9 = vcmp.gt.f32.partialorder %v1068_v53, 0.0  ;;  %v1605_v54 = vmul.f32 0.2, %v1068_v53  ;;  %v1748_v57 = vsel %vm1460_vm6, %v1065_v31, %v1604_v32 }
 0x15f   :  { %v1751_v56 = vsel %vm1463_vm8, %v6225_v51, %v1607_v52 }
 0x160   :  { %v1863_v58 = vpack.c.bf16 %v1751_v56, %v1750_v55  ;;  %v1749_v27 = vsel %vm1461_vm9, %v1068_v53, %v1605_v54 }
 0x161   :  { %v1862_v28 = vpack.c.bf16 %v1749_v27, %v1748_v57 }
 0x162   :  { %v6228_v30 = vpop.f32.mrb[64].mxu0 }
 0x163   :  { %v1610_v45 = vmul.f32 0.2, %v6228_v30  ;;  %v1081_v47 = vpop.f32.mrb[65].mxu0  ;;  %6374 = vmatprep.mubr.msk.bf16.mxu1 %vm1915_vm7, %v1862_v28  ;;  %vm1466_vm10 = vcmp.gt.f32.partialorder %v6228_v30, 0.0 }
 0x164   :  { %v1608_v48 = vmul.f32 0.2, %v1081_v47  ;;  %v6229_v1 = vpop.f32.mrb[66].mxu0  ;;  %6375 = vmatmul.mubr.msk.bf16.gmra.mrb[12].mxu1 %vm1915_vm7, %v1863_v58  ;;  %vm1464_vm11 = vcmp.gt.f32.partialorder %v1081_v47, 0.0 }
 0x165   :  { %vm1467_vm2 = vcmp.gt.f32.partialorder %v6229_v1, 0.0  ;;  %v1611_v2 = vmul.f32 0.2, %v6229_v1  ;;  %v1084_v3 = vpop.f32.mrb[67].mxu0  ;;  %v1754_v5 = vsel %vm1466_vm10, %v6228_v30, %v1610_v45 }
 0x166   :  { %vm1465_vm12 = vcmp.gt.f32.partialorder %v1084_v3, 0.0  ;;  %v1609_v4 = vmul.f32 0.2, %v1084_v3  ;;  %v1752_v7 = vsel %vm1464_vm11, %v1081_v47, %v1608_v48 }
 0x167   :  { %v1755_v6 = vsel %vm1467_vm2, %v6229_v1, %v1611_v2 }
 0x168   :  { %v1865_v8 = vpack.c.bf16 %v1755_v6, %v1754_v5  ;;  %v1753_v43 = vsel %vm1465_vm12, %v1084_v3, %v1609_v4  ;;  %v7624_v5 = vld [vmem:[%s8203_s2 + $0x38] sm:$0xff]  }
 0x169   :  { %v1864_v44 = vpack.c.bf16 %v1753_v43, %v1752_v7 }
 0x16a   :  { %v6232_v46 = vpop.f32.mrb[68].mxu0 }
 0x16b   :  { %v1614_v63 = vmul.f32 0.2, %v6232_v46  ;;  %v1097_v0 = vpop.f32.mrb[69].mxu0  ;;  %6380 = vmatprep.mubr.msk.bf16.mxu1 %vm1915_vm7, %v1864_v44  ;;  %vm1470_vm13 = vcmp.gt.f32.partialorder %v6232_v46, 0.0 }
 0x16c   :  { %v1612_v9 = vmul.f32 0.2, %v1097_v0  ;;  %v6233_v17 = vpop.f32.mrb[70].mxu0  ;;  %6381 = vmatmul.mubr.msk.bf16.vlgmr.msra.gmra.mrb[0].mxu1 %vm1915_vm7, %v1865_v8  ;;  %vm1468_vm14 = vcmp.gt.f32.partialorder %v1097_v0, 0.0 }
 0x16d   :  { %vm1471_vm15 = vcmp.gt.f32.partialorder %v6233_v17, 0.0  ;;  %v1615_v18 = vmul.f32 0.2, %v6233_v17  ;;  %v1100_v19 = vpop.f32.mrb[71].mxu0  ;;  %6397 = vmatpush3.bf16.msra.mxu1 %v7594_v20  ;;  %v1758_v22 = vsel %vm1470_vm13, %v6232_v46, %v1614_v63 }
 0x16e   :  { %vm1469_vm0 = vcmp.gt.f32.partialorder %v1100_v19, 0.0  ;;  %v1613_v21 = vmul.f32 0.2, %v1100_v19  ;;  %6414 = vmatprep.subr.bf16.mxu1 %v7609_v61  ;;  %v1756_v25 = vsel %vm1468_vm14, %v1097_v0, %v1612_v9 }
 0x16f   :  { %v1759_v23 = vsel %vm1471_vm15, %v6233_v17, %v1615_v18 }
 0x170   :  { %v1867_v59 = vpack.c.bf16 %v1759_v23, %v1758_v22  ;;  %v1757_v60 = vsel %vm1469_vm0, %v1100_v19, %v1613_v21 }
 0x171   :  { %v1866_v62 = vpack.c.bf16 %v1757_v60, %v1756_v25 }
 0x172   :  { %v6236_v26 = vpop.f32.mrb[72].mxu0 }
 0x173   :  { %v1618_v33 = vmul.f32 0.2, %v6236_v26  ;;  %v1113_v34 = vpop.f32.mrb[73].mxu0  ;;  %6384 = vmatprep.mubr.msk.bf16.mxu1 %vm1915_vm7, %v1866_v62  ;;  %vm1474_vm1 = vcmp.gt.f32.partialorder %v6236_v26, 0.0 }
 0x174   :  { %v1616_v12 = vmul.f32 0.2, %v1113_v34  ;;  %v6237_v14 = vpop.f32.mrb[74].mxu0  ;;  %6385 = vmatmul.mubr.msk.bf16.gmra.mrb[4].mxu1 %vm1915_vm7, %v1867_v59  ;;  %vm1472_vm3 = vcmp.gt.f32.partialorder %v1113_v34, 0.0 }
 0x175   :  { %vm1475_vm4 = vcmp.gt.f32.partialorder %v6237_v14, 0.0  ;;  %v1619_v20 = vmul.f32 0.2, %v6237_v14  ;;  %v1116_v15 = vpop.f32.mrb[75].mxu0  ;;  %v1762_v36 = vsel %vm1474_vm1, %v6236_v26, %v1618_v33 }
 0x176   :  { %vm1473_vm5 = vcmp.gt.f32.partialorder %v1116_v15, 0.0  ;;  %v1617_v35 = vmul.f32 0.2, %v1116_v15  ;;  %v1760_v38 = vsel %vm1472_vm3, %v1113_v34, %v1616_v12 }
 0x177   :  { %v1763_v37 = vsel %vm1475_vm4, %v6237_v14, %v1619_v20 }
 0x178   :  { %v1869_v39 = vpack.c.bf16 %v1763_v37, %v1762_v36  ;;  %v1761_v24 = vsel %vm1473_vm5, %v1116_v15, %v1617_v35 }
 0x179   :  { %v1868_v16 = vpack.c.bf16 %v1761_v24, %v1760_v38 }
 0x17a   :  { %v6240_v40 = vpop.f32.mrb[76].mxu0 }
 0x17b   :  { %v1622_v41 = vmul.f32 0.2, %v6240_v40  ;;  %v1129_v42 = vpop.f32.mrb[77].mxu0  ;;  %6388 = vmatprep.mubr.msk.bf16.mxu1 %vm1915_vm7, %v1868_v16  ;;  %vm1478_vm6 = vcmp.gt.f32.partialorder %v6240_v40, 0.0 }
 0x17c   :  { %v1620_v49 = vmul.f32 0.2, %v1129_v42  ;;  %v6241_v50 = vpop.f32.mrb[78].mxu0  ;;  %6389 = vmatmul.mubr.msk.bf16.gmra.mrb[8].mxu1 %vm1915_vm7, %v1869_v39  ;;  %vm1476_vm8 = vcmp.gt.f32.partialorder %v1129_v42, 0.0 }
 0x17d   :  { %vm1479_vm9 = vcmp.gt.f32.partialorder %v6241_v50, 0.0  ;;  %v1623_v10 = vmul.f32 0.2, %v6241_v50  ;;  %v1132_v11 = vpop.f32.mrb[79].mxu0  ;;  %v1766_v29 = vsel %vm1478_vm6, %v6240_v40, %v1622_v41 }
 0x17e   :  { %vm1477_vm10 = vcmp.gt.f32.partialorder %v1132_v11, 0.0  ;;  %v1621_v13 = vmul.f32 0.2, %v1132_v11  ;;  %v1764_v32 = vsel %vm1476_vm8, %v1129_v42, %v1620_v49 }
 0x17f   :  { %v1767_v31 = vsel %vm1479_vm9, %v6241_v50, %v1623_v10 }
 0x180   :  { %v1871_v51 = vpack.c.bf16 %v1767_v31, %v1766_v29  ;;  %v1765_v52 = vsel %vm1477_vm10, %v1132_v11, %v1621_v13 }
 0x181   :  { %v1870_v53 = vpack.c.bf16 %v1765_v52, %v1764_v32 }
 0x182   :  { %v6244_v54 = vpop.f32.mrb[80].mxu0 }
 0x183   :  { %v1626_v55 = vmul.f32 0.2, %v6244_v54  ;;  %v1145_v56 = vpop.f32.mrb[81].mxu0  ;;  %6392 = vmatprep.mubr.msk.bf16.mxu1 %vm1915_vm7, %v1870_v53  ;;  %vm1482_vm11 = vcmp.gt.f32.partialorder %v6244_v54, 0.0 }
 0x184   :  { %v1624_v57 = vmul.f32 0.2, %v1145_v56  ;;  %v6245_v58 = vpop.f32.mrb[82].mxu0  ;;  %6393 = vmatmul.mubr.msk.bf16.gmra.mrb[12].mxu1 %vm1915_vm7, %v1871_v51  ;;  %vm1480_vm2 = vcmp.gt.f32.partialorder %v1145_v56, 0.0 }
 0x185   :  { %vm1483_vm12 = vcmp.gt.f32.partialorder %v6245_v58, 0.0  ;;  %v1627_v27 = vmul.f32 0.2, %v6245_v58  ;;  %v1148_v28 = vpop.f32.mrb[83].mxu0  ;;  %v1770_v45 = vsel %vm1482_vm11, %v6244_v54, %v1626_v55 }
 0x186   :  { %vm1481_vm13 = vcmp.gt.f32.partialorder %v1148_v28, 0.0  ;;  %v1625_v30 = vmul.f32 0.2, %v1148_v28  ;;  %v1768_v48 = vsel %vm1480_vm2, %v1145_v56, %v1624_v57 }
 0x187   :  { %v1771_v47 = vsel %vm1483_vm12, %v6245_v58, %v1627_v27 }
 0x188   :  { %v1873_v1 = vpack.c.bf16 %v1771_v47, %v1770_v45  ;;  %v1769_v2 = vsel %vm1481_vm13, %v1148_v28, %v1625_v30  ;;  %v7639_v45 = vld [vmem:[%s8203_s2 + $0x40] sm:$0xff]  }
 0x189   :  { %v1872_v3 = vpack.c.bf16 %v1769_v2, %v1768_v48 }
 0x18a   :  { %v6248_v4 = vpop.f32.mrb[84].mxu0 }
 0x18b   :  { %v1630_v6 = vmul.f32 0.2, %v6248_v4  ;;  %v1161_v7 = vpop.f32.mrb[85].mxu0  ;;  %6398 = vmatprep.mubr.msk.bf16.mxu1 %vm1915_vm7, %v1872_v3  ;;  %vm1486_vm14 = vcmp.gt.f32.partialorder %v6248_v4, 0.0 }
 0x18c   :  { %v1628_v8 = vmul.f32 0.2, %v1161_v7  ;;  %v6249_v43 = vpop.f32.mrb[86].mxu0  ;;  %6399 = vmatmul.mubr.msk.bf16.vlgmr.msra.gmra.mrb[0].mxu1 %vm1915_vm7, %v1873_v1  ;;  %vm1484_vm15 = vcmp.gt.f32.partialorder %v1161_v7, 0.0 }
 0x18d   :  { %vm1487_vm0 = vcmp.gt.f32.partialorder %v6249_v43, 0.0  ;;  %v1631_v44 = vmul.f32 0.2, %v6249_v43  ;;  %v1164_v46 = vpop.f32.mrb[87].mxu0  ;;  %6415 = vmatpush3.bf16.msra.mxu1 %v7609_v61  ;;  %v1774_v0 = vsel %vm1486_vm14, %v6248_v4, %v1630_v6 }
 0x18e   :  { %vm1485_vm1 = vcmp.gt.f32.partialorder %v1164_v46, 0.0  ;;  %v1629_v63 = vmul.f32 0.2, %v1164_v46  ;;  %6432 = vmatprep.subr.bf16.mxu1 %v7624_v5  ;;  %v1772_v17 = vsel %vm1484_vm15, %v1161_v7, %v1628_v8 }
 0x18f   :  { %v1775_v9 = vsel %vm1487_vm0, %v6249_v43, %v1631_v44 }
 0x190   :  { %v1875_v18 = vpack.c.bf16 %v1775_v9, %v1774_v0  ;;  %v1773_v19 = vsel %vm1485_vm1, %v1164_v46, %v1629_v63 }
 0x191   :  { %v1874_v21 = vpack.c.bf16 %v1773_v19, %v1772_v17 }
 0x192   :  { %v6252_v22 = vpop.f32.mrb[88].mxu0 }
 0x193   :  { %v1634_v23 = vmul.f32 0.2, %v6252_v22  ;;  %v1177_v25 = vpop.f32.mrb[89].mxu0  ;;  %6402 = vmatprep.mubr.msk.bf16.mxu1 %vm1915_vm7, %v1874_v21  ;;  %vm1490_vm3 = vcmp.gt.f32.partialorder %v6252_v22, 0.0 }
 0x194   :  { %v1632_v59 = vmul.f32 0.2, %v1177_v25  ;;  %v6253_v60 = vpop.f32.mrb[90].mxu0  ;;  %6403 = vmatmul.mubr.msk.bf16.gmra.mrb[4].mxu1 %vm1915_vm7, %v1875_v18  ;;  %vm1488_vm4 = vcmp.gt.f32.partialorder %v1177_v25, 0.0 }
 0x195   :  { %vm1491_vm5 = vcmp.gt.f32.partialorder %v6253_v60, 0.0  ;;  %v1635_v61 = vmul.f32 0.2, %v6253_v60  ;;  %v1180_v62 = vpop.f32.mrb[91].mxu0  ;;  %v1778_v33 = vsel %vm1490_vm3, %v6252_v22, %v1634_v23 }
 0x196   :  { %vm1489_vm6 = vcmp.gt.f32.partialorder %v1180_v62, 0.0  ;;  %v1633_v26 = vmul.f32 0.2, %v1180_v62  ;;  %v1776_v12 = vsel %vm1488_vm4, %v1177_v25, %v1632_v59 }
 0x197   :  { %v1779_v34 = vsel %vm1491_vm5, %v6253_v60, %v1635_v61 }
 0x198   :  { %v1877_v14 = vpack.c.bf16 %v1779_v34, %v1778_v33  ;;  %v1777_v20 = vsel %vm1489_vm6, %v1180_v62, %v1633_v26 }
 0x199   :  { %v1876_v15 = vpack.c.bf16 %v1777_v20, %v1776_v12 }
 0x19a   :  { %v6256_v35 = vpop.f32.mrb[92].mxu0 }
 0x19b   :  { %v1638_v36 = vmul.f32 0.2, %v6256_v35  ;;  %v1193_v37 = vpop.f32.mrb[93].mxu0  ;;  %6406 = vmatprep.mubr.msk.bf16.mxu1 %vm1915_vm7, %v1876_v15  ;;  %vm1494_vm8 = vcmp.gt.f32.partialorder %v6256_v35, 0.0 }
 0x19c   :  { %v1636_v38 = vmul.f32 0.2, %v1193_v37  ;;  %v6257_v39 = vpop.f32.mrb[94].mxu0  ;;  %6407 = vmatmul.mubr.msk.bf16.gmra.mrb[8].mxu1 %vm1915_vm7, %v1877_v14  ;;  %vm1492_vm9 = vcmp.gt.f32.partialorder %v1193_v37, 0.0 }
 0x19d   :  { %vm1495_vm10 = vcmp.gt.f32.partialorder %v6257_v39, 0.0  ;;  %v1639_v24 = vmul.f32 0.2, %v6257_v39  ;;  %v1196_v16 = vpop.f32.mrb[95].mxu0  ;;  %v1782_v41 = vsel %vm1494_vm8, %v6256_v35, %v1638_v36 }
 0x19e   :  { %vm1493_vm11 = vcmp.gt.f32.partialorder %v1196_v16, 0.0  ;;  %v1637_v40 = vmul.f32 0.2, %v1196_v16  ;;  %v1780_v49 = vsel %vm1492_vm9, %v1193_v37, %v1636_v38 }
 0x19f   :  { %v1783_v42 = vsel %vm1495_vm10, %v6257_v39, %v1639_v24 }
 0x1a0   :  { %v1879_v50 = vpack.c.bf16 %v1783_v42, %v1782_v41  ;;  %v1781_v10 = vsel %vm1493_vm11, %v1196_v16, %v1637_v40 }
 0x1a1   :  { %v1878_v11 = vpack.c.bf16 %v1781_v10, %v1780_v49 }
 0x1a2   :  { %v6260_v13 = vpop.f32.mrb[96].mxu0 }
 0x1a3   :  { %v1642_v29 = vmul.f32 0.2, %v6260_v13  ;;  %v1209_v31 = vpop.f32.mrb[97].mxu0  ;;  %6410 = vmatprep.mubr.msk.bf16.mxu1 %vm1915_vm7, %v1878_v11  ;;  %vm1498_vm2 = vcmp.gt.f32.partialorder %v6260_v13, 0.0 }
 0x1a4   :  { %v1640_v32 = vmul.f32 0.2, %v1209_v31  ;;  %v6261_v51 = vpop.f32.mrb[98].mxu0  ;;  %6411 = vmatmul.mubr.msk.bf16.gmra.mrb[12].mxu1 %vm1915_vm7, %v1879_v50  ;;  %vm1496_vm12 = vcmp.gt.f32.partialorder %v1209_v31, 0.0 }
 0x1a5   :  { %vm1499_vm13 = vcmp.gt.f32.partialorder %v6261_v51, 0.0  ;;  %v1643_v52 = vmul.f32 0.2, %v6261_v51  ;;  %v1212_v53 = vpop.f32.mrb[99].mxu0  ;;  %v1786_v55 = vsel %vm1498_vm2, %v6260_v13, %v1642_v29 }
 0x1a6   :  { %vm1497_vm14 = vcmp.gt.f32.partialorder %v1212_v53, 0.0  ;;  %v1641_v54 = vmul.f32 0.2, %v1212_v53  ;;  %v1784_v57 = vsel %vm1496_vm12, %v1209_v31, %v1640_v32 }
 0x1a7   :  { %v1787_v56 = vsel %vm1499_vm13, %v6261_v51, %v1643_v52 }
 0x1a8   :  { %v1881_v58 = vpack.c.bf16 %v1787_v56, %v1786_v55  ;;  %v1785_v27 = vsel %vm1497_vm14, %v1212_v53, %v1641_v54 }
 0x1a9   :  { %v1880_v28 = vpack.c.bf16 %v1785_v27, %v1784_v57 }
 0x1aa   :  { %v6264_v30 = vpop.f32.mrb[100].mxu0 }
 0x1ab   :  { %v1646_v47 = vmul.f32 0.2, %v6264_v30  ;;  %v1225_v48 = vpop.f32.mrb[101].mxu0  ;;  %6416 = vmatprep.mubr.msk.bf16.mxu1 %vm1915_vm7, %v1880_v28  ;;  %vm1502_vm15 = vcmp.gt.f32.partialorder %v6264_v30, 0.0 }
 0x1ac   :  { %v1644_v1 = vmul.f32 0.2, %v1225_v48  ;;  %v6265_v2 = vpop.f32.mrb[102].mxu0  ;;  %6417 = vmatmul.mubr.msk.bf16.vlgmr.msra.gmra.mrb[0].mxu1 %vm1915_vm7, %v1881_v58  ;;  %vm1500_vm0 = vcmp.gt.f32.partialorder %v1225_v48, 0.0 }
 0x1ad   :  { %vm1503_vm1 = vcmp.gt.f32.partialorder %v6265_v2, 0.0  ;;  %v1647_v3 = vmul.f32 0.2, %v6265_v2  ;;  %v1228_v4 = vpop.f32.mrb[103].mxu0  ;;  %6433 = vmatpush3.bf16.msra.mxu1 %v7624_v5  ;;  %v1790_v7 = vsel %vm1502_vm15, %v6264_v30, %v1646_v47 }
 0x1ae   :  { %vm1501_vm3 = vcmp.gt.f32.partialorder %v1228_v4, 0.0  ;;  %v1645_v6 = vmul.f32 0.2, %v1228_v4  ;;  %6450 = vmatprep.subr.bf16.mxu1 %v7639_v45  ;;  %v1788_v43 = vsel %vm1500_vm0, %v1225_v48, %v1644_v1 }
 0x1af   :  { %v1791_v8 = vsel %vm1503_vm1, %v6265_v2, %v1647_v3 }
 0x1b0   :  { %v1883_v44 = vpack.c.bf16 %v1791_v8, %v1790_v7  ;;  %v1789_v46 = vsel %vm1501_vm3, %v1228_v4, %v1645_v6 }
 0x1b1   :  { %v1882_v63 = vpack.c.bf16 %v1789_v46, %v1788_v43 }
 0x1b2   :  { %v6268_v0 = vpop.f32.mrb[104].mxu0 }
 0x1b3   :  { %v1650_v9 = vmul.f32 0.2, %v6268_v0  ;;  %v1241_v17 = vpop.f32.mrb[105].mxu0  ;;  %6420 = vmatprep.mubr.msk.bf16.mxu1 %vm1915_vm7, %v1882_v63  ;;  %vm1506_vm4 = vcmp.gt.f32.partialorder %v6268_v0, 0.0 }
 0x1b4   :  { %v1648_v18 = vmul.f32 0.2, %v1241_v17  ;;  %v6269_v19 = vpop.f32.mrb[106].mxu0  ;;  %6421 = vmatmul.mubr.msk.bf16.gmra.mrb[4].mxu1 %vm1915_vm7, %v1883_v44  ;;  %vm1504_vm5 = vcmp.gt.f32.partialorder %v1241_v17, 0.0 }
 0x1b5   :  { %vm1507_vm6 = vcmp.gt.f32.partialorder %v6269_v19, 0.0  ;;  %v1651_v5 = vmul.f32 0.2, %v6269_v19  ;;  %v1244_v21 = vpop.f32.mrb[107].mxu0  ;;  %v1794_v23 = vsel %vm1506_vm4, %v6268_v0, %v1650_v9 }
 0x1b6   :  { %vm1505_vm8 = vcmp.gt.f32.partialorder %v1244_v21, 0.0  ;;  %v1649_v22 = vmul.f32 0.2, %v1244_v21  ;;  %v1792_v59 = vsel %vm1504_vm5, %v1241_v17, %v1648_v18 }
 0x1b7   :  { %v1795_v25 = vsel %vm1507_vm6, %v6269_v19, %v1651_v5 }
 0x1b8   :  { %v1885_v60 = vpack.c.bf16 %v1795_v25, %v1794_v23  ;;  %v1793_v61 = vsel %vm1505_vm8, %v1244_v21, %v1649_v22 }
 0x1b9   :  { %v1884_v62 = vpack.c.bf16 %v1793_v61, %v1792_v59 }
 0x1ba   :  { %v6272_v26 = vpop.f32.mrb[108].mxu0 }
 0x1bb   :  { %v1654_v33 = vmul.f32 0.2, %v6272_v26  ;;  %v1257_v34 = vpop.f32.mrb[109].mxu0  ;;  %6424 = vmatprep.mubr.msk.bf16.mxu1 %vm1915_vm7, %v1884_v62  ;;  %vm1510_vm9 = vcmp.gt.f32.partialorder %v6272_v26, 0.0 }
 0x1bc   :  { %v1652_v12 = vmul.f32 0.2, %v1257_v34  ;;  %v6273_v14 = vpop.f32.mrb[110].mxu0  ;;  %6425 = vmatmul.mubr.msk.bf16.gmra.mrb[8].mxu1 %vm1915_vm7, %v1885_v60  ;;  %vm1508_vm10 = vcmp.gt.f32.partialorder %v1257_v34, 0.0 }
 0x1bd   :  { %vm1511_vm11 = vcmp.gt.f32.partialorder %v6273_v14, 0.0  ;;  %v1655_v20 = vmul.f32 0.2, %v6273_v14  ;;  %v1260_v15 = vpop.f32.mrb[111].mxu0  ;;  %v1798_v36 = vsel %vm1510_vm9, %v6272_v26, %v1654_v33 }
 0x1be   :  { %vm1509_vm2 = vcmp.gt.f32.partialorder %v1260_v15, 0.0  ;;  %v1653_v35 = vmul.f32 0.2, %v1260_v15  ;;  %v1796_v38 = vsel %vm1508_vm10, %v1257_v34, %v1652_v12 }
 0x1bf   :  { %v1799_v37 = vsel %vm1511_vm11, %v6273_v14, %v1655_v20 }
 0x1c0   :  { %v1887_v39 = vpack.c.bf16 %v1799_v37, %v1798_v36  ;;  %v1797_v24 = vsel %vm1509_vm2, %v1260_v15, %v1653_v35 }
 0x1c1   :  { %v1886_v16 = vpack.c.bf16 %v1797_v24, %v1796_v38 }
 0x1c2   :  { %v6276_v40 = vpop.f32.mrb[112].mxu0 }
 0x1c3   :  { %v1658_v41 = vmul.f32 0.2, %v6276_v40  ;;  %v1273_v42 = vpop.f32.mrb[113].mxu0  ;;  %6428 = vmatprep.mubr.msk.bf16.mxu1 %vm1915_vm7, %v1886_v16  ;;  %vm1514_vm12 = vcmp.gt.f32.partialorder %v6276_v40, 0.0 }
 0x1c4   :  { %v1656_v49 = vmul.f32 0.2, %v1273_v42  ;;  %v6277_v50 = vpop.f32.mrb[114].mxu0  ;;  %6429 = vmatmul.mubr.msk.bf16.gmra.mrb[12].mxu1 %vm1915_vm7, %v1887_v39  ;;  %vm1512_vm13 = vcmp.gt.f32.partialorder %v1273_v42, 0.0 }
 0x1c5   :  { %vm1515_vm14 = vcmp.gt.f32.partialorder %v6277_v50, 0.0  ;;  %v1659_v10 = vmul.f32 0.2, %v6277_v50  ;;  %v1276_v11 = vpop.f32.mrb[115].mxu0  ;;  %v1802_v29 = vsel %vm1514_vm12, %v6276_v40, %v1658_v41 }
 0x1c6   :  { %vm1513_vm15 = vcmp.gt.f32.partialorder %v1276_v11, 0.0  ;;  %v1657_v13 = vmul.f32 0.2, %v1276_v11  ;;  %v1800_v32 = vsel %vm1512_vm13, %v1273_v42, %v1656_v49 }
 0x1c7   :  { %v1803_v31 = vsel %vm1515_vm14, %v6277_v50, %v1659_v10 }
 0x1c8   :  { %v1889_v51 = vpack.c.bf16 %v1803_v31, %v1802_v29  ;;  %v1801_v52 = vsel %vm1513_vm15, %v1276_v11, %v1657_v13 }
 0x1c9   :  { %v1888_v53 = vpack.c.bf16 %v1801_v52, %v1800_v32 }
 0x1ca   :  { %v6280_v54 = vpop.f32.mrb[116].mxu0 }
 0x1cb   :  { %v1662_v55 = vmul.f32 0.2, %v6280_v54  ;;  %v1289_v56 = vpop.f32.mrb[117].mxu0  ;;  %6434 = vmatprep.mubr.msk.bf16.mxu1 %vm1915_vm7, %v1888_v53  ;;  %vm1518_vm0 = vcmp.gt.f32.partialorder %v6280_v54, 0.0 }
 0x1cc   :  { %v1660_v57 = vmul.f32 0.2, %v1289_v56  ;;  %v6281_v58 = vpop.f32.mrb[118].mxu0  ;;  %6435 = vmatmul.mubr.msk.bf16.vlgmr.msra.gmra.mrb[0].mxu1 %vm1915_vm7, %v1889_v51  ;;  %vm1516_vm1 = vcmp.gt.f32.partialorder %v1289_v56, 0.0 }
 0x1cd   :  { %vm1519_vm3 = vcmp.gt.f32.partialorder %v6281_v58, 0.0  ;;  %v1663_v27 = vmul.f32 0.2, %v6281_v58  ;;  %v1292_v28 = vpop.f32.mrb[119].mxu0  ;;  %6451 = vmatpush3.bf16.msra.mxu1 %v7639_v45  ;;  %v1806_v47 = vsel %vm1518_vm0, %v6280_v54, %v1662_v55 }
 0x1ce   :  { %vm1517_vm4 = vcmp.gt.f32.partialorder %v1292_v28, 0.0  ;;  %v1661_v30 = vmul.f32 0.2, %v1292_v28  ;;  %v1804_v1 = vsel %vm1516_vm1, %v1289_v56, %v1660_v57 }
 0x1cf   :  { %v1807_v48 = vsel %vm1519_vm3, %v6281_v58, %v1663_v27 }
 0x1d0   :  { %v1891_v2 = vpack.c.bf16 %v1807_v48, %v1806_v47  ;;  %v1805_v3 = vsel %vm1517_vm4, %v1292_v28, %v1661_v30 }
 0x1d1   :  { %v1890_v4 = vpack.c.bf16 %v1805_v3, %v1804_v1 }
 0x1d2   :  { %v6284_v6 = vpop.f32.mrb[120].mxu0 }
 0x1d3   :  { %v1666_v7 = vmul.f32 0.2, %v6284_v6  ;;  %v1305_v8 = vpop.f32.mrb[121].mxu0  ;;  %6438 = vmatprep.mubr.msk.bf16.mxu1 %vm1915_vm7, %v1890_v4  ;;  %vm1522_vm5 = vcmp.gt.f32.partialorder %v6284_v6, 0.0 }
 0x1d4   :  { %v1664_v43 = vmul.f32 0.2, %v1305_v8  ;;  %v6285_v44 = vpop.f32.mrb[122].mxu0  ;;  %6439 = vmatmul.mubr.msk.bf16.gmra.mrb[4].mxu1 %vm1915_vm7, %v1891_v2  ;;  %vm1520_vm6 = vcmp.gt.f32.partialorder %v1305_v8, 0.0 }
 0x1d5   :  { %vm1523_vm8 = vcmp.gt.f32.partialorder %v6285_v44, 0.0  ;;  %v1667_v45 = vmul.f32 0.2, %v6285_v44  ;;  %v1308_v46 = vpop.f32.mrb[123].mxu0  ;;  %v1810_v0 = vsel %vm1522_vm5, %v6284_v6, %v1666_v7 }
 0x1d6   :  { %vm1521_vm9 = vcmp.gt.f32.partialorder %v1308_v46, 0.0  ;;  %v1665_v63 = vmul.f32 0.2, %v1308_v46  ;;  %v1808_v17 = vsel %vm1520_vm6, %v1305_v8, %v1664_v43 }
 0x1d7   :  { %v1811_v9 = vsel %vm1523_vm8, %v6285_v44, %v1667_v45 }
 0x1d8   :  { %v1893_v18 = vpack.c.bf16 %v1811_v9, %v1810_v0  ;;  %v1809_v19 = vsel %vm1521_vm9, %v1308_v46, %v1665_v63 }
 0x1d9   :  { %v1892_v5 = vpack.c.bf16 %v1809_v19, %v1808_v17 }
 0x1da   :  { %v6288_v21 = vpop.f32.mrb[124].mxu0 }
 0x1db   :  { %v1670_v22 = vmul.f32 0.2, %v6288_v21  ;;  %v1321_v23 = vpop.f32.mrb[125].mxu0  ;;  %6442 = vmatprep.mubr.msk.bf16.mxu1 %vm1915_vm7, %v1892_v5  ;;  %vm1526_vm10 = vcmp.gt.f32.partialorder %v6288_v21, 0.0 }
 0x1dc   :  { %v1668_v25 = vmul.f32 0.2, %v1321_v23  ;;  %v6289_v59 = vpop.f32.mrb[126].mxu0  ;;  %6443 = vmatmul.mubr.msk.bf16.gmra.mrb[8].mxu1 %vm1915_vm7, %v1893_v18  ;;  %vm1524_vm11 = vcmp.gt.f32.partialorder %v1321_v23, 0.0 }
 0x1dd   :  { %vm1527_vm2 = vcmp.gt.f32.partialorder %v6289_v59, 0.0  ;;  %v1671_v60 = vmul.f32 0.2, %v6289_v59  ;;  %v1324_v61 = vpop.f32.mrb[127].mxu0  ;;  %v1814_v26 = vsel %vm1526_vm10, %v6288_v21, %v1670_v22 }
 0x1de   :  { %vm1525_vm12 = vcmp.gt.f32.partialorder %v1324_v61, 0.0  ;;  %v1669_v62 = vmul.f32 0.2, %v1324_v61  ;;  %v1812_v34 = vsel %vm1524_vm11, %v1321_v23, %v1668_v25 }
 0x1df   :  { %v1815_v33 = vsel %vm1527_vm2, %v6289_v59, %v1671_v60 }
 0x1e0   :  { %v1895_v12 = vpack.c.bf16 %v1815_v33, %v1814_v26  ;;  %v1813_v14 = vsel %vm1525_vm12, %v1324_v61, %v1669_v62 }
 0x1e1   :  { %v1894_v20 = vpack.c.bf16 %v1813_v14, %v1812_v34 }
 0x1e2   :  { %v6292_v15 = vpop.f32.mrb[128].mxu0 }
 0x1e3   :  { %v1674_v35 = vmul.f32 0.2, %v6292_v15  ;;  %v1337_v36 = vpop.f32.mrb[129].mxu0  ;;  %6446 = vmatprep.mubr.msk.bf16.mxu1 %vm1915_vm7, %v1894_v20  ;;  %vm1530_vm13 = vcmp.gt.f32.partialorder %v6292_v15, 0.0 }
 0x1e4   :  { %v1672_v37 = vmul.f32 0.2, %v1337_v36  ;;  %v6293_v38 = vpop.f32.mrb[130].mxu0  ;;  %6447 = vmatmul.mubr.msk.bf16.gmra.mrb[12].mxu1 %vm1915_vm7, %v1895_v12  ;;  %vm1528_vm14 = vcmp.gt.f32.partialorder %v1337_v36, 0.0 }
 0x1e5   :  { %vm1531_vm15 = vcmp.gt.f32.partialorder %v6293_v38, 0.0  ;;  %v1675_v39 = vmul.f32 0.2, %v6293_v38  ;;  %v1340_v24 = vpop.f32.mrb[131].mxu0  ;;  %v1818_v40 = vsel %vm1530_vm13, %v6292_v15, %v1674_v35 }
 0x1e6   :  { %vm1529_vm0 = vcmp.gt.f32.partialorder %v1340_v24, 0.0  ;;  %v1673_v16 = vmul.f32 0.2, %v1340_v24  ;;  %v1816_v42 = vsel %vm1528_vm14, %v1337_v36, %v1672_v37 }
 0x1e7   :  { %v1819_v41 = vsel %vm1531_vm15, %v6293_v38, %v1675_v39  ;;  %vm3236_vm15 = vcmask 261120  }
 0x1e8   :  { %v1897_v49 = vpack.c.bf16 %v1819_v41, %v1818_v40  ;;  %v1817_v50 = vsel %vm1529_vm0, %v1340_v24, %v1673_v16  ;;  %v7003_v40 = vld [vmem:[%s8204_s5] sm:$0xff]  }
 0x1e9   :  { %v1896_v10 = vpack.c.bf16 %v1817_v50, %v1816_v42  ;;  %6484 = vmatprep.mubr.bf16.mxu0 %v7003_v40 }
 0x1ea   :  { %v6296_v11 = vpop.f32.mrb[132].mxu0 }
 0x1eb   :  { %v1678_v13 = vmul.f32 0.2, %v6296_v11  ;;  %v1353_v29 = vpop.f32.mrb[133].mxu0  ;;  %6452 = vmatprep.mubr.msk.bf16.mxu1 %vm1915_vm7, %v1896_v10  ;;  %vm1534_vm1 = vcmp.gt.f32.partialorder %v6296_v11, 0.0 }
 0x1ec   :  { %v1676_v31 = vmul.f32 0.2, %v1353_v29  ;;  %v6297_v32 = vpop.f32.mrb[134].mxu0  ;;  %6453 = vmatmul.mubr.msk.bf16.vlgmr.msra.gmra.mrb[0].mxu1 %vm1915_vm7, %v1897_v49  ;;  %vm1532_vm3 = vcmp.gt.f32.partialorder %v1353_v29, 0.0 }
 0x1ed   :  { %vm1535_vm4 = vcmp.gt.f32.partialorder %v6297_v32, 0.0  ;;  %v1679_v51 = vmul.f32 0.2, %v6297_v32  ;;  %v1356_v52 = vpop.f32.mrb[135].mxu0  ;;  %v1822_v54 = vsel %vm1534_vm1, %v6296_v11, %v1678_v13 }
 0x1ee   :  { %vm1533_vm5 = vcmp.gt.f32.partialorder %v1356_v52, 0.0  ;;  %v1677_v53 = vmul.f32 0.2, %v1356_v52  ;;  %v1820_v56 = vsel %vm1532_vm3, %v1353_v29, %v1676_v31 }
 0x1ef   :  { %v1823_v55 = vsel %vm1535_vm4, %v6297_v32, %v1679_v51 }
 0x1f0   :  { %v1899_v57 = vpack.c.bf16 %v1823_v55, %v1822_v54  ;;  %v1821_v58 = vsel %vm1533_vm5, %v1356_v52, %v1677_v53 }
 0x1f1   :  { %v1898_v27 = vpack.c.bf16 %v1821_v58, %v1820_v56 }
 0x1f2   :  { %v6300_v28 = vpop.f32.mrb[136].mxu0 }
 0x1f3   :  { %v1682_v30 = vmul.f32 0.2, %v6300_v28  ;;  %v1369_v47 = vpop.f32.mrb[137].mxu0  ;;  %6456 = vmatprep.mubr.msk.bf16.mxu1 %vm1915_vm7, %v1898_v27  ;;  %vm1538_vm6 = vcmp.gt.f32.partialorder %v6300_v28, 0.0 }
 0x1f4   :  { %v1680_v48 = vmul.f32 0.2, %v1369_v47  ;;  %v6301_v1 = vpop.f32.mrb[138].mxu0  ;;  %6457 = vmatmul.mubr.msk.bf16.gmra.mrb[4].mxu1 %vm1915_vm7, %v1899_v57  ;;  %vm1536_vm8 = vcmp.gt.f32.partialorder %v1369_v47, 0.0 }
 0x1f5   :  { %vm1539_vm9 = vcmp.gt.f32.partialorder %v6301_v1, 0.0  ;;  %v1683_v2 = vmul.f32 0.2, %v6301_v1  ;;  %v1372_v3 = vpop.f32.mrb[139].mxu0  ;;  %v1826_v6 = vsel %vm1538_vm6, %v6300_v28, %v1682_v30 }
 0x1f6   :  { %vm1537_vm10 = vcmp.gt.f32.partialorder %v1372_v3, 0.0  ;;  %v1681_v4 = vmul.f32 0.2, %v1372_v3  ;;  %v1824_v8 = vsel %vm1536_vm8, %v1369_v47, %v1680_v48 }
 0x1f7   :  { %v1827_v7 = vsel %vm1539_vm9, %v6301_v1, %v1683_v2 }
 0x1f8   :  { %v1901_v43 = vpack.c.bf16 %v1827_v7, %v1826_v6  ;;  %v1825_v44 = vsel %vm1537_vm10, %v1372_v3, %v1681_v4 }
 0x1f9   :  { %v1900_v45 = vpack.c.bf16 %v1825_v44, %v1824_v8 }
 0x1fa   :  { %v6304_v46 = vpop.f32.mrb[140].mxu0 }
 0x1fb   :  { %v1686_v63 = vmul.f32 0.2, %v6304_v46  ;;  %v1385_v0 = vpop.f32.mrb[141].mxu0  ;;  %6460 = vmatprep.mubr.msk.bf16.mxu1 %vm1915_vm7, %v1900_v45  ;;  %vm1542_vm11 = vcmp.gt.f32.partialorder %v6304_v46, 0.0 }
 0x1fc   :  { %v1684_v9 = vmul.f32 0.2, %v1385_v0  ;;  %v6305_v17 = vpop.f32.mrb[142].mxu0  ;;  %6461 = vmatmul.mubr.msk.bf16.gmra.mrb[8].mxu1 %vm1915_vm7, %v1901_v43  ;;  %vm1540_vm2 = vcmp.gt.f32.partialorder %v1385_v0, 0.0 }
 0x1fd   :  { %vm1543_vm12 = vcmp.gt.f32.partialorder %v6305_v17, 0.0  ;;  %v1687_v18 = vmul.f32 0.2, %v6305_v17  ;;  %v1388_v19 = vpop.f32.mrb[143].mxu0  ;;  %v1830_v21 = vsel %vm1542_vm11, %v6304_v46, %v1686_v63 }
 0x1fe   :  { %vm1541_vm13 = vcmp.gt.f32.partialorder %v1388_v19, 0.0  ;;  %v1685_v5 = vmul.f32 0.2, %v1388_v19  ;;  %v1828_v23 = vsel %vm1540_vm2, %v1385_v0, %v1684_v9 }
 0x1ff   :  { %v1831_v22 = vsel %vm1543_vm12, %v6305_v17, %v1687_v18 }
 0x200   :  { %v1903_v25 = vpack.c.bf16 %v1831_v22, %v1830_v21  ;;  %v1829_v59 = vsel %vm1541_vm13, %v1388_v19, %v1685_v5 }
 0x201   :  { %v1902_v60 = vpack.c.bf16 %v1829_v59, %v1828_v23 }
 0x202   :  { %v6310_v61 = vpop.f32.mrb[144].mxu0 }
 0x203   :  { %v1974_v62 = vpop.f32.mrb[145].mxu0  ;;  %6464 = vmatprep.mubr.msk.bf16.mxu1 %vm1915_vm7, %v1902_v60 }
 0x204   :  { %v6311_v26 = vpop.f32.mrb[146].mxu0  ;;  %6465 = vmatmul.mubr.msk.bf16.gmra.mrb[12].mxu1 %vm1915_vm7, %v1903_v25 }
 0x205   :  { %v1977_v33 = vpop.f32.mrb[147].mxu0 }
 0x20a   :  { %v6314_v34 = vpop.f32.mrb[148].mxu0 }
 0x20b   :  { %v1990_v12 = vpop.f32.mrb[149].mxu0 }
 0x20c   :  { %v6315_v14 = vpop.f32.mrb[150].mxu0 }
 0x20d   :  { %v1993_v20 = vpop.f32.mrb[151].mxu0 }
 0x212   :  { %v7668_v15 = vpop.f32.mrb[152].mxu0 }
 0x213   :  { %v7670_v35 = vpop.f32.mrb[153].mxu0 }
 0x214   :  { %v7672_v36 = vpop.f32.mrb[154].mxu0 }
 0x215   :  { %v7674_v37 = vpop.f32.mrb[155].mxu0 }
 0x21a   :  { %v7676_v38 = vpop.f32.mrb[156].mxu0 }
 0x21b   :  { %v7678_v39 = vpop.f32.mrb[157].mxu0 }
 0x21c   :  { %v7680_v24 = vpop.f32.mrb[158].mxu0 }
 0x21d   :  { %v7682_v16 = vpop.f32.mrb[159].mxu0 }
 0x2bf   :  { %v6454_v41 = vpop.f32.mrb[0].mxu1 }
 0x2c0   :  { %v6729_v42 = vadd.f32 %v6454_v41, %v6310_v61  ;;  %v3107_v49 = vpop.f32.mrb[1].mxu1 }
 0x2c1   :  { %v6730_v50 = vadd.f32 %v3107_v49, %v1974_v62  ;;  %v6455_v10 = vpop.f32.mrb[2].mxu1 }
 0x2c2   :  { %vm3188_vm7 = vcmp.gt.f32.partialorder %v6729_v42, 0.0  ;;  %v3204_v11 = vmul.f32 0.2, %v6729_v42  ;;  %v6731_v13 = vadd.f32 %v6455_v10, %v6311_v26  ;;  %v3110_v29 = vpop.f32.mrb[3].mxu1 }
 0x2c3   :  { %vm3186_vm14 = vcmp.gt.f32.partialorder %v6730_v50, 0.0  ;;  %v3202_v31 = vmul.f32 0.2, %v6730_v50  ;;  %v6732_v32 = vadd.f32 %v3110_v29, %v1977_v33 }
 0x2c4   :  { %v7687_v51 = vsel %vm3188_vm7, %v6729_v42, %v3204_v11  ;;  %vm3189_vm0 = vcmp.gt.f32.partialorder %v6731_v13, 0.0  ;;  %v3205_v52 = vmul.f32 0.2, %v6731_v13 }
 0x2c5   :  { %v7689_v53 = vsel %vm3186_vm14, %v6730_v50, %v3202_v31  ;;  %vm3187_vm1 = vcmp.gt.f32.partialorder %v6732_v32, 0.0  ;;  %v3203_v56 = vmul.f32 0.2, %v6732_v32  ;;  %v3240_v57 = vsel %vm3236_vm15, %v7687_v51, 0.0 }
 0x2c6   :  { %v3275_v54 = vmul.f32 %v7689_v53, %v7689_v53  ;;  %v7693_v55 = vsel %vm3189_vm0, %v6731_v13, %v3205_v52  ;;  %v3277_v58 = vmul.f32 %v7687_v51, %v7687_v51  ;;  %v3237_v28 = vsel %vm3236_vm15, %v7689_v53, 0.0 }
 0x2c7   :  { %v6458_v27 = vpop.f32.mrb[4].mxu1  ;;  %v3278_v30 = vmul.f32 %v7693_v55, %v7693_v55  ;;  %v7703_v47 = vsel %vm3187_vm1, %v6732_v32, %v3203_v56  ;;  %v3242_v5 = vsel %vm3236_vm15, %v7693_v55, 0.0  ;;  %vm7092_vm14 = vmmov 0  }
 0x2c8   :  { %v6733_v48 = vadd.f32 %v6458_v27, %v6314_v34  ;;  %v3123_v1 = vpop.f32.mrb[5].mxu1  ;;  %v3291_v2 = vsel %vm3236_vm15, %v3275_v54, 0.0  ;;  %v3238_v3 = vsel %vm3236_vm15, %v7703_v47, 0.0  ;;  %v3276_v4 = vmul.f32 %v7703_v47, %v7703_v47 }
 0x2c9   :  { %v6734_v6 = vadd.f32 %v3123_v1, %v1990_v12  ;;  %v6459_v7 = vpop.f32.mrb[6].mxu1  ;;  %v3239_v8 = vadd.f32 %v3238_v3, %v3237_v28  ;;  %v3294_v9 = vsel %vm3236_vm15, %v3277_v58, 0.0  ;;  %v3296_v61 = vsel %vm3236_vm15, %v3278_v30, 0.0 }
 0x2ca   :  { %vm3192_vm3 = vcmp.gt.f32.partialorder %v6733_v48, 0.0  ;;  %v3208_v43 = vmul.f32 0.2, %v6733_v48  ;;  %v6735_v44 = vadd.f32 %v6459_v7, %v6315_v14  ;;  %v3126_v45 = vpop.f32.mrb[7].mxu1  ;;  %v3292_v46 = vsel %vm3236_vm15, %v3276_v4, 0.0 }
 0x2cb   :  { %vm3190_vm4 = vcmp.gt.f32.partialorder %v6734_v6, 0.0  ;;  %v3206_v63 = vmul.f32 0.2, %v6734_v6  ;;  %v6736_v0 = vadd.f32 %v3126_v45, %v1993_v20  ;;  %v3241_v17 = vadd.f32 %v3240_v57, %v3239_v8 }
 0x2cc   :  { %v3293_v18 = vadd.f32 %v3292_v46, %v3291_v2  ;;  %v7712_v19 = vsel %vm3192_vm3, %v6733_v48, %v3208_v43  ;;  %vm3193_vm5 = vcmp.gt.f32.partialorder %v6735_v44, 0.0  ;;  %v3209_v22 = vmul.f32 0.2, %v6735_v44 }
 0x2cd   :  { %v7716_v21 = vsel %vm3190_vm4, %v6734_v6, %v3206_v63  ;;  %v3243_v25 = vadd.f32 %v3242_v5, %v3241_v17  ;;  %v3281_v62 = vmul.f32 %v7712_v19, %v7712_v19  ;;  %vm3191_vm6 = vcmp.gt.f32.partialorder %v6736_v0, 0.0 }
 0x2ce   :  { %v3295_v23 = vadd.f32 %v3294_v9, %v3293_v18  ;;  %v3244_v59 = vsel %vm3236_vm15, %v7716_v21, 0.0  ;;  %v3279_v60 = vmul.f32 %v7716_v21, %v7716_v21  ;;  %v3207_v26 = vmul.f32 0.2, %v6736_v0 }
 0x2cf   :  { %v6462_v33 = vpop.f32.mrb[8].mxu1  ;;  %v3248_v34 = vsel %vm3236_vm15, %v7712_v19, 0.0  ;;  %v3245_v12 = vadd.f32 %v3244_v59, %v3243_v25  ;;  %v7729_v41 = vsel %vm3193_vm5, %v6735_v44, %v3209_v22  ;;  %v3302_v52 = vsel %vm3236_vm15, %v3281_v62, 0.0 }
 0x2d0   :  { %v3297_v14 = vadd.f32 %v3296_v61, %v3295_v23  ;;  %v3298_v20 = vsel %vm3236_vm15, %v3279_v60, 0.0  ;;  %v3139_v40 = vpop.f32.mrb[9].mxu1  ;;  %v7731_v42 = vsel %vm3191_vm6, %v6736_v0, %v3207_v26  ;;  %v6737_v49 = vadd.f32 %v6462_v33, %v7668_v15 }
 0x2d1   :  { %v6738_v50 = vadd.f32 %v3139_v40, %v7670_v35  ;;  %v6463_v10 = vpop.f32.mrb[10].mxu1  ;;  %v3246_v13 = vsel %vm3236_vm15, %v7731_v42, 0.0  ;;  %v3280_v29 = vmul.f32 %v7731_v42, %v7731_v42  ;;  %v3282_v15 = vmul.f32 %v7729_v41, %v7729_v41 }
 0x2d2   :  { %v3299_v11 = vadd.f32 %v3298_v20, %v3297_v14  ;;  %v6739_v31 = vadd.f32 %v6463_v10, %v7672_v36  ;;  %v3142_v32 = vpop.f32.mrb[11].mxu1  ;;  %v3247_v54 = vadd.f32 %v3246_v13, %v3245_v12  ;;  %vm3196_vm8 = vcmp.gt.f32.partialorder %v6737_v49, 0.0 }
 0x2d3   :  { %v3212_v56 = vmul.f32 0.2, %v6737_v49  ;;  %v3300_v35 = vsel %vm3236_vm15, %v3280_v29, 0.0  ;;  %vm3194_vm9 = vcmp.gt.f32.partialorder %v6738_v50, 0.0  ;;  %v3210_v57 = vmul.f32 0.2, %v6738_v50 }
 0x2d4   :  { %v3249_v58 = vadd.f32 %v3248_v34, %v3247_v54  ;;  %v3301_v27 = vadd.f32 %v3300_v35, %v3299_v11  ;;  %v3213_v30 = vmul.f32 0.2, %v6739_v31  ;;  %v3250_v36 = vsel %vm3236_vm15, %v7729_v41, 0.0 }
 0x2d5   :  { %v7744_v28 = vsel %vm3196_vm8, %v6737_v49, %v3212_v56  ;;  %v7748_v48 = vsel %vm3194_vm9, %v6738_v50, %v3210_v57  ;;  %vm3197_vm10 = vcmp.gt.f32.partialorder %v6739_v31, 0.0  ;;  %v6740_v1 = vadd.f32 %v3142_v32, %v7674_v37 }
 0x2d6   :  { %v3303_v2 = vadd.f32 %v3302_v52, %v3301_v27  ;;  %v3251_v3 = vadd.f32 %v3250_v36, %v3249_v58  ;;  %v3252_v4 = vsel %vm3236_vm15, %v7748_v48, 0.0  ;;  %v3283_v6 = vmul.f32 %v7748_v48, %v7748_v48 }
 0x2d7   :  { %v6466_v7 = vpop.f32.mrb[12].mxu1  ;;  %v3304_v8 = vsel %vm3236_vm15, %v3282_v15, 0.0  ;;  %v3285_v43 = vmul.f32 %v7744_v28, %v7744_v28  ;;  %vm3195_vm11 = vcmp.gt.f32.partialorder %v6740_v1, 0.0  ;;  %v3211_v44 = vmul.f32 0.2, %v6740_v1 }
 0x2d8   :  { %v3155_v45 = vpop.f32.mrb[13].mxu1  ;;  %v3253_v46 = vadd.f32 %v3252_v4, %v3251_v3  ;;  %v3305_v63 = vadd.f32 %v3304_v8, %v3303_v2  ;;  %v3306_v37 = vsel %vm3236_vm15, %v3283_v6, 0.0  ;;  %v7759_v0 = vsel %vm3197_vm10, %v6739_v31, %v3213_v30 }
 0x2d9   :  { %v6467_v9 = vpop.f32.mrb[14].mxu1  ;;  %v7761_v17 = vsel %vm3195_vm11, %v6740_v1, %v3211_v44  ;;  %v6741_v18 = vadd.f32 %v6466_v7, %v7676_v38  ;;  %v6742_v5 = vadd.f32 %v3155_v45, %v7678_v39  ;;  %v3256_v61 = vsel %vm3236_vm15, %v7744_v28, 0.0 }
 0x2da   :  { %v3158_v22 = vpop.f32.mrb[15].mxu1  ;;  %v3307_v23 = vadd.f32 %v3306_v37, %v3305_v63  ;;  %v3254_v25 = vsel %vm3236_vm15, %v7761_v17, 0.0  ;;  %v3284_v59 = vmul.f32 %v7761_v17, %v7761_v17  ;;  %v6743_v60 = vadd.f32 %v6467_v9, %v7680_v24 }
 0x2db   :  { %v3310_v62 = vsel %vm3236_vm15, %v3285_v43, 0.0  ;;  %v3286_v38 = vmul.f32 %v7759_v0, %v7759_v0  ;;  %v3255_v26 = vadd.f32 %v3254_v25, %v3253_v46  ;;  %v3216_v33 = vmul.f32 0.2, %v6741_v18 }
 0x2dc   :  { %v3308_v39 = vsel %vm3236_vm15, %v3284_v59, 0.0  ;;  %vm3198_vm2 = vcmp.gt.f32.partialorder %v6742_v5, 0.0  ;;  %v3214_v34 = vmul.f32 0.2, %v6742_v5  ;;  %v3258_v12 = vsel %vm3236_vm15, %v7759_v0, 0.0 }
 0x2dd   :  { %v3257_v14 = vadd.f32 %v3256_v61, %v3255_v26  ;;  %v3309_v20 = vadd.f32 %v3308_v39, %v3307_v23  ;;  %vm3200_vm12 = vcmp.gt.f32.partialorder %v6741_v18, 0.0  ;;  %vm3201_vm13 = vcmp.gt.f32.partialorder %v6743_v60, 0.0 }
 0x2de   :  { %v7778_v24 = vsel %vm3198_vm2, %v6742_v5, %v3214_v34  ;;  %v3217_v40 = vmul.f32 0.2, %v6743_v60  ;;  %v6744_v49 = vadd.f32 %v3158_v22, %v7682_v16  ;;  %v3312_v29 = vsel %vm3236_vm15, %v3286_v38, 0.0  ;;  %v7021_v38 = vld [vmem:[%s8205_s6] sm:$0xff]  }
 0x2df   :  { %v3311_v50 = vadd.f32 %v3310_v62, %v3309_v20  ;;  %v3259_v10 = vadd.f32 %v3258_v12, %v3257_v14  ;;  %v3260_v11 = vsel %vm3236_vm15, %v7778_v24, 0.0  ;;  %v3287_v13 = vmul.f32 %v7778_v24, %v7778_v24  ;;  %6528 = vmatprep.subr.bf16.mxu1 %v7021_v38  ;;  %v3234_v20 = vld [vmem:[%s8206_s3] sm:$0x1] }
 0x2e0   :  { %v7786_v31 = vsel %vm3200_vm12, %v6741_v18, %v3216_v33  ;;  %vm3199_vm7 = vcmp.gt.f32.partialorder %v6744_v49, 0.0  ;;  %v3215_v32 = vmul.f32 0.2, %v6744_v49  ;;  %v7789_v15 = vsel %vm3201_vm13, %v6743_v60, %v3217_v40  ;;  %6529 = vmatpush3.bf16.msra.mxu1 %v7021_v38  ;;  %v7012_v38 = vld [vmem:[%s8204_s5 + $0x48] sm:$0xff]  }
 0x2e1   :  { %v3261_v52 = vadd.f32 %v3260_v11, %v3259_v10  ;;  %v3313_v54 = vadd.f32 %v3312_v29, %v3311_v50  ;;  %v3314_v56 = vsel %vm3236_vm15, %v3287_v13, 0.0  ;;  %v3289_v35 = vmul.f32 %v7786_v31, %v7786_v31  ;;  %v3235_v10 = vld [vmem:[%s8207_s4] sm:$0x1] }
 0x2e2   :  { %v3231_v16 = vsel %vm3199_vm7, %v6744_v49, %v3215_v32  ;;  %v3264_v36 = vsel %vm3236_vm15, %v7786_v31, 0.0  ;;  %v3290_v1 = vmul.f32 %v7789_v15, %v7789_v15  ;;  %v3266_v7 = vsel %vm3236_vm15, %v7789_v15, 0.0 }
 0x2e3   :  { %v3315_v57 = vadd.f32 %v3314_v56, %v3313_v54  ;;  %v3262_v58 = vsel %vm3236_vm15, %v3231_v16, 0.0  ;;  %v3288_v27 = vmul.f32 %v3231_v16, %v3231_v16  ;;  %v3318_v6 = vsel %vm3236_vm15, %v3289_v35, 0.0 }
 0x2e4   :  { %v3263_v30 = vadd.f32 %v3262_v58, %v3261_v52  ;;  %v3320_v44 = vsel %vm3236_vm15, %v3290_v1, 0.0  ;;  %v3337_v12 = vlaneseq  ;;  %vm4416_vm5 = vcmask 523264  }
 0x2e5   :  { %v3316_v2 = vsel %vm3236_vm15, %v3288_v27, 0.0  ;;  %vm5344_vm6 = vcmask 64512   ;;  %vm5418_vm8 = vcmask 1041408   ;;  %vm5435_vm9 = vcmask 1024  }
 0x2e6   :  { %v3265_v3 = vadd.f32 %v3264_v36, %v3263_v30  ;;  %v3317_v4 = vadd.f32 %v3316_v2, %v3315_v57  ;;  %v3338_v14 = vshrl.u32 %v3337_v12, 7  ;;  %v7017_v12 = vld [vmem:[%s8204_s5 + $0x70] sm:$0xff]  }
 0x2e8   :  { %v3267_v8 = vadd.f32 %v3266_v7, %v3265_v3  ;;  %v3319_v43 = vadd.f32 %v3318_v6, %v3317_v4  ;;  %v7809_v40 = vsub.s32 0, %v3338_v14  ;;  %v7018_v14 = vld [vmem:[%s8204_s5 + $0x78] sm:$0xff]  }
 0x2ea   :  { %v3268_v45 = vrot.slane %v3267_v8, 4  ;;  %v3321_v46 = vadd.f32 %v3320_v44, %v3319_v43 }
 0x2ec   :  { %v3269_v63 = vadd.f32 %v3268_v45, %v3267_v8  ;;  %v3322_v37 = vrot.slane %v3321_v46, 4 }
 0x2ee   :  { %v3270_v9 = vrot.slane %v3269_v63, 2  ;;  %v3323_v18 = vadd.f32 %v3322_v37, %v3321_v46 }
 0x2f0   :  { %v3271_v5 = vadd.f32 %v3270_v9, %v3269_v63  ;;  %v3324_v22 = vrot.slane %v3323_v18, 2 }
 0x2f2   :  { %v3272_v23 = vrot.slane %v3271_v5, 1  ;;  %v3325_v25 = vadd.f32 %v3324_v22, %v3323_v18 }
 0x2f4   :  { %v3273_v59 = vadd.f32 %v3272_v23, %v3271_v5  ;;  %v3326_v60 = vrot.slane %v3325_v25, 1  ;;  %v7006_v23 = vld [vmem:[%s8204_s5 + $0x18] sm:$0xff]  }
 0x2f6   :  { %v3274_v61 = vmul.f32 0.0078125, %v3273_v59  ;;  %v3327_v62 = vadd.f32 %v3326_v60, %v3325_v25  ;;  %v7007_v25 = vld [vmem:[%s8204_s5 + $0x20] sm:$0xff]   ;;  %v7008_v59 = vld [vmem:[%s8204_s5 + $0x28] sm:$0xff]   ;;  %v7009_v60 = vld [vmem:[%s8204_s5 + $0x30] sm:$0xff]  }
 0x2f8   :  { %v3328_v26 = vmul.f32 0.0078125, %v3327_v62  ;;  %v3329_v39 = vmul.f32 %v3274_v61, %v3274_v61  ;;  %v7011_v62 = vld [vmem:[%s8204_s5 + $0x40] sm:$0xff]  }
 0x2fa   :  { %v3330_v33 = vsub.f32 %v3328_v26, %v3329_v39  ;;  %v7013_v26 = vld [vmem:[%s8204_s5 + $0x50] sm:$0xff]   ;;  %v7014_v39 = vld [vmem:[%s8204_s5 + $0x58] sm:$0xff]  }
 0x2fc   :  { %v3331_v34 = vadd.f32 1e-05, %v3330_v33  ;;  %v7015_v33 = vld [vmem:[%s8204_s5 + $0x60] sm:$0xff]  }
 0x2fe   :  { %7080 = vrsqrt.f32 %v3331_v34  ;;  %v7016_v34 = vld [vmem:[%s8204_s5 + $0x68] sm:$0xff]  }
 0x308   :  { %v7081_v49 = vpop.eup %7080 }
 0x309   :  { %v3333_v50 = vmul.f32 %v7081_v49, %v3234_v20  ;;  %v7019_v20 = vld [vmem:[%s8204_s5 + $0x80] sm:$0xff]   ;;  %v7020_v49 = vld [vmem:[%s8204_s5 + $0x88] sm:$0xff]  }
 0x30b   :  { %v3334_v11 = vmul.f32 %v3333_v50, %v3274_v61  ;;  %v3340_v13 = vrot.slane %v3333_v50, %v7809_v40  ;;  %v7010_v61 = vld [vmem:[%s8204_s5 + $0x38] sm:$0xff]   ;;  %v7022_v50 = vld [vmem:[%s8205_s6 + $0x8] sm:$0xff]  }
 0x30c   :  { %6530 = vmatprep.subr.bf16.mxu1 %v7022_v50 }
 0x30d   :  { %v3335_v29 = vsub.f32 %v3235_v10, %v3334_v11  ;;  %v3355_v32 = vmul.f32 %v3340_v13, %v3231_v16  ;;  %v3342_v52 = vmul.f32 %v3340_v13, %v7689_v53  ;;  %v3343_v54 = vmul.f32 %v3340_v13, %v7703_v47  ;;  %6531 = vmatpush3.bf16.msra.mxu1 %v7022_v50  ;;  %v7023_v10 = vld [vmem:[%s8205_s6 + $0x10] sm:$0xff]   ;;  %v7024_v11 = vld [vmem:[%s8205_s6 + $0x18] sm:$0xff]  }
 0x30e   :  { %v3344_v56 = vmul.f32 %v3340_v13, %v7687_v51  ;;  %v3345_v35 = vmul.f32 %v3340_v13, %v7693_v55  ;;  %v3346_v57 = vmul.f32 %v3340_v13, %v7716_v21  ;;  %v3347_v58 = vmul.f32 %v3340_v13, %v7731_v42 }
 0x30f   :  { %v3362_v27 = vrot.slane %v3335_v29, %v7809_v40  ;;  %v3348_v30 = vmul.f32 %v3340_v13, %v7712_v19  ;;  %v3349_v36 = vmul.f32 %v3340_v13, %v7729_v41  ;;  %v3350_v16 = vmul.f32 %v3340_v13, %v7748_v48 }
 0x310   :  { %v3351_v53 = vmul.f32 %v3340_v13, %v7761_v17  ;;  %v3352_v47 = vmul.f32 %v3340_v13, %v7744_v28  ;;  %v3353_v51 = vmul.f32 %v3340_v13, %v7759_v0  ;;  %v3354_v55 = vmul.f32 %v3340_v13, %v7778_v24 }
 0x311   :  { %v3364_v1 = vadd.f32 %v3362_v27, %v3342_v52  ;;  %v3365_v21 = vadd.f32 %v3362_v27, %v3343_v54  ;;  %v3366_v2 = vadd.f32 %v3362_v27, %v3344_v56  ;;  %v3367_v42 = vadd.f32 %v3362_v27, %v3345_v35 }
 0x312   :  { %v3368_v3 = vadd.f32 %v3362_v27, %v3346_v57  ;;  %v3369_v4 = vadd.f32 %v3362_v27, %v3347_v58  ;;  %v3370_v6 = vadd.f32 %v3362_v27, %v3348_v30  ;;  %v3371_v19 = vadd.f32 %v3362_v27, %v3349_v36  ;;  %v7026_v57 = vld [vmem:[%s8205_s6 + $0x28] sm:$0xff]   ;;  %v7027_v30 = vld [vmem:[%s8205_s6 + $0x30] sm:$0xff]  }
 0x313   :  { %v3380_v7 = vpack.c.bf16 %v3365_v21, %v3364_v1  ;;  %v3381_v41 = vpack.c.bf16 %v3367_v42, %v3366_v2  ;;  %v3372_v8 = vadd.f32 %v3362_v27, %v3350_v16  ;;  %v3373_v48 = vadd.f32 %v3362_v27, %v3351_v53 }
 0x314   :  { %v3382_v43 = vpack.c.bf16 %v3369_v4, %v3368_v3  ;;  %v3383_v17 = vpack.c.bf16 %v3371_v19, %v3370_v6  ;;  %v3374_v44 = vadd.f32 %v3362_v27, %v3352_v47  ;;  %v3375_v28 = vadd.f32 %v3362_v27, %v3353_v51  ;;  %v7028_v3 = vld [vmem:[%s8205_s6 + $0x38] sm:$0xff]   ;;  %v7029_v19 = vld [vmem:[%s8205_s6 + $0x40] sm:$0xff]  }
 0x315   :  { %6468 = vmatprep.subr.bf16.mxu0 %v3380_v7  ;;  %v3384_v0 = vpack.c.bf16 %v3373_v48, %v3372_v8  ;;  %v3376_v45 = vadd.f32 %v3362_v27, %v3354_v55  ;;  %v3377_v24 = vadd.f32 %v3362_v27, %v3355_v32  ;;  %v3356_v46 = vmul.f32 %v3340_v13, %v7786_v31  ;;  %v7004_v31 = vld [vmem:[%s8204_s5 + $0x8] sm:$0xff]  }
 0x316   :  { %6469 = vmatpush3.bf16.msra.mxu0 %v3380_v7  ;;  %v3385_v63 = vpack.c.bf16 %v3375_v28, %v3374_v44  ;;  %v3357_v37 = vmul.f32 %v3340_v13, %v7789_v15  ;;  %v7005_v15 = vld [vmem:[%s8204_s5 + $0x10] sm:$0xff]   ;;  %v7025_v13 = vld [vmem:[%s8205_s6 + $0x20] sm:$0xff]   ;;  %v7030_v44 = vld [vmem:[%s8205_s6 + $0x48] sm:$0xff]  }
 0x317   :  { %6470 = vmatprep.subr.bf16.mxu0 %v3381_v41  ;;  %v3386_v9 = vpack.c.bf16 %v3377_v24, %v3376_v45  ;;  %v3378_v18 = vadd.f32 %v3362_v27, %v3356_v46  ;;  %6536 = vmatprep.subr.bf16.mxu1 %v7025_v13  ;;  %v7031_v46 = vld [vmem:[%s8205_s6 + $0x50] sm:$0xff]  }
 0x318   :  { %v3379_v5 = vadd.f32 %v3362_v27, %v3357_v37 }
 0x31a   :  { %6471 = vmatpush3.bf16.msra.mxu0 %v3381_v41  ;;  %v3387_v22 = vpack.c.bf16 %v3379_v5, %v3378_v18 }
 0x31b   :  { %6472 = vmatprep.subr.bf16.mxu0 %v3382_v43 }
 0x31e   :  { %6473 = vmatpush3.bf16.msra.mxu0 %v3382_v43 }
 0x31f   :  { %6474 = vmatprep.subr.bf16.mxu0 %v3383_v17 }
 0x322   :  { %6475 = vmatpush3.bf16.msra.mxu0 %v3383_v17 }
 0x323   :  { %6476 = vmatprep.subr.bf16.mxu0 %v3384_v0 }
 0x326   :  { %6477 = vmatpush3.bf16.msra.mxu0 %v3384_v0 }
 0x327   :  { %6478 = vmatprep.subr.bf16.mxu0 %v3385_v63 }
 0x32a   :  { %6479 = vmatpush3.bf16.msra.mxu0 %v3385_v63 }
 0x32b   :  { %6480 = vmatprep.subr.bf16.mxu0 %v3386_v9 }
 0x32e   :  { %6481 = vmatpush3.bf16.msra.mxu0 %v3386_v9 }
 0x32f   :  { %6482 = vmatprep.subr.bf16.mxu0 %v3387_v22 }
 0x332   :  { %6483 = vmatpush3.bf16.msra.mxu0 %v3387_v22 }
 0x333   :  { %6520 = vmatprep.subr.bf16.mxu0 %v7023_v10 }
 0x335   :  { %6485 = vmatmul.mubr.bf16.vlgmr.msra.gmra.mrb[160].mxu0 %v7004_v31  ;;  %v7032_v31 = vld [vmem:[%s8205_s6 + $0x58] sm:$0xff]  }
 0x336   :  { %6488 = vmatprep.mubr.bf16.mxu0 %v7005_v15  ;;  %6521 = vmatpush3.bf16.msra.mxu0 %v7023_v10 }
 0x337   :  { %6522 = vmatprep.subr.bf16.mxu0 %v7024_v11 }
 0x33a   :  { %6523 = vmatpush3.bf16.msra.mxu0 %v7024_v11 }
 0x33d   :  { %6489 = vmatmul.mubr.bf16.gmra.mrb[164].mxu0 %v7006_v23 }
 0x33e   :  { %6492 = vmatprep.mubr.bf16.mxu0 %v7007_v25  ;;  %v7033_v25 = vld [vmem:[%s8205_s6 + $0x60] sm:$0xff]  }
 0x345   :  { %6493 = vmatmul.mubr.bf16.gmra.mrb[168].mxu0 %v7008_v59 }
 0x346   :  { %6496 = vmatprep.mubr.bf16.mxu0 %v7009_v60 }
 0x34d   :  { %6497 = vmatmul.mubr.bf16.gmra.mrb[172].mxu0 %v7010_v61 }
 0x34e   :  { %6500 = vmatprep.mubr.bf16.mxu0 %v7011_v62 }
 0x355   :  { %6501 = vmatmul.mubr.bf16.gmra.mrb[176].mxu0 %v7012_v38 }
 0x356   :  { %6504 = vmatprep.mubr.bf16.mxu0 %v7013_v26  ;;  %v7034_v26 = vld [vmem:[%s8205_s6 + $0x68] sm:$0xff]  }
 0x35d   :  { %6505 = vmatmul.mubr.bf16.gmra.mrb[180].mxu0 %v7014_v39 }
 0x35e   :  { %6508 = vmatprep.mubr.bf16.mxu0 %v7015_v33 }
 0x365   :  { %6509 = vmatmul.mubr.bf16.gmra.mrb[184].mxu0 %v7016_v34 }
 0x366   :  { %6512 = vmatprep.mubr.bf16.mxu0 %v7017_v12 }
 0x36d   :  { %6513 = vmatmul.mubr.bf16.gmra.mrb[188].mxu0 %v7018_v14 }
 0x36e   :  { %6516 = vmatprep.mubr.bf16.mxu0 %v7019_v20  ;;  %v7035_v20 = vld [vmem:[%s8205_s6 + $0x70] sm:$0xff]  }
 0x375   :  { %6517 = vmatmul.mubr.bf16.gmra.mrb[192].mxu0 %v7020_v49 }
 0x408   :  { %v6486_v29 = vpop.f32.mrb[160].mxu0 }
 0x409   :  { %v3566_v32 = vpop.f32.mrb[161].mxu0 }
 0x40a   :  { %v6487_v52 = vpop.f32.mrb[162].mxu0 }
 0x40b   :  { %v3710_v54 = vpack.c.bf16 %v6487_v52, %v6486_v29  ;;  %v3569_v56 = vpop.f32.mrb[163].mxu0  ;;  %v7037_v52 = vld [vmem:[%s8205_s6 + $0x80] sm:$0xff]  }
 0x40c   :  { %v3709_v35 = vpack.c.bf16 %v3569_v56, %v3566_v32  ;;  %v7036_v32 = vld [vmem:[%s8205_s6 + $0x78] sm:$0xff]  }
 0x40e   :  { %6532 = vmatprep.mubr.msk.bf16.mxu1 %vm3236_vm15, %v3709_v35 }
 0x40f   :  { %6533 = vmatmul.mubr.msk.bf16.vlgmr.msra.gmra.mrb[16].mxu1 %vm3236_vm15, %v3710_v54  ;;  %v7038_v54 = vld [vmem:[%s8205_s6 + $0x88] sm:$0xff]  }
 0x410   :  { %v6490_v58 = vpop.f32.mrb[164].mxu0  ;;  %6537 = vmatpush3.bf16.msra.mxu1 %v7025_v13 }
 0x411   :  { %v3582_v27 = vpop.f32.mrb[165].mxu0  ;;  %6538 = vmatprep.subr.bf16.mxu1 %v7026_v57 }
 0x412   :  { %v6491_v36 = vpop.f32.mrb[166].mxu0 }
 0x413   :  { %v3712_v16 = vpack.c.bf16 %v6491_v36, %v6490_v58  ;;  %v3585_v53 = vpop.f32.mrb[167].mxu0  ;;  %v7046_v36 = vld [vmem:[%s8209_s10 + $0x8] sm:$0xff]  }
 0x414   :  { %v3711_v47 = vpack.c.bf16 %v3585_v53, %v3582_v27  ;;  %6539 = vmatpush3.bf16.msra.mxu1 %v7026_v57  ;;  %v7091_v27 = vmov 0.0  }
 0x415   :  { %6544 = vmatprep.subr.bf16.mxu1 %v7027_v30  ;;  %6592 = vmatprep.subr.bf16.mxu0 %v7091_v27 }
 0x416   :  { %6524 = vmatprep.mubr.msk.bf16.mxu0 %vm3236_vm15, %v3711_v47 }
 0x417   :  { %6525 = vmatmul.mubr.msk.bf16.vlgmr.msra.gmra.mrb[196].mxu0 %vm3236_vm15, %v3712_v16  ;;  %v7048_v16 = vld [vmem:[%s8209_s10 + $0x10] sm:$0xff]  }
 0x418   :  { %v6494_v51 = vpop.f32.mrb[168].mxu0  ;;  %6596 = vmatprep.mubr.msk.bf16.mxu0 %vm7092_vm14, %v7091_v27 }
 0x419   :  { %v3598_v55 = vpop.f32.mrb[169].mxu0 }
 0x41a   :  { %v6495_v1 = vpop.f32.mrb[170].mxu0 }
 0x41b   :  { %v3714_v21 = vpack.c.bf16 %v6495_v1, %v6494_v51  ;;  %v3601_v2 = vpop.f32.mrb[171].mxu0 }
 0x41c   :  { %v3713_v42 = vpack.c.bf16 %v3601_v2, %v3598_v55 }
 0x41e   :  { %6540 = vmatprep.mubr.msk.bf16.mxu1 %vm3236_vm15, %v3713_v42 }
 0x41f   :  { %6541 = vmatmul.mubr.msk.bf16.vlgmr.msra.gmra.mrb[16].mxu1 %vm3236_vm15, %v3714_v21 }
 0x420   :  { %v6498_v4 = vpop.f32.mrb[172].mxu0  ;;  %6545 = vmatpush3.bf16.msra.mxu1 %v7027_v30  ;;  %v7044_v30 = vld [vmem:[%s8209_s10] sm:$0xff]  }
 0x421   :  { %v3614_v6 = vpop.f32.mrb[173].mxu0  ;;  %6546 = vmatprep.subr.bf16.mxu1 %v7028_v3 }
 0x422   :  { %v6499_v7 = vpop.f32.mrb[174].mxu0 }
 0x423   :  { %v3716_v41 = vpack.c.bf16 %v6499_v7, %v6498_v4  ;;  %v3617_v8 = vpop.f32.mrb[175].mxu0 }
 0x424   :  { %v3715_v48 = vpack.c.bf16 %v3617_v8, %v3614_v6  ;;  %6547 = vmatpush3.bf16.msra.mxu1 %v7028_v3 }
 0x425   :  { %6552 = vmatprep.subr.bf16.mxu1 %v7029_v19 }
 0x426   :  { %6548 = vmatprep.mubr.msk.bf16.mxu1 %vm3236_vm15, %v3715_v48 }
 0x428   :  { %v6502_v43 = vpop.f32.mrb[176].mxu0 }
 0x429   :  { %v3630_v17 = vpop.f32.mrb[177].mxu0 }
 0x42a   :  { %v6503_v28 = vpop.f32.mrb[178].mxu0 }
 0x42b   :  { %6549 = vmatmul.mubr.msk.bf16.vlgmr.msra.gmra.mrb[16].mxu1 %vm3236_vm15, %v3716_v41  ;;  %v3718_v0 = vpack.c.bf16 %v6503_v28, %v6502_v43  ;;  %v3633_v45 = vpop.f32.mrb[179].mxu0 }
 0x42c   :  { %v3717_v24 = vpack.c.bf16 %v3633_v45, %v3630_v17  ;;  %6553 = vmatpush3.bf16.msra.mxu1 %v7029_v19 }
 0x42d   :  { %6554 = vmatprep.subr.bf16.mxu1 %v7030_v44 }
 0x42e   :  { %6556 = vmatprep.mubr.msk.bf16.mxu1 %vm3236_vm15, %v3717_v24 }
 0x430   :  { %6555 = vmatpush3.bf16.msra.mxu1 %v7030_v44  ;;  %v6506_v63 = vpop.f32.mrb[180].mxu0 }
 0x431   :  { %v3646_v37 = vpop.f32.mrb[181].mxu0  ;;  %6560 = vmatprep.subr.bf16.mxu1 %v7031_v46 }
 0x432   :  { %v6507_v9 = vpop.f32.mrb[182].mxu0 }
 0x433   :  { %v3720_v18 = vpack.c.bf16 %v6507_v9, %v6506_v63  ;;  %v3649_v5 = vpop.f32.mrb[183].mxu0 }
 0x434   :  { %v3719_v22 = vpack.c.bf16 %v3649_v5, %v3646_v37 }
 0x437   :  { %6557 = vmatmul.mubr.msk.bf16.vlgmr.msra.gmra.mrb[16].mxu1 %vm3236_vm15, %v3718_v0 }
 0x438   :  { %6561 = vmatpush3.bf16.msra.mxu1 %v7031_v46  ;;  %6564 = vmatprep.mubr.msk.bf16.mxu1 %vm3236_vm15, %v3719_v22  ;;  %v6510_v15 = vpop.f32.mrb[184].mxu0 }
 0x439   :  { %6562 = vmatprep.subr.bf16.mxu1 %v7032_v31  ;;  %v3662_v23 = vpop.f32.mrb[185].mxu0 }
 0x43a   :  { %v6511_v59 = vpop.f32.mrb[186].mxu0 }
 0x43b   :  { %v3722_v60 = vpack.c.bf16 %v6511_v59, %v6510_v15  ;;  %v3665_v61 = vpop.f32.mrb[187].mxu0 }
 0x43c   :  { %6563 = vmatpush3.bf16.msra.mxu1 %v7032_v31  ;;  %v3721_v62 = vpack.c.bf16 %v3665_v61, %v3662_v23 }
 0x43d   :  { %6568 = vmatprep.subr.bf16.mxu1 %v7033_v25 }
 0x440   :  { %v6514_v38 = vpop.f32.mrb[188].mxu0 }
 0x441   :  { %v3678_v39 = vpop.f32.mrb[189].mxu0 }
 0x442   :  { %v6515_v33 = vpop.f32.mrb[190].mxu0 }
 0x443   :  { %6565 = vmatmul.mubr.msk.bf16.vlgmr.msra.gmra.mrb[16].mxu1 %vm3236_vm15, %v3720_v18  ;;  %v3724_v34 = vpack.c.bf16 %v6515_v33, %v6514_v38  ;;  %v3681_v12 = vpop.f32.mrb[191].mxu0 }
 0x444   :  { %6569 = vmatpush3.bf16.msra.mxu1 %v7033_v25  ;;  %6572 = vmatprep.mubr.msk.bf16.mxu1 %vm3236_vm15, %v3721_v62  ;;  %v3723_v14 = vpack.c.bf16 %v3681_v12, %v3678_v39 }
 0x445   :  { %6570 = vmatprep.subr.bf16.mxu1 %v7034_v26 }
 0x448   :  { %6571 = vmatpush3.bf16.msra.mxu1 %v7034_v26  ;;  %v6518_v49 = vpop.f32.mrb[192].mxu0 }
 0x449   :  { %6576 = vmatprep.subr.bf16.mxu1 %v7035_v20  ;;  %v3694_v50 = vpop.f32.mrb[193].mxu0 }
 0x44a   :  { %v6519_v10 = vpop.f32.mrb[194].mxu0 }
 0x44b   :  { %v3726_v11 = vpack.c.bf16 %v6519_v10, %v6518_v49  ;;  %v3697_v13 = vpop.f32.mrb[195].mxu0 }
 0x44c   :  { %v3725_v29 = vpack.c.bf16 %v3697_v13, %v3694_v50 }
 0x44f   :  { %6573 = vmatmul.mubr.msk.bf16.vlgmr.msra.gmra.mrb[16].mxu1 %vm3236_vm15, %v3722_v60 }
 0x450   :  { %6577 = vmatpush3.bf16.msra.mxu1 %v7035_v20  ;;  %6580 = vmatprep.mubr.msk.bf16.mxu1 %vm3236_vm15, %v3723_v14 }
 0x451   :  { %6578 = vmatprep.subr.bf16.mxu1 %v7036_v32 }
 0x454   :  { %6579 = vmatpush3.bf16.msra.mxu1 %v7036_v32 }
 0x455   :  { %6584 = vmatprep.subr.bf16.mxu1 %v7037_v52 }
 0x45b   :  { %6581 = vmatmul.mubr.msk.bf16.vlgmr.msra.gmra.mrb[16].mxu1 %vm3236_vm15, %v3724_v34 }
 0x45c   :  { %6585 = vmatpush3.bf16.msra.mxu1 %v7037_v52  ;;  %6588 = vmatprep.mubr.msk.bf16.mxu1 %vm3236_vm15, %v3725_v29  ;;  %v4414_v29 = vld [vmem:[%s8210_s7] sm:$0x1] }
 0x45d   :  { %6586 = vmatprep.subr.bf16.mxu1 %v7038_v54 }
 0x460   :  { %6587 = vmatpush3.bf16.msra.mxu1 %v7038_v54  ;;  %v4415_v54 = vld [vmem:[%s8211_s8] sm:$0x1] }
 0x461   :  { %6628 = vmatprep.subr.bf16.mxu1 %v7091_v27 }
 0x467   :  { %6589 = vmatmul.mubr.msk.bf16.vlgmr.msra.gmra.mrb[16].mxu1 %vm3236_vm15, %v3726_v11 }
 0x468   :  { %6636 = vmatprep.mubr.msk.bf16.mxu1 %vm7092_vm14, %v7091_v27  ;;  %6629 = vmatpush3.bf16.msra.mxu1 %v7044_v30 }
 0x469   :  { %6630 = vmatprep.subr.bf16.mxu1 %v7091_v27 }
 0x46c   :  { %6631 = vmatpush3.bf16.msra.mxu1 %v7046_v36 }
 0x46d   :  { %6632 = vmatprep.subr.bf16.mxu1 %v7091_v27 }
 0x470   :  { %6633 = vmatpush3.bf16.msra.mxu1 %v7048_v16 }
 0x471   :  { %6634 = vmatprep.subr.bf16.mxu1 %v7091_v27 }
 0x4ea   :  { %v6526_v56 = vpop.f32.mrb[196].mxu0 }
 0x4eb   :  { %v3788_v35 = vpop.f32.mrb[197].mxu0 }
 0x4ec   :  { %v6527_v57 = vpop.f32.mrb[198].mxu0 }
 0x4ed   :  { %v3791_v58 = vpop.f32.mrb[199].mxu0 }
 0x53a   :  { %v6590_v53 = vpop.f32.mrb[16].mxu1 }
 0x53b   :  { %v6745_v47 = vadd.f32 %v6590_v53, %v6526_v56  ;;  %v4383_v51 = vpop.f32.mrb[17].mxu1 }
 0x53c   :  { %v6746_v55 = vadd.f32 %v4383_v51, %v3788_v35  ;;  %v6591_v1 = vpop.f32.mrb[18].mxu1 }
 0x53d   :  { %v4408_v21 = vmul.f32 0.2, %v6745_v47  ;;  %v6747_v2 = vadd.f32 %v6591_v1, %v6527_v57  ;;  %v4386_v42 = vpop.f32.mrb[19].mxu1  ;;  %vm4404_vm0 = vcmp.gt.f32.partialorder %v6745_v47, 0.0 }
 0x53e   :  { %vm4402_vm1 = vcmp.gt.f32.partialorder %v6746_v55, 0.0  ;;  %v4406_v3 = vmul.f32 0.2, %v6746_v55  ;;  %v6748_v4 = vadd.f32 %v4386_v42, %v3791_v58  ;;  %v7039_v42 = vld [vmem:[%s8208_s9] sm:$0xff]  }
 0x53f   :  { %v4409_v6 = vmul.f32 0.2, %v6747_v2  ;;  %vm4405_vm3 = vcmp.gt.f32.partialorder %v6747_v2, 0.0  ;;  %v4412_v7 = vsel %vm4404_vm0, %v6745_v47, %v4408_v21 }
 0x540   :  { %v4410_v19 = vsel %vm4402_vm1, %v6746_v55, %v4406_v3  ;;  %vm4403_vm4 = vcmp.gt.f32.partialorder %v6748_v4, 0.0  ;;  %v4407_v41 = vmul.f32 0.2, %v6748_v4  ;;  %v4433_v17 = vmul.f32 %v4412_v7, %v4412_v7  ;;  %v7045_v3 = vld [vmem:[%s8209_s10 + $0x20] sm:$0xff]  }
 0x541   :  { %v4431_v8 = vmul.f32 %v4410_v19, %v4410_v19  ;;  %v4413_v48 = vsel %vm4405_vm3, %v6747_v2, %v4409_v6  ;;  %v4417_v44 = vsel %vm4416_vm5, %v4410_v19, 0.0  ;;  %v4420_v24 = vsel %vm4416_vm5, %v4412_v7, 0.0  ;;  %v7040_v6 = vld [vmem:[%s8208_s9 + $0x8] sm:$0xff]  }
 0x542   :  { %v4411_v43 = vsel %vm4403_vm4, %v6748_v4, %v4407_v41  ;;  %v4434_v63 = vmul.f32 %v4413_v48, %v4413_v48  ;;  %v4438_v5 = vsel %vm4416_vm5, %v4433_v17, 0.0  ;;  %v4422_v22 = vsel %vm4416_vm5, %v4413_v48, 0.0  ;;  %v7047_v4 = vld [vmem:[%s8209_s10 + $0x28] sm:$0xff]   ;;  %v7043_v41 = vld [vmem:[%s8208_s9 + $0x20] ss:$0 sps:$4 sm:$0xff]  }
 0x543   :  { %v4418_v28 = vsel %vm4416_vm5, %v4411_v43, 0.0  ;;  %v4432_v0 = vmul.f32 %v4411_v43, %v4411_v43  ;;  %v4435_v46 = vsel %vm4416_vm5, %v4431_v8, 0.0  ;;  %v7049_v8 = vld [vmem:[%s8209_s10 + $0x30] sm:$0xff]  }
 0x544   :  { %v4419_v45 = vadd.f32 %v4418_v28, %v4417_v44  ;;  %v4440_v23 = vsel %vm4416_vm5, %v4434_v63, 0.0  ;;  %v7053_v63 = vld [vmem:[%s8209_s10 + $0x48] sm:$0xff]  }
 0x545   :  { %v4436_v37 = vsel %vm4416_vm5, %v4432_v0, 0.0  ;;  %v7052_v0 = vld [vmem:[%s8209_s10 + $0x40] sm:$0xff]  }
 0x546   :  { %v4421_v9 = vadd.f32 %v4420_v24, %v4419_v45  ;;  %v4437_v18 = vadd.f32 %v4436_v37, %v4435_v46 }
 0x548   :  { %v4423_v31 = vadd.f32 %v4422_v22, %v4421_v9  ;;  %v4439_v15 = vadd.f32 %v4438_v5, %v4437_v18  ;;  %v7054_v18 = vld [vmem:[%s8209_s10 + $0x50] sm:$0xff]  }
 0x54a   :  { %v4424_v25 = vrot.slane %v4423_v31, 4  ;;  %v4441_v59 = vadd.f32 %v4440_v23, %v4439_v15  ;;  %v7055_v15 = vld [vmem:[%s8209_s10 + $0x58] sm:$0xff]  }
 0x54c   :  { %v4425_v60 = vadd.f32 %v4424_v25, %v4423_v31  ;;  %v4442_v61 = vrot.slane %v4441_v59, 4 }
 0x54e   :  { %v4426_v62 = vrot.slane %v4425_v60, 2  ;;  %v4443_v38 = vadd.f32 %v4442_v61, %v4441_v59  ;;  %v7056_v59 = vld [vmem:[%s8209_s10 + $0x60] sm:$0xff]  }
 0x550   :  { %v4427_v26 = vadd.f32 %v4426_v62, %v4425_v60  ;;  %v4444_v39 = vrot.slane %v4443_v38, 2 }
 0x552   :  { %v4428_v33 = vrot.slane %v4427_v26, 1  ;;  %v4445_v34 = vadd.f32 %v4444_v39, %v4443_v38  ;;  %v7057_v38 = vld [vmem:[%s8209_s10 + $0x68] sm:$0xff]  }
 0x554   :  { %v4429_v12 = vadd.f32 %v4428_v33, %v4427_v26  ;;  %v4446_v14 = vrot.slane %v4445_v34, 1  ;;  %v7058_v33 = vld [vmem:[%s8209_s10 + $0x70] sm:$0xff]  }
 0x556   :  { %v4430_v20 = vmul.f32 0.03125, %v4429_v12  ;;  %v4447_v49 = vadd.f32 %v4446_v14, %v4445_v34 }
 0x558   :  { %v4448_v50 = vmul.f32 0.03125, %v4447_v49  ;;  %v4449_v10 = vmul.f32 %v4430_v20, %v4430_v20 }
 0x55a   :  { %v4450_v11 = vsub.f32 %v4448_v50, %v4449_v10  ;;  %v7060_v10 = vld [vmem:[%s8209_s10 + $0x80] sm:$0xff]  }
 0x55c   :  { %v4451_v13 = vadd.f32 1e-05, %v4450_v11 }
 0x55e   :  { %7082 = vrsqrt.f32 %v4451_v13 }
 0x568   :  { %v7083_v32 = vpop.eup %7082 }
 0x569   :  { %v4453_v52 = vmul.f32 %v7083_v32, %v4414_v29  ;;  %v7061_v32 = vld [vmem:[%s8209_s10 + $0x88] sm:$0xff]  }
 0x56b   :  { %v4454_v56 = vmul.f32 %v4453_v52, %v4430_v20  ;;  %v4460_v35 = vrot.slane %v4453_v52, %v7809_v40  ;;  %v7059_v20 = vld [vmem:[%s8209_s10 + $0x78] sm:$0xff]   ;;  %v7062_v52 = vld [vmem:[%s8209_s10 + $0x90] sm:$0xff]  }
 0x56d   :  { %v4455_v57 = vsub.f32 %v4415_v54, %v4454_v56  ;;  %v4463_v58 = vmul.f32 %v4460_v35, %v4411_v43  ;;  %v4462_v30 = vmul.f32 %v4460_v35, %v4410_v19  ;;  %v4464_v36 = vmul.f32 %v4460_v35, %v4412_v7  ;;  %v7041_v19 = vld [vmem:[%s8208_s9 + $0x10] sm:$0xff]   ;;  %v7042_v7 = vld [vmem:[%s8208_s9 + $0x18] sm:$0xff]   ;;  %v7064_v56 = vld [vmem:[%s8209_s10 + $0xa0] sm:$0xff]  }
 0x56e   :  { %v4465_v16 = vmul.f32 %v4460_v35, %v4413_v48  ;;  %v7050_v48 = vld [vmem:[%s8209_s10 + $0x18] sm:$0xff]   ;;  %v7065_v35 = vld [vmem:[%s8209_s10 + $0xa8] sm:$0xff]  }
 0x56f   :  { %v4470_v53 = vrot.slane %v4455_v57, %v7809_v40  ;;  %6635 = vmatpush3.bf16.msra.mxu1 %v7050_v48  ;;  %v7051_v43 = vld [vmem:[%s8209_s10 + $0x38] sm:$0xff]   ;;  %v7066_v57 = vld [vmem:[%s8209_s10 + $0xb0] sm:$0xff]  }
 0x570   :  { %6640 = vmatprep.subr.bf16.mxu1 %v7091_v27  ;;  %v7063_v54 = vld [vmem:[%s8209_s10 + $0x98] sm:$0xff]  }
 0x571   :  { %v4473_v47 = vadd.f32 %v4470_v53, %v4463_v58  ;;  %v4472_v51 = vadd.f32 %v4470_v53, %v4462_v30  ;;  %v4474_v55 = vadd.f32 %v4470_v53, %v4464_v36  ;;  %v4475_v1 = vadd.f32 %v4470_v53, %v4465_v16  ;;  %v7067_v58 = vld [vmem:[%s8209_s10 + $0xb8] sm:$0xff]   ;;  %v7068_v30 = vld [vmem:[%s8209_s10 + $0xc0] sm:$0xff]   ;;  %v7069_v16 = vld [vmem:[%s8209_s10 + $0xc8] sm:$0xff]  }
 0x572   :  { %v7070_v53 = vld [vmem:[%s8209_s10 + $0xd0] sm:$0xff]  }
 0x573   :  { %v4476_v21 = vpack.c.bf16 %v4473_v47, %v4472_v51  ;;  %v4477_v2 = vpack.c.bf16 %v4475_v1, %v4474_v55  ;;  %v7071_v47 = vld [vmem:[%s8209_s10 + $0xd8] sm:$0xff]   ;;  %v7072_v51 = vld [vmem:[%s8209_s10 + $0xe0] sm:$0xff]   ;;  %v7073_v55 = vld [vmem:[%s8209_s10 + $0xe8] sm:$0xff]  }
 0x574   :  { %v7074_v1 = vld [vmem:[%s8209_s10 + $0xf0] sm:$0xff]  }
 0x575   :  { %6593 = vmatpush3.bf16.msra.mxu0 %v4476_v21  ;;  %v7075_v21 = vld [vmem:[%s8209_s10 + $0xf8] sm:$0xff]  }
 0x576   :  { %6594 = vmatprep.subr.bf16.mxu0 %v7091_v27 }
 0x579   :  { %6595 = vmatpush3.bf16.msra.mxu0 %v4477_v2  ;;  %v7076_v2 = vld [vmem:[%s8209_s10 + $0x100] sm:$0xff]  }
 0x57a   :  { %6616 = vmatprep.subr.bf16.mxu0 %v7091_v27 }
 0x57c   :  { %6597 = vmatmul.mubr.msk.bf16.vlgmr.msra.gmra.mrb[200].mxu0 %vm3236_vm15, %v7039_v42 }
 0x57d   :  { %6600 = vmatprep.mubr.msk.bf16.mxu0 %vm7092_vm14, %v7091_v27  ;;  %6617 = vmatpush3.bf16.msra.mxu0 %v7045_v3  ;;  %v7077_v3 = vld [vmem:[%s8209_s10 + $0x108] sm:$0xff]  }
 0x57e   :  { %6618 = vmatprep.subr.bf16.mxu0 %v7091_v27 }
 0x581   :  { %6619 = vmatpush3.bf16.msra.mxu0 %v7047_v4  ;;  %v7078_v4 = vld [vmem:[%s8209_s10 + $0x110] sm:$0xff]  }
 0x582   :  { %6620 = vmatprep.subr.bf16.mxu0 %v7091_v27 }
 0x584   :  { %6601 = vmatmul.mubr.msk.bf16.gmra.mrb[204].mxu0 %vm3236_vm15, %v7040_v6  ;;  %v7079_v6 = vld [vmem:[%s8209_s10 + $0x118] sm:$0xff]  }
 0x585   :  { %6604 = vmatprep.mubr.msk.bf16.mxu0 %vm7092_vm14, %v7091_v27  ;;  %6621 = vmatpush3.bf16.msra.mxu0 %v7049_v8 }
 0x586   :  { %6622 = vmatprep.subr.bf16.mxu0 %v7091_v27 }
 0x589   :  { %6623 = vmatpush3.bf16.msra.mxu0 %v7051_v43 }
 0x58a   :  { %6724 = vmatprep.subr.mxu0 %v7091_v27 }
 0x58c   :  { %6605 = vmatmul.mubr.msk.bf16.gmra.mrb[208].mxu0 %vm3236_vm15, %v7041_v19 }
 0x58d   :  { %6608 = vmatprep.mubr.msk.bf16.mxu0 %vm7092_vm14, %v7091_v27 }
 0x594   :  { %6609 = vmatmul.mubr.msk.bf16.gmra.mrb[212].mxu0 %vm3236_vm15, %v7042_v7 }
 0x595   :  { %6612 = vmatprep.mubr.msk.bf16.mxu0 %vm7092_vm14, %v7091_v27 }
 0x59c   :  { %6613 = vmatmul.mubr.msk.bf16.gmra.mrb[216].mxu0 %vm3236_vm15, %v7043_v41 }
 0x59d   :  { %6624 = vmatprep.mubr.msk.bf16.mxu0 %vm7092_vm14, %v7091_v27 }
 0x64f   :  { %v4559_v17 = vpop.f32.mrb[200].mxu0 }
 0x650   :  { %v6598_v44 = vpop.f32.mrb[201].mxu0 }
 0x651   :  { %v4562_v28 = vpop.f32.mrb[202].mxu0 }
 0x652   :  { %v4597_v45 = vpack.c.bf16 %v4562_v28, %v4559_v17  ;;  %v6599_v24 = vpop.f32.mrb[203].mxu0 }
 0x654   :  { %v4620_v46 = vrot.slane %v4597_v45, 4  ;;  %6637 = vmatmul.mubr.msk.bf16.vlgmr.msra.gmra.mrb[20].mxu1 %vm4416_vm5, %v4597_v45 }
 0x655   :  { %6641 = vmatpush3.bf16.msra.mxu1 %v7052_v0  ;;  %6648 = vmatprep.mubr.msk.bf16.mxu1 %vm7092_vm14, %v7091_v27 }
 0x656   :  { %6625 = vmatmul.mubr.msk.bf16.vlgmr.msra.gmra.mrb[220].mxu0 %vm4416_vm5, %v4620_v46  ;;  %6642 = vmatprep.subr.bf16.mxu1 %v7091_v27 }
 0x657   :  { %v4567_v37 = vpop.f32.mrb[204].mxu0  ;;  %6726 = vmatprep.mubr.msk.f32.mxu0 %vm7092_vm14, %v7091_v27 }
 0x658   :  { %v6602_v9 = vpop.f32.mrb[205].mxu0 }
 0x659   :  { %6643 = vmatpush3.bf16.msra.mxu1 %v7053_v63  ;;  %v4570_v5 = vpop.f32.mrb[206].mxu0 }
 0x65a   :  { %6644 = vmatprep.subr.bf16.mxu1 %v7091_v27  ;;  %v4598_v22 = vpack.c.bf16 %v4570_v5, %v4567_v37  ;;  %v6603_v31 = vpop.f32.mrb[207].mxu0 }
 0x65c   :  { %v4842_v13 = vrot.slane %v4598_v22, 4 }
 0x65d   :  { %6645 = vmatpush3.bf16.msra.mxu1 %v7054_v18 }
 0x65e   :  { %6646 = vmatprep.subr.bf16.mxu1 %v7091_v27 }
 0x65f   :  { %v4575_v23 = vpop.f32.mrb[208].mxu0 }
 0x660   :  { %v6606_v25 = vpop.f32.mrb[209].mxu0 }
 0x661   :  { %6647 = vmatpush3.bf16.msra.mxu1 %v7055_v15  ;;  %v4578_v60 = vpop.f32.mrb[210].mxu0 }
 0x662   :  { %6652 = vmatprep.subr.bf16.mxu1 %v7091_v27  ;;  %v4599_v61 = vpack.c.bf16 %v4578_v60, %v4575_v23  ;;  %v6607_v62 = vpop.f32.mrb[211].mxu0 }
 0x664   :  { %6649 = vmatmul.mubr.msk.bf16.vlgmr.msra.gmra.mrb[20].mxu1 %vm4416_vm5, %v4598_v22  ;;  %v4998_v36 = vrot.slane %v4599_v61, 4 }
 0x665   :  { %6653 = vmatpush3.bf16.msra.mxu1 %v7056_v59  ;;  %6660 = vmatprep.mubr.msk.bf16.mxu1 %vm7092_vm14, %v7091_v27 }
 0x666   :  { %6654 = vmatprep.subr.bf16.mxu1 %v7091_v27 }
 0x667   :  { %v4583_v26 = vpop.f32.mrb[212].mxu0 }
 0x668   :  { %v6610_v39 = vpop.f32.mrb[213].mxu0 }
 0x669   :  { %6655 = vmatpush3.bf16.msra.mxu1 %v7057_v38  ;;  %v4586_v34 = vpop.f32.mrb[214].mxu0  ;;  %v5303_v39 = vld [vmem:[%s8212_s11] sm:$0x1] }
 0x66a   :  { %6656 = vmatprep.subr.bf16.mxu1 %v7091_v27  ;;  %v8073_v12 = vpack.c.bf16 %v4586_v34, %v4583_v26  ;;  %v6611_v14 = vpop.f32.mrb[215].mxu0 }
 0x66c   :  { %v5154_v42 = vrot.slane %v8073_v12, 4 }
 0x66d   :  { %6657 = vmatpush3.bf16.msra.mxu1 %v7058_v33 }
 0x66e   :  { %6658 = vmatprep.subr.bf16.mxu1 %v7091_v27 }
 0x66f   :  { %v8079_v49 = vpop.f32.mrb[216].mxu0 }
 0x670   :  { %v6614_v50 = vpop.f32.mrb[217].mxu0  ;;  %v4601_v19 = vpack.c.bf16 %v8079_v49, %v8079_v49 }
 0x671   :  { %6659 = vmatpush3.bf16.msra.mxu1 %v7059_v20  ;;  %v4594_v11 = vpop.f32.mrb[218].mxu0 }
 0x672   :  { %6664 = vmatprep.subr.bf16.mxu1 %v7091_v27  ;;  %v6615_v29 = vpop.f32.mrb[219].mxu0  ;;  %v5341_v11 = vld [vmem:[%s8214_s13] sm:$0xff] }
 0x674   :  { %6661 = vmatmul.mubr.msk.bf16.vlgmr.msra.gmra.mrb[20].mxu1 %vm4416_vm5, %v4842_v13 }
 0x675   :  { %6665 = vmatpush3.bf16.msra.mxu1 %v7060_v10  ;;  %6672 = vmatprep.mubr.msk.bf16.mxu1 %vm7092_vm14, %v7091_v27 }
 0x676   :  { %6666 = vmatprep.subr.bf16.mxu1 %v7091_v27 }
 0x679   :  { %6667 = vmatpush3.bf16.msra.mxu1 %v7061_v32  ;;  %v5343_v32 = vld [vmem:[%s8215_s14] sm:$0x3] }
 0x67a   :  { %6668 = vmatprep.subr.bf16.mxu1 %v7091_v27 }
 0x67d   :  { %6669 = vmatpush3.bf16.msra.mxu1 %v7062_v52  ;;  %v21_v52 = vstv %s8216_s15 }
 0x67e   :  { %6670 = vmatprep.subr.bf16.mxu1 %v7091_v27  ;;  %22 = vst [vmem:[#allocation2] sm:$0x1] %v21_v52 }
 0x681   :  { %6671 = vmatpush3.bf16.msra.mxu1 %v7063_v54 }
 0x682   :  { %6676 = vmatprep.subr.bf16.mxu1 %v7091_v27 }
 0x684   :  { %6673 = vmatmul.mubr.msk.bf16.vlgmr.msra.gmra.mrb[20].mxu1 %vm4416_vm5, %v4599_v61 }
 0x685   :  { %6677 = vmatpush3.bf16.msra.mxu1 %v7064_v56  ;;  %6684 = vmatprep.mubr.msk.bf16.mxu1 %vm7092_vm14, %v7091_v27 }
 0x686   :  { %6678 = vmatprep.subr.bf16.mxu1 %v7091_v27 }
 0x689   :  { %6679 = vmatpush3.bf16.msra.mxu1 %v7065_v35  ;;  %v5889_v35 = vld [vmem:[#allocation2] ss:$0 sm:$0xff] }
 0x68a   :  { %6680 = vmatprep.subr.bf16.mxu1 %v7091_v27 }
 0x68d   :  { %6681 = vmatpush3.bf16.msra.mxu1 %v7066_v57 }
 0x68e   :  { %6682 = vmatprep.subr.bf16.mxu1 %v7091_v27 }
 0x691   :  { %6683 = vmatpush3.bf16.msra.mxu1 %v7067_v58 }
 0x692   :  { %6688 = vmatprep.subr.bf16.mxu1 %v7091_v27 }
 0x694   :  { %6685 = vmatmul.mubr.msk.bf16.vlgmr.msra.gmra.mrb[20].mxu1 %vm4416_vm5, %v4998_v36 }
 0x695   :  { %6689 = vmatpush3.bf16.msra.mxu1 %v7068_v30  ;;  %6696 = vmatprep.mubr.msk.bf16.mxu1 %vm7092_vm14, %v7091_v27 }
 0x696   :  { %6690 = vmatprep.subr.bf16.mxu1 %v7091_v27 }
 0x699   :  { %6691 = vmatpush3.bf16.msra.mxu1 %v7069_v16 }
 0x69a   :  { %6692 = vmatprep.subr.bf16.mxu1 %v7091_v27 }
 0x69d   :  { %6693 = vmatpush3.bf16.msra.mxu1 %v7070_v53 }
 0x69e   :  { %6694 = vmatprep.subr.bf16.mxu1 %v7091_v27 }
 0x6a1   :  { %6695 = vmatpush3.bf16.msra.mxu1 %v7071_v47 }
 0x6a2   :  { %6700 = vmatprep.subr.bf16.mxu1 %v7091_v27 }
 0x6a4   :  { %6697 = vmatmul.mubr.msk.bf16.vlgmr.msra.gmra.mrb[20].mxu1 %vm4416_vm5, %v8073_v12  ;;  %v5304_v12 = vld [vmem:[%s8213_s12] sm:$0x1] }
 0x6a5   :  { %6701 = vmatpush3.bf16.msra.mxu1 %v7072_v51  ;;  %6708 = vmatprep.mubr.msk.bf16.mxu1 %vm7092_vm14, %v7091_v27 }
 0x6a6   :  { %6702 = vmatprep.subr.bf16.mxu1 %v7091_v27 }
 0x6a9   :  { %6703 = vmatpush3.bf16.msra.mxu1 %v7073_v55 }
 0x6aa   :  { %6704 = vmatprep.subr.bf16.mxu1 %v7091_v27 }
 0x6ad   :  { %6705 = vmatpush3.bf16.msra.mxu1 %v7074_v1 }
 0x6ae   :  { %6706 = vmatprep.subr.bf16.mxu1 %v7091_v27 }
 0x6b1   :  { %6707 = vmatpush3.bf16.msra.mxu1 %v7075_v21 }
 0x6b2   :  { %6712 = vmatprep.subr.bf16.mxu1 %v7091_v27 }
 0x6b4   :  { %6709 = vmatmul.mubr.msk.bf16.vlgmr.msra.gmra.mrb[20].mxu1 %vm4416_vm5, %v5154_v42 }
 0x6b5   :  { %6713 = vmatpush3.bf16.msra.mxu1 %v7076_v2  ;;  %6720 = vmatprep.mubr.msk.bf16.mxu1 %vm7092_vm14, %v7091_v27 }
 0x6b6   :  { %6714 = vmatprep.subr.bf16.mxu1 %v7091_v27 }
 0x6b9   :  { %6715 = vmatpush3.bf16.msra.mxu1 %v7077_v3 }
 0x6ba   :  { %6716 = vmatprep.subr.bf16.mxu1 %v7091_v27 }
 0x6bd   :  { %6717 = vmatpush3.bf16.msra.mxu1 %v7078_v4 }
 0x6be   :  { %6718 = vmatprep.subr.bf16.mxu1 %v7091_v27 }
 0x6c1   :  { %6719 = vmatpush3.bf16.msra.mxu1 %v7079_v6 }
 0x6c4   :  { %6721 = vmatmul.mubr.msk.bf16.vlgmr.msra.gmra.mrb[20].mxu1 %vm4416_vm5, %v4601_v19 }
 0x729   :  { %v4682_v7 = vpop.f32.mrb[220].mxu0 }
 0x72a   :  { %v6626_v41 = vpop.f32.mrb[221].mxu0 }
 0x72b   :  { %v4685_v8 = vpop.f32.mrb[222].mxu0 }
 0x72c   :  { %v6627_v48 = vpop.f32.mrb[223].mxu0 }
 0x797   :  { %v5293_v43 = vpop.f32.mrb[20].mxu1 }
 0x798   :  { %v6749_v17 = vadd.f32 %v5293_v43, %v4682_v7  ;;  %v6722_v44 = vpop.f32.mrb[21].mxu1 }
 0x799   :  { %v5296_v28 = vpop.f32.mrb[22].mxu1 }
 0x79a   :  { %vm5300_vm15 = vcmp.gt.f32.partialorder %v6749_v17, 0.0  ;;  %v5301_v0 = vmul.f32 0.2, %v6749_v17  ;;  %v6723_v45 = vpop.f32.mrb[23].mxu1 }
 0x79c   :  { %v5302_v24 = vsel %vm5300_vm15, %v6749_v17, %v5301_v0 }
 0x79d   :  { %v5305_v46 = vrot.slane %v5302_v24, 4  ;;  %v5312_v27 = vmul.f32 %v5302_v24, %v5302_v24 }
 0x79f   :  { %v5306_v63 = vadd.f32 %v5305_v46, %v5302_v24  ;;  %v5313_v37 = vrot.slane %v5312_v27, 4 }
 0x7a1   :  { %v5307_v9 = vrot.slane %v5306_v63, 2  ;;  %v5314_v18 = vadd.f32 %v5313_v37, %v5312_v27 }
 0x7a3   :  { %v5308_v5 = vadd.f32 %v5307_v9, %v5306_v63  ;;  %v5315_v22 = vrot.slane %v5314_v18, 2 }
 0x7a5   :  { %v5309_v31 = vrot.slane %v5308_v5, 1  ;;  %v5316_v15 = vadd.f32 %v5315_v22, %v5314_v18 }
 0x7a7   :  { %v5310_v23 = vadd.f32 %v5309_v31, %v5308_v5  ;;  %v5317_v25 = vrot.slane %v5316_v15, 1 }
 0x7a9   :  { %v5311_v59 = vmul.f32 0.125, %v5310_v23  ;;  %v5318_v60 = vadd.f32 %v5317_v25, %v5316_v15 }
 0x7ab   :  { %v5319_v61 = vmul.f32 0.125, %v5318_v60  ;;  %v5320_v62 = vmul.f32 %v5311_v59, %v5311_v59 }
 0x7ad   :  { %v5321_v38 = vsub.f32 %v5319_v61, %v5320_v62 }
 0x7af   :  { %v5322_v26 = vadd.f32 1e-05, %v5321_v38 }
 0x7b1   :  { %7084 = vrsqrt.f32 %v5322_v26 }
 0x7bb   :  { %v7085_v33 = vpop.eup %7084 }
 0x7bc   :  { %v5324_v34 = vmul.f32 %v7085_v33, %v5303_v39 }
 0x7be   :  { %v5325_v14 = vmul.f32 %v5324_v34, %v5311_v59  ;;  %v5331_v20 = vrot.slane %v5324_v34, %v7809_v40 }
 0x7c0   :  { %v5326_v49 = vsub.f32 %v5304_v12, %v5325_v14  ;;  %v5333_v50 = vmul.f32 %v5331_v20, %v5302_v24 }
 0x7c2   :  { %v5338_v10 = vrot.slane %v5326_v49, %v7809_v40 }
 0x7c4   :  { %v5340_v13 = vadd.f32 %v5338_v10, %v5333_v50 }
 0x7c6   :  { %v5342_v29 = vmul.f32 %v5341_v11, %v5340_v13 }
 0x7c8   :  { %6725 = vmatpush3.msra.mxu0 %v5342_v29 }
 0x7c9   :  { %6727 = vmatmul.mubr.msk.f32.vlgmr.msra.gmra.mrb[224].mxu0 %vm5344_vm6, %v5343_v32 }
 0x89c   :  { %v5414_v40 = vpop.f32.mrb[224].mxu0 }
 0x89d   :  { %v6728_v54 = vpop.f32.mrb[225].mxu0  ;;  %v5419_v56 = vsel %vm5418_vm8, %v5414_v40, 0.0 }
 0x89e   :  { %5420 = vadd.xlane.f32.xlu0 %v5419_v56 }
 0x92b   :  { %v5421_v57 = vpop.xlane.xlu0 %5420 }
 0x92c   :  { %v5429_v58 = vadd.f32 %v5889_v35, %v5421_v57 }
 0x92e   :  { %v5430_v30 = vsub.f32 0.0, %v5429_v58 }
 0x930   :  { %v5431_v36 = vmul.f32 1.442695, %v5430_v30 }
 0x932   :  { %7086 = vpow2.f32 %v5431_v36 }
 0x93c   :  { %v7087_v16 = vpop.eup %7086 }
 0x93d   :  { %v5433_v53 = vadd.f32 1.0, %v7087_v16 }
 0x93f   :  { %7088 = vrcp.f32 %v5433_v53 }
 0x949   :  { %v7089_v47 = vpop.eup %7088 }
 0x94a   :  { %5436 = vst.msk [vmem:[%s8217_s16] sm:$0x3] %vm5435_vm9, %v7089_v47 }

</bundles_post_ra>
